<compile_context>
chip_gen: v5e
topology: v5e:2x2
jax: 0.10.0
libtpu: 0.0.40
codegen_flags: <defaults>
</compile_context>

<pallas_src>
import functools
import math

import jax
import jax.numpy as jnp
from jax import lax
from jax.experimental import pallas as pl
from jax.experimental.pallas import tpu as pltpu

VMEM = pl.BlockSpec(memory_space=pltpu.MemorySpace.VMEM)

# True -> exact reciprocal in the softmax denominator (tight allclose vs PyTorch);
# False -> EUP approximate reciprocal (perf).
EXACT_SOFTMAX = False


# --------------------------------- in-kernel helpers --------------------------------- #
def _shift_mats(S, K):
    """Shift matrices M_off with (M_off @ x)[t] = x[t + off] (exact zeros at borders)."""
    r = lax.broadcasted_iota(jnp.int32, (S, S), 0)
    c = lax.broadcasted_iota(jnp.int32, (S, S), 1)
    mats = []
    for off in range(-(K // 2), K // 2 + 1):
        mats.append(None if off == 0 else (c == r + off).astype(jnp.float32))
    return mats


def _conv3(x, w_ref, conv_idx, bias, shifts, *, relu=False, cin=None):
    """'same' 1-D conv on (S, C): one (S,Cin)@(Cin,Cout) dot per tap; position shifts via
    MXU shift-matmuls instead of concatenates (MXU is ~idle, VMEM copies are not free)."""
    y = bias
    for k, m in enumerate(shifts):
        w = w_ref[conv_idx, k]
        if cin is not None:
            w = w[:cin, :]
        xs = x if m is None else jnp.dot(m, x, preferred_element_type=jnp.float32)
        y = y + jnp.dot(xs, w, preferred_element_type=jnp.float32)
    return jnp.maximum(y, 0.0) if relu else y


def _cnn(x, w_ref, bias_all, bias_row0, shifts, *, cin_first=None):
    """CNN block: z1=relu(K1 x); z2=z1+K3(relu(K2 z1)); z3=z2+K5(relu(K4 z1)); K6 z3.
    Channel dims are zero-padded to w_ref.shape[-1]; padded channels stay exactly 0."""
    P = w_ref.shape[-1]

    def conv(z, i, relu=False, cin=None):
        b = bias_all[bias_row0 + i:bias_row0 + i + 1, :P]
        return _conv3(z, w_ref, i, b, shifts, relu=relu, cin=cin)

    z1 = conv(x, 0, relu=True, cin=cin_first)
    z2 = z1 + conv(conv(z1, 1, relu=True), 2)
    z3 = z2 + conv(conv(z1, 3, relu=True), 4)
    return conv(z3, 5)


def _layernorm(x, g, b, eps=1e-5):
    mu = jnp.mean(x, axis=-1, keepdims=True)
    xc = x - mu
    var = jnp.mean(xc * xc, axis=-1, keepdims=True)
    return xc * lax.rsqrt(var + eps) * g + b


def _encoder_layer(x, causal, lw_ref, lv_ref, l, *, d, nhead, nhid):
    """Post-norm TransformerEncoderLayer (PyTorch default); dropout = identity."""
    hd = d // nhead
    scale = 1.0 / math.sqrt(hd)
    lv = lv_ref[l]                                    # (3H+7, W) vector pack, tiny

    def vec(slot, width):
        return lv[slot:slot + 1, :width]              # (1, width), lane 0 aligned

    # Self-attention with per-head weights pre-split on host: every matmul result and
    # bias add lands at lane 0 (no 8-lane-offset slices), no k.T relayout.
    y = vec(3 * nhead, d)                             # out-projection bias
    for h in range(nhead):
        wq = lw_ref[l, h][:d, :hd]
        wk = lw_ref[l, nhead + h][:d, :hd]
        wv = lw_ref[l, 2 * nhead + h][:d, :hd]
        wo = lw_ref[l, 3 * nhead + h][:hd, :d]
        q = (jnp.dot(x, wq, preferred_element_type=jnp.float32) + vec(h, hd)) * scale
        k = jnp.dot(x, wk, preferred_element_type=jnp.float32) + vec(nhead + h, hd)
        v = jnp.dot(x, wv, preferred_element_type=jnp.float32) + vec(2 * nhead + h, hd)
        # contraction on last dim of both operands -> no explicit transpose
        s = lax.dot_general(q, k, (((1,), (1,)), ((), ())),
                            preferred_element_type=jnp.float32)          # (S, S)
        s = jnp.where(causal, s, -1e30)
        s = s - jnp.max(s, axis=-1, keepdims=True)
        p = jnp.exp(s)
        denom = jnp.sum(p, axis=-1, keepdims=True)
        p = p / denom if EXACT_SOFTMAX else p * pl.reciprocal(denom, approx=True)
        ho = jnp.dot(p, v, preferred_element_type=jnp.float32)           # (S, hd)
        y = y + jnp.dot(ho, wo, preferred_element_type=jnp.float32)      # fold into Wo

    # residual + LayerNorm 1
    x = _layernorm(x + y, vec(3 * nhead + 3, d), vec(3 * nhead + 4, d))
    # feed-forward: linear1 -> relu -> linear2
    w1 = lw_ref[l, 4 * nhead][:d, :nhid]
    w2 = lw_ref[l, 4 * nhead + 1][:nhid, :d]
    h1 = jnp.maximum(
        jnp.dot(x, w1, preferred_element_type=jnp.float32) + vec(3 * nhead + 1, nhid), 0.0)
    y2 = jnp.dot(h1, w2, preferred_element_type=jnp.float32) + vec(3 * nhead + 2, d)
    # residual + LayerNorm 2
    return _layernorm(x + y2, vec(3 * nhead + 5, d), vec(3 * nhead + 6, d))


# ------------------------------------ fused kernel ------------------------------------ #
def _fused_forward_kernel(x_ref, enc_w_ref, dec_w_ref, cnn_b_ref, lw_ref, lv_ref, o_ref,
                          *, d, nhead, nhid, nlayers):
    S = x_ref.shape[0]
    K = enc_w_ref.shape[1]
    cnn_b = cnn_b_ref[...]                                    # (12, maxP) — tiny

    shifts = _shift_mats(S, K)
    r = lax.broadcasted_iota(jnp.int32, (S, S), 0)
    c = lax.broadcasted_iota(jnp.int32, (S, S), 1)
    causal = r >= c                                           # square subsequent mask

    # 1) CNN encoder (channels zero-padded to P_enc; padded channels stay 0)
    x = _cnn(x_ref[...], enc_w_ref, cnn_b, 0, shifts)[:, :d]

    # 2) transformer encoder stack — all weights VMEM-resident, unrolled at toy nlayers
    for l in range(nlayers):
        x = _encoder_layer(x, causal, lw_ref, lv_ref, l, d=d, nhead=nhead, nhid=nhid)

    # 3) subtract mean over the sequence dimension
    x = x - jnp.mean(x, axis=0, keepdims=True)

    # 4) CNN decoder; stored lane-dense at width P_dec (multiple of 128), wrapper slices
    o_ref[...] = _cnn(x, dec_w_ref, cnn_b, 6, shifts, cin_first=d)


# ------------------------------- parameters & packing --------------------------------- #
def _round_up(x, m):
    return ((x + m - 1) // m) * m


def init_cnn_params(key, nIn, nhid1, nhid2, nOut, K):
    """PyTorch-layout Conv1d params: weight (Cout, Cin, K), bias (Cout,)."""
    shapes = [(nhid1, nIn), (nhid2, nhid1), (nhid1, nhid2),
              (nhid2, nhid1), (nhid1, nhid2), (nOut, nhid1)]
    ranges = [0.1, 0.001, 0.001, 0.001, 0.001, 0.1]
    keys = jax.random.split(key, 2 * len(shapes))
    params = {}
    for i, ((co, ci), rg) in enumerate(zip(shapes, ranges)):
        w = jax.random.uniform(keys[2 * i], (co, ci, K), minval=-rg, maxval=rg)
        bound = 1.0 / math.sqrt(ci * K)
        b = jax.random.uniform(keys[2 * i + 1], (co,), minval=-bound, maxval=bound)
        params[f"K{i + 1}_w"] = w.astype(jnp.float32)
        params[f"K{i + 1}_b"] = b.astype(jnp.float32)
    return params


def init_layer_params(key, d, nhid):
    """PyTorch-layout TransformerEncoderLayer params."""
    ks = jax.random.split(key, 6)

    def xavier(k, shape):
        lim = math.sqrt(6.0 / (shape[0] + shape[1]))
        return jax.random.uniform(k, shape, minval=-lim, maxval=lim).astype(jnp.float32)

    p = {}
    p["in_proj_w"] = xavier(ks[0], (3 * d, d))
    p["in_proj_b"] = jnp.zeros((3 * d,), jnp.float32)
    p["out_proj_w"] = xavier(ks[1], (d, d))
    p["out_proj_b"] = jnp.zeros((d,), jnp.float32)
    p["linear1_w"] = xavier(ks[2], (nhid, d))
    p["linear1_b"] = jax.random.uniform(ks[3], (nhid,), minval=-1 / math.sqrt(d),
                                        maxval=1 / math.sqrt(d)).astype(jnp.float32)
    p["linear2_w"] = xavier(ks[4], (d, nhid))
    p["linear2_b"] = jax.random.uniform(ks[5], (d,), minval=-1 / math.sqrt(nhid),
                                        maxval=1 / math.sqrt(nhid)).astype(jnp.float32)
    p["ln1_g"] = jnp.ones((d,), jnp.float32)
    p["ln1_b"] = jnp.zeros((d,), jnp.float32)
    p["ln2_g"] = jnp.ones((d,), jnp.float32)
    p["ln2_b"] = jnp.zeros((d,), jnp.float32)
    return p


def _pack_cnn(cnn_params, P, K):
    """Torch (Cout,Cin,K) conv weights -> (6, K, P, P) tap matrices, zero-padded."""
    w = jnp.zeros((6, K, P, P), jnp.float32)
    b = jnp.zeros((6, P), jnp.float32)
    for i in range(6):
        wi = cnn_params[f"K{i + 1}_w"]
        bi = cnn_params[f"K{i + 1}_b"]
        co, ci, _ = wi.shape
        w = w.at[i, :, :ci, :co].set(jnp.transpose(wi, (2, 1, 0)))   # (K, Cin, Cout)
        b = b.at[i, :co].set(bi)
    return w, b


def _pack_layers(layer_params, d, nhead, nhid):
    """Per-head split + pad: matrices -> (L, 4H+2, W, W); vectors -> (L, 3H+7, W)."""
    hd = d // nhead
    W = max(d, nhid)
    L = len(layer_params)
    lw = jnp.zeros((L, 4 * nhead + 2, W, W), jnp.float32)
    lv = jnp.zeros((L, 3 * nhead + 7, W), jnp.float32)
    for l, p in enumerate(layer_params):
        wq, wk, wv = (p["in_proj_w"][j * d:(j + 1) * d, :].T for j in range(3))
        bq, bk, bv = (p["in_proj_b"][j * d:(j + 1) * d] for j in range(3))
        wo = p["out_proj_w"].T
        for h in range(nhead):
            sl = slice(h * hd, (h + 1) * hd)
            lw = lw.at[l, h, :d, :hd].set(wq[:, sl])
            lw = lw.at[l, nhead + h, :d, :hd].set(wk[:, sl])
            lw = lw.at[l, 2 * nhead + h, :d, :hd].set(wv[:, sl])
            lw = lw.at[l, 3 * nhead + h, :hd, :d].set(wo[sl, :])
            lv = lv.at[l, h, :hd].set(bq[sl])
            lv = lv.at[l, nhead + h, :hd].set(bk[sl])
            lv = lv.at[l, 2 * nhead + h, :hd].set(bv[sl])
        lw = lw.at[l, 4 * nhead, :d, :nhid].set(p["linear1_w"].T)
        lw = lw.at[l, 4 * nhead + 1, :nhid, :d].set(p["linear2_w"].T)
        lv = lv.at[l, 3 * nhead, :d].set(p["out_proj_b"])
        lv = lv.at[l, 3 * nhead + 1, :nhid].set(p["linear1_b"])
        lv = lv.at[l, 3 * nhead + 2, :d].set(p["linear2_b"])
        lv = lv.at[l, 3 * nhead + 3, :d].set(p["ln1_g"])
        lv = lv.at[l, 3 * nhead + 4, :d].set(p["ln1_b"])
        lv = lv.at[l, 3 * nhead + 5, :d].set(p["ln2_g"])
        lv = lv.at[l, 3 * nhead + 6, :d].set(p["ln2_b"])
    return lw, lv


def build_packed_params(key, *, ntoken, ninp, nhead, nhid, nlayers, ntokenOut, stencil):
    assert stencil % 2 == 1, "odd stencil required for 'same' padding"
    assert ninp % nhead == 0
    k_enc, k_dec, k_lay = jax.random.split(key, 3)
    enc_raw = init_cnn_params(k_enc, ntoken, 2 * ntoken, 3 * ntoken, ninp, stencil)
    dec_raw = init_cnn_params(k_dec, ninp, 2 * ninp, 3 * ninp, ntokenOut, stencil)
    lay_raw = [init_layer_params(k, ninp, nhid) for k in jax.random.split(k_lay, nlayers)]

    P_enc = max(ntoken, 2 * ntoken, 3 * ntoken, ninp)
    P_dec = _round_up(max(ninp, 2 * ninp, 3 * ninp, ntokenOut), 128)  # lane-dense store
    enc_w, enc_b = _pack_cnn(enc_raw, P_enc, stencil)
    dec_w, dec_b = _pack_cnn(dec_raw, P_dec, stencil)
    cnn_b = jnp.zeros((12, max(P_enc, P_dec)), jnp.float32)
    cnn_b = cnn_b.at[:6, :P_enc].set(enc_b).at[6:, :P_dec].set(dec_b)
    lw, lv = _pack_layers(lay_raw, ninp, nhead, nhid)

    return dict(enc_w=enc_w, dec_w=dec_w, cnn_b=cnn_b, layer_w=lw, layer_v=lv,
                ntoken=ntoken, ninp=ninp, nhead=nhead, nhid=nhid, nlayers=nlayers,
                ntokenOut=ntokenOut, P_enc=P_enc, P_dec=P_dec)


# --------------------------------------- wrapper --------------------------------------- #
def transformer_model_forward(src, pp):
    """src: (S, 1, ntoken) — matches PyTorch (seq, batch=1, feature)."""
    S, B, ntoken = src.shape
    assert B == 1 and ntoken == pp["ntoken"]
    x = src[:, 0, :].astype(jnp.float32)                       # reshapeF -> (S, C)
    x = jnp.pad(x, ((0, 0), (0, pp["P_enc"] - ntoken)))        # wrapper-side layout pad

    kern = functools.partial(_fused_forward_kernel, d=pp["ninp"], nhead=pp["nhead"],
                             nhid=pp["nhid"], nlayers=pp["nlayers"])
    out = pl.pallas_call(
        kern,
        out_shape=jax.ShapeDtypeStruct((S, pp["P_dec"]), jnp.float32),
        in_specs=[VMEM] * 6,
        out_specs=VMEM,
        compiler_params=pltpu.CompilerParams(vmem_limit_bytes=32 * 1024 * 1024),
    )(x, pp["enc_w"], pp["dec_w"], pp["cnn_b"], pp["layer_w"], pp["layer_v"])
    return out[:, :pp["ntokenOut"]][:, None, :]                # reshapeB -> (S, 1, ntokenOut)


if __name__ == "__main__":
    # small shapes: ntoken=4, ninp=32, nhead=4, nhid=64, nlayers=2, ntokenOut=4, stencil=3, S=16
    S, ntoken, ninp, nhead, nhid, nlayers, ntokenOut, stencil = 16, 4, 32, 4, 64, 2, 4, 3
    key = jax.random.PRNGKey(0)
    k_params, k_src = jax.random.split(key)
    pp = build_packed_params(k_params, ntoken=ntoken, ninp=ninp, nhead=nhead, nhid=nhid,
                             nlayers=nlayers, ntokenOut=ntokenOut, stencil=stencil)

    src = jax.random.normal(k_src, (S, 1, ntoken), dtype=jnp.float32)
    out = jax.block_until_ready(transformer_model_forward(src, pp))
    assert out.shape == (S, 1, ntokenOut), out.shape
    assert bool(jnp.all(jnp.isfinite(out)))
    print("KERNEL_OK")
</pallas_src>

<mosaic_0001>
module attributes {stable_mosaic.version = 11 : i64} {
  func.func @_fused_forward_kernel(%arg0: memref<16x32xf32, #tpu.memory_space<vmem>>, %arg1: memref<6x3x32x32xf32, #tpu.memory_space<vmem>>, %arg2: memref<6x3x128x128xf32, #tpu.memory_space<vmem>>, %arg3: memref<12x128xf32, #tpu.memory_space<vmem>>, %arg4: memref<2x18x64x64xf32, #tpu.memory_space<vmem>>, %arg5: memref<2x19x64xf32, #tpu.memory_space<vmem>>, %arg6: memref<16x128xf32, #tpu.memory_space<vmem>>) attributes {dimension_semantics = [], scalar_prefetch = 0 : i64, scratch_operands = 0 : i64, tpu.core_type = #tpu.core_type<tc>} {
    %c0 = arith.constant 0 : index
    %c0_0 = arith.constant 0 : index
    %0 = vector.load %arg3[%c0, %c0_0] : memref<12x128xf32, #tpu.memory_space<vmem>>, vector<12x128xf32>
    %1 = tpu.iota {dimensions = array<i32: 0>} : vector<16x16xi32>
    %2 = tpu.iota {dimensions = array<i32: 1>} : vector<16x16xi32>
    %c-1_i32 = arith.constant -1 : i32
    %3 = vector.broadcast %c-1_i32 : i32 to vector<16x16xi32>
    %4 = arith.addi %1, %3 : vector<16x16xi32>
    %5 = arith.cmpi eq, %2, %4 : vector<16x16xi32>
    %6 = arith.extui %5 : vector<16x16xi1> to vector<16x16xi32>
    %7 = arith.sitofp %6 : vector<16x16xi32> to vector<16x16xf32>
    %c1_i32 = arith.constant 1 : i32
    %8 = vector.broadcast %c1_i32 : i32 to vector<16x16xi32>
    %9 = arith.addi %1, %8 : vector<16x16xi32>
    %10 = arith.cmpi eq, %2, %9 : vector<16x16xi32>
    %11 = arith.extui %10 : vector<16x16xi1> to vector<16x16xi32>
    %12 = arith.sitofp %11 : vector<16x16xi32> to vector<16x16xf32>
    %13 = tpu.iota {dimensions = array<i32: 0>} : vector<16x16xi32>
    %14 = tpu.iota {dimensions = array<i32: 1>} : vector<16x16xi32>
    %15 = arith.cmpi sge, %13, %14 : vector<16x16xi32>
    %c0_1 = arith.constant 0 : index
    %c0_2 = arith.constant 0 : index
    %16 = vector.load %arg0[%c0_1, %c0_2] : memref<16x32xf32, #tpu.memory_space<vmem>>, vector<16x32xf32>
    %17 = vector.extract_strided_slice %0 {offsets = [0, 0], sizes = [1, 32], strides = [1, 1]} : vector<12x128xf32> to vector<1x32xf32>
    %c0_3 = arith.constant 0 : index
    %c0_4 = arith.constant 0 : index
    %c0_5 = arith.constant 0 : index
    %c0_6 = arith.constant 0 : index
    %18 = vector.load %arg1[%c0_3, %c0_4, %c0_5, %c0_6] : memref<6x3x32x32xf32, #tpu.memory_space<vmem>>, vector<1x1x32x32xf32>
    %19 = vector.shape_cast %18 : vector<1x1x32x32xf32> to vector<32x32xf32>
    %cst = arith.constant dense<0.000000e+00> : vector<16x32xf32>
    %20 = tpu.matmul %7, %16, %cst {dimension_numbers = #tpu.dot_dimension_numbers<[1], [0], [0], [1], [0, 0, 1, 1], [], []>} : vector<16x16xf32>, vector<16x32xf32>, vector<16x32xf32> -> vector<16x32xf32>
    %cst_7 = arith.constant dense<0.000000e+00> : vector<16x32xf32>
    %21 = tpu.matmul %20, %19, %cst_7 {dimension_numbers = #tpu.dot_dimension_numbers<[1], [0], [0], [1], [0, 0, 1, 1], [], []>} : vector<16x32xf32>, vector<32x32xf32>, vector<16x32xf32> -> vector<16x32xf32>
    %22 = vector.broadcast %17 : vector<1x32xf32> to vector<16x32xf32>
    %23 = arith.addf %22, %21 : vector<16x32xf32>
    %c0_8 = arith.constant 0 : index
    %c1 = arith.constant 1 : index
    %c0_9 = arith.constant 0 : index
    %c0_10 = arith.constant 0 : index
    %24 = vector.load %arg1[%c0_8, %c1, %c0_9, %c0_10] : memref<6x3x32x32xf32, #tpu.memory_space<vmem>>, vector<1x1x32x32xf32>
    %25 = vector.shape_cast %24 : vector<1x1x32x32xf32> to vector<32x32xf32>
    %cst_11 = arith.constant dense<0.000000e+00> : vector<16x32xf32>
    %26 = tpu.matmul %16, %25, %cst_11 {dimension_numbers = #tpu.dot_dimension_numbers<[1], [0], [0], [1], [0, 0, 1, 1], [], []>} : vector<16x32xf32>, vector<32x32xf32>, vector<16x32xf32> -> vector<16x32xf32>
    %27 = arith.addf %23, %26 : vector<16x32xf32>
    %c0_12 = arith.constant 0 : index
    %c2 = arith.constant 2 : index
    %c0_13 = arith.constant 0 : index
    %c0_14 = arith.constant 0 : index
    %28 = vector.load %arg1[%c0_12, %c2, %c0_13, %c0_14] : memref<6x3x32x32xf32, #tpu.memory_space<vmem>>, vector<1x1x32x32xf32>
    %29 = vector.shape_cast %28 : vector<1x1x32x32xf32> to vector<32x32xf32>
    %cst_15 = arith.constant dense<0.000000e+00> : vector<16x32xf32>
    %30 = tpu.matmul %12, %16, %cst_15 {dimension_numbers = #tpu.dot_dimension_numbers<[1], [0], [0], [1], [0, 0, 1, 1], [], []>} : vector<16x16xf32>, vector<16x32xf32>, vector<16x32xf32> -> vector<16x32xf32>
    %cst_16 = arith.constant dense<0.000000e+00> : vector<16x32xf32>
    %31 = tpu.matmul %30, %29, %cst_16 {dimension_numbers = #tpu.dot_dimension_numbers<[1], [0], [0], [1], [0, 0, 1, 1], [], []>} : vector<16x32xf32>, vector<32x32xf32>, vector<16x32xf32> -> vector<16x32xf32>
    %32 = arith.addf %27, %31 : vector<16x32xf32>
    %cst_17 = arith.constant 0.000000e+00 : f32
    %33 = vector.broadcast %cst_17 : f32 to vector<16x32xf32>
    %34 = arith.maximumf %32, %33 : vector<16x32xf32>
    %35 = vector.extract_strided_slice %0 {offsets = [1, 0], sizes = [1, 32], strides = [1, 1]} : vector<12x128xf32> to vector<1x32xf32>
    %c1_18 = arith.constant 1 : index
    %c0_19 = arith.constant 0 : index
    %c0_20 = arith.constant 0 : index
    %c0_21 = arith.constant 0 : index
    %36 = vector.load %arg1[%c1_18, %c0_19, %c0_20, %c0_21] : memref<6x3x32x32xf32, #tpu.memory_space<vmem>>, vector<1x1x32x32xf32>
    %37 = vector.shape_cast %36 : vector<1x1x32x32xf32> to vector<32x32xf32>
    %cst_22 = arith.constant dense<0.000000e+00> : vector<16x32xf32>
    %38 = tpu.matmul %7, %34, %cst_22 {dimension_numbers = #tpu.dot_dimension_numbers<[1], [0], [0], [1], [0, 0, 1, 1], [], []>} : vector<16x16xf32>, vector<16x32xf32>, vector<16x32xf32> -> vector<16x32xf32>
    %cst_23 = arith.constant dense<0.000000e+00> : vector<16x32xf32>
    %39 = tpu.matmul %38, %37, %cst_23 {dimension_numbers = #tpu.dot_dimension_numbers<[1], [0], [0], [1], [0, 0, 1, 1], [], []>} : vector<16x32xf32>, vector<32x32xf32>, vector<16x32xf32> -> vector<16x32xf32>
    %40 = vector.broadcast %35 : vector<1x32xf32> to vector<16x32xf32>
    %41 = arith.addf %40, %39 : vector<16x32xf32>
    %c1_24 = arith.constant 1 : index
    %c1_25 = arith.constant 1 : index
    %c0_26 = arith.constant 0 : index
    %c0_27 = arith.constant 0 : index
    %42 = vector.load %arg1[%c1_24, %c1_25, %c0_26, %c0_27] : memref<6x3x32x32xf32, #tpu.memory_space<vmem>>, vector<1x1x32x32xf32>
    %43 = vector.shape_cast %42 : vector<1x1x32x32xf32> to vector<32x32xf32>
    %cst_28 = arith.constant dense<0.000000e+00> : vector<16x32xf32>
    %44 = tpu.matmul %34, %43, %cst_28 {dimension_numbers = #tpu.dot_dimension_numbers<[1], [0], [0], [1], [0, 0, 1, 1], [], []>} : vector<16x32xf32>, vector<32x32xf32>, vector<16x32xf32> -> vector<16x32xf32>
    %45 = arith.addf %41, %44 : vector<16x32xf32>
    %c1_29 = arith.constant 1 : index
    %c2_30 = arith.constant 2 : index
    %c0_31 = arith.constant 0 : index
    %c0_32 = arith.constant 0 : index
    %46 = vector.load %arg1[%c1_29, %c2_30, %c0_31, %c0_32] : memref<6x3x32x32xf32, #tpu.memory_space<vmem>>, vector<1x1x32x32xf32>
    %47 = vector.shape_cast %46 : vector<1x1x32x32xf32> to vector<32x32xf32>
    %cst_33 = arith.constant dense<0.000000e+00> : vector<16x32xf32>
    %48 = tpu.matmul %12, %34, %cst_33 {dimension_numbers = #tpu.dot_dimension_numbers<[1], [0], [0], [1], [0, 0, 1, 1], [], []>} : vector<16x16xf32>, vector<16x32xf32>, vector<16x32xf32> -> vector<16x32xf32>
    %cst_34 = arith.constant dense<0.000000e+00> : vector<16x32xf32>
    %49 = tpu.matmul %48, %47, %cst_34 {dimension_numbers = #tpu.dot_dimension_numbers<[1], [0], [0], [1], [0, 0, 1, 1], [], []>} : vector<16x32xf32>, vector<32x32xf32>, vector<16x32xf32> -> vector<16x32xf32>
    %50 = arith.addf %45, %49 : vector<16x32xf32>
    %cst_35 = arith.constant 0.000000e+00 : f32
    %51 = vector.broadcast %cst_35 : f32 to vector<16x32xf32>
    %52 = arith.maximumf %50, %51 : vector<16x32xf32>
    %53 = vector.extract_strided_slice %0 {offsets = [2, 0], sizes = [1, 32], strides = [1, 1]} : vector<12x128xf32> to vector<1x32xf32>
    %c2_36 = arith.constant 2 : index
    %c0_37 = arith.constant 0 : index
    %c0_38 = arith.constant 0 : index
    %c0_39 = arith.constant 0 : index
    %54 = vector.load %arg1[%c2_36, %c0_37, %c0_38, %c0_39] : memref<6x3x32x32xf32, #tpu.memory_space<vmem>>, vector<1x1x32x32xf32>
    %55 = vector.shape_cast %54 : vector<1x1x32x32xf32> to vector<32x32xf32>
    %cst_40 = arith.constant dense<0.000000e+00> : vector<16x32xf32>
    %56 = tpu.matmul %7, %52, %cst_40 {dimension_numbers = #tpu.dot_dimension_numbers<[1], [0], [0], [1], [0, 0, 1, 1], [], []>} : vector<16x16xf32>, vector<16x32xf32>, vector<16x32xf32> -> vector<16x32xf32>
    %cst_41 = arith.constant dense<0.000000e+00> : vector<16x32xf32>
    %57 = tpu.matmul %56, %55, %cst_41 {dimension_numbers = #tpu.dot_dimension_numbers<[1], [0], [0], [1], [0, 0, 1, 1], [], []>} : vector<16x32xf32>, vector<32x32xf32>, vector<16x32xf32> -> vector<16x32xf32>
    %58 = vector.broadcast %53 : vector<1x32xf32> to vector<16x32xf32>
    %59 = arith.addf %58, %57 : vector<16x32xf32>
    %c2_42 = arith.constant 2 : index
    %c1_43 = arith.constant 1 : index
    %c0_44 = arith.constant 0 : index
    %c0_45 = arith.constant 0 : index
    %60 = vector.load %arg1[%c2_42, %c1_43, %c0_44, %c0_45] : memref<6x3x32x32xf32, #tpu.memory_space<vmem>>, vector<1x1x32x32xf32>
    %61 = vector.shape_cast %60 : vector<1x1x32x32xf32> to vector<32x32xf32>
    %cst_46 = arith.constant dense<0.000000e+00> : vector<16x32xf32>
    %62 = tpu.matmul %52, %61, %cst_46 {dimension_numbers = #tpu.dot_dimension_numbers<[1], [0], [0], [1], [0, 0, 1, 1], [], []>} : vector<16x32xf32>, vector<32x32xf32>, vector<16x32xf32> -> vector<16x32xf32>
    %63 = arith.addf %59, %62 : vector<16x32xf32>
    %c2_47 = arith.constant 2 : index
    %c2_48 = arith.constant 2 : index
    %c0_49 = arith.constant 0 : index
    %c0_50 = arith.constant 0 : index
    %64 = vector.load %arg1[%c2_47, %c2_48, %c0_49, %c0_50] : memref<6x3x32x32xf32, #tpu.memory_space<vmem>>, vector<1x1x32x32xf32>
    %65 = vector.shape_cast %64 : vector<1x1x32x32xf32> to vector<32x32xf32>
    %cst_51 = arith.constant dense<0.000000e+00> : vector<16x32xf32>
    %66 = tpu.matmul %12, %52, %cst_51 {dimension_numbers = #tpu.dot_dimension_numbers<[1], [0], [0], [1], [0, 0, 1, 1], [], []>} : vector<16x16xf32>, vector<16x32xf32>, vector<16x32xf32> -> vector<16x32xf32>
    %cst_52 = arith.constant dense<0.000000e+00> : vector<16x32xf32>
    %67 = tpu.matmul %66, %65, %cst_52 {dimension_numbers = #tpu.dot_dimension_numbers<[1], [0], [0], [1], [0, 0, 1, 1], [], []>} : vector<16x32xf32>, vector<32x32xf32>, vector<16x32xf32> -> vector<16x32xf32>
    %68 = arith.addf %63, %67 : vector<16x32xf32>
    %69 = arith.addf %34, %68 : vector<16x32xf32>
    %70 = vector.extract_strided_slice %0 {offsets = [3, 0], sizes = [1, 32], strides = [1, 1]} : vector<12x128xf32> to vector<1x32xf32>
    %c3 = arith.constant 3 : index
    %c0_53 = arith.constant 0 : index
    %c0_54 = arith.constant 0 : index
    %c0_55 = arith.constant 0 : index
    %71 = vector.load %arg1[%c3, %c0_53, %c0_54, %c0_55] : memref<6x3x32x32xf32, #tpu.memory_space<vmem>>, vector<1x1x32x32xf32>
    %72 = vector.shape_cast %71 : vector<1x1x32x32xf32> to vector<32x32xf32>
    %cst_56 = arith.constant dense<0.000000e+00> : vector<16x32xf32>
    %73 = tpu.matmul %7, %34, %cst_56 {dimension_numbers = #tpu.dot_dimension_numbers<[1], [0], [0], [1], [0, 0, 1, 1], [], []>} : vector<16x16xf32>, vector<16x32xf32>, vector<16x32xf32> -> vector<16x32xf32>
    %cst_57 = arith.constant dense<0.000000e+00> : vector<16x32xf32>
    %74 = tpu.matmul %73, %72, %cst_57 {dimension_numbers = #tpu.dot_dimension_numbers<[1], [0], [0], [1], [0, 0, 1, 1], [], []>} : vector<16x32xf32>, vector<32x32xf32>, vector<16x32xf32> -> vector<16x32xf32>
    %75 = vector.broadcast %70 : vector<1x32xf32> to vector<16x32xf32>
    %76 = arith.addf %75, %74 : vector<16x32xf32>
    %c3_58 = arith.constant 3 : index
    %c1_59 = arith.constant 1 : index
    %c0_60 = arith.constant 0 : index
    %c0_61 = arith.constant 0 : index
    %77 = vector.load %arg1[%c3_58, %c1_59, %c0_60, %c0_61] : memref<6x3x32x32xf32, #tpu.memory_space<vmem>>, vector<1x1x32x32xf32>
    %78 = vector.shape_cast %77 : vector<1x1x32x32xf32> to vector<32x32xf32>
    %cst_62 = arith.constant dense<0.000000e+00> : vector<16x32xf32>
    %79 = tpu.matmul %34, %78, %cst_62 {dimension_numbers = #tpu.dot_dimension_numbers<[1], [0], [0], [1], [0, 0, 1, 1], [], []>} : vector<16x32xf32>, vector<32x32xf32>, vector<16x32xf32> -> vector<16x32xf32>
    %80 = arith.addf %76, %79 : vector<16x32xf32>
    %c3_63 = arith.constant 3 : index
    %c2_64 = arith.constant 2 : index
    %c0_65 = arith.constant 0 : index
    %c0_66 = arith.constant 0 : index
    %81 = vector.load %arg1[%c3_63, %c2_64, %c0_65, %c0_66] : memref<6x3x32x32xf32, #tpu.memory_space<vmem>>, vector<1x1x32x32xf32>
    %82 = vector.shape_cast %81 : vector<1x1x32x32xf32> to vector<32x32xf32>
    %cst_67 = arith.constant dense<0.000000e+00> : vector<16x32xf32>
    %83 = tpu.matmul %12, %34, %cst_67 {dimension_numbers = #tpu.dot_dimension_numbers<[1], [0], [0], [1], [0, 0, 1, 1], [], []>} : vector<16x16xf32>, vector<16x32xf32>, vector<16x32xf32> -> vector<16x32xf32>
    %cst_68 = arith.constant dense<0.000000e+00> : vector<16x32xf32>
    %84 = tpu.matmul %83, %82, %cst_68 {dimension_numbers = #tpu.dot_dimension_numbers<[1], [0], [0], [1], [0, 0, 1, 1], [], []>} : vector<16x32xf32>, vector<32x32xf32>, vector<16x32xf32> -> vector<16x32xf32>
    %85 = arith.addf %80, %84 : vector<16x32xf32>
    %cst_69 = arith.constant 0.000000e+00 : f32
    %86 = vector.broadcast %cst_69 : f32 to vector<16x32xf32>
    %87 = arith.maximumf %85, %86 : vector<16x32xf32>
    %88 = vector.extract_strided_slice %0 {offsets = [4, 0], sizes = [1, 32], strides = [1, 1]} : vector<12x128xf32> to vector<1x32xf32>
    %c4 = arith.constant 4 : index
    %c0_70 = arith.constant 0 : index
    %c0_71 = arith.constant 0 : index
    %c0_72 = arith.constant 0 : index
    %89 = vector.load %arg1[%c4, %c0_70, %c0_71, %c0_72] : memref<6x3x32x32xf32, #tpu.memory_space<vmem>>, vector<1x1x32x32xf32>
    %90 = vector.shape_cast %89 : vector<1x1x32x32xf32> to vector<32x32xf32>
    %cst_73 = arith.constant dense<0.000000e+00> : vector<16x32xf32>
    %91 = tpu.matmul %7, %87, %cst_73 {dimension_numbers = #tpu.dot_dimension_numbers<[1], [0], [0], [1], [0, 0, 1, 1], [], []>} : vector<16x16xf32>, vector<16x32xf32>, vector<16x32xf32> -> vector<16x32xf32>
    %cst_74 = arith.constant dense<0.000000e+00> : vector<16x32xf32>
    %92 = tpu.matmul %91, %90, %cst_74 {dimension_numbers = #tpu.dot_dimension_numbers<[1], [0], [0], [1], [0, 0, 1, 1], [], []>} : vector<16x32xf32>, vector<32x32xf32>, vector<16x32xf32> -> vector<16x32xf32>
    %93 = vector.broadcast %88 : vector<1x32xf32> to vector<16x32xf32>
    %94 = arith.addf %93, %92 : vector<16x32xf32>
    %c4_75 = arith.constant 4 : index
    %c1_76 = arith.constant 1 : index
    %c0_77 = arith.constant 0 : index
    %c0_78 = arith.constant 0 : index
    %95 = vector.load %arg1[%c4_75, %c1_76, %c0_77, %c0_78] : memref<6x3x32x32xf32, #tpu.memory_space<vmem>>, vector<1x1x32x32xf32>
    %96 = vector.shape_cast %95 : vector<1x1x32x32xf32> to vector<32x32xf32>
    %cst_79 = arith.constant dense<0.000000e+00> : vector<16x32xf32>
    %97 = tpu.matmul %87, %96, %cst_79 {dimension_numbers = #tpu.dot_dimension_numbers<[1], [0], [0], [1], [0, 0, 1, 1], [], []>} : vector<16x32xf32>, vector<32x32xf32>, vector<16x32xf32> -> vector<16x32xf32>
    %98 = arith.addf %94, %97 : vector<16x32xf32>
    %c4_80 = arith.constant 4 : index
    %c2_81 = arith.constant 2 : index
    %c0_82 = arith.constant 0 : index
    %c0_83 = arith.constant 0 : index
    %99 = vector.load %arg1[%c4_80, %c2_81, %c0_82, %c0_83] : memref<6x3x32x32xf32, #tpu.memory_space<vmem>>, vector<1x1x32x32xf32>
    %100 = vector.shape_cast %99 : vector<1x1x32x32xf32> to vector<32x32xf32>
    %cst_84 = arith.constant dense<0.000000e+00> : vector<16x32xf32>
    %101 = tpu.matmul %12, %87, %cst_84 {dimension_numbers = #tpu.dot_dimension_numbers<[1], [0], [0], [1], [0, 0, 1, 1], [], []>} : vector<16x16xf32>, vector<16x32xf32>, vector<16x32xf32> -> vector<16x32xf32>
    %cst_85 = arith.constant dense<0.000000e+00> : vector<16x32xf32>
    %102 = tpu.matmul %101, %100, %cst_85 {dimension_numbers = #tpu.dot_dimension_numbers<[1], [0], [0], [1], [0, 0, 1, 1], [], []>} : vector<16x32xf32>, vector<32x32xf32>, vector<16x32xf32> -> vector<16x32xf32>
    %103 = arith.addf %98, %102 : vector<16x32xf32>
    %104 = arith.addf %69, %103 : vector<16x32xf32>
    %105 = vector.extract_strided_slice %0 {offsets = [5, 0], sizes = [1, 32], strides = [1, 1]} : vector<12x128xf32> to vector<1x32xf32>
    %c5 = arith.constant 5 : index
    %c0_86 = arith.constant 0 : index
    %c0_87 = arith.constant 0 : index
    %c0_88 = arith.constant 0 : index
    %106 = vector.load %arg1[%c5, %c0_86, %c0_87, %c0_88] : memref<6x3x32x32xf32, #tpu.memory_space<vmem>>, vector<1x1x32x32xf32>
    %107 = vector.shape_cast %106 : vector<1x1x32x32xf32> to vector<32x32xf32>
    %cst_89 = arith.constant dense<0.000000e+00> : vector<16x32xf32>
    %108 = tpu.matmul %7, %104, %cst_89 {dimension_numbers = #tpu.dot_dimension_numbers<[1], [0], [0], [1], [0, 0, 1, 1], [], []>} : vector<16x16xf32>, vector<16x32xf32>, vector<16x32xf32> -> vector<16x32xf32>
    %cst_90 = arith.constant dense<0.000000e+00> : vector<16x32xf32>
    %109 = tpu.matmul %108, %107, %cst_90 {dimension_numbers = #tpu.dot_dimension_numbers<[1], [0], [0], [1], [0, 0, 1, 1], [], []>} : vector<16x32xf32>, vector<32x32xf32>, vector<16x32xf32> -> vector<16x32xf32>
    %110 = vector.broadcast %105 : vector<1x32xf32> to vector<16x32xf32>
    %111 = arith.addf %110, %109 : vector<16x32xf32>
    %c5_91 = arith.constant 5 : index
    %c1_92 = arith.constant 1 : index
    %c0_93 = arith.constant 0 : index
    %c0_94 = arith.constant 0 : index
    %112 = vector.load %arg1[%c5_91, %c1_92, %c0_93, %c0_94] : memref<6x3x32x32xf32, #tpu.memory_space<vmem>>, vector<1x1x32x32xf32>
    %113 = vector.shape_cast %112 : vector<1x1x32x32xf32> to vector<32x32xf32>
    %cst_95 = arith.constant dense<0.000000e+00> : vector<16x32xf32>
    %114 = tpu.matmul %104, %113, %cst_95 {dimension_numbers = #tpu.dot_dimension_numbers<[1], [0], [0], [1], [0, 0, 1, 1], [], []>} : vector<16x32xf32>, vector<32x32xf32>, vector<16x32xf32> -> vector<16x32xf32>
    %115 = arith.addf %111, %114 : vector<16x32xf32>
    %c5_96 = arith.constant 5 : index
    %c2_97 = arith.constant 2 : index
    %c0_98 = arith.constant 0 : index
    %c0_99 = arith.constant 0 : index
    %116 = vector.load %arg1[%c5_96, %c2_97, %c0_98, %c0_99] : memref<6x3x32x32xf32, #tpu.memory_space<vmem>>, vector<1x1x32x32xf32>
    %117 = vector.shape_cast %116 : vector<1x1x32x32xf32> to vector<32x32xf32>
    %cst_100 = arith.constant dense<0.000000e+00> : vector<16x32xf32>
    %118 = tpu.matmul %12, %104, %cst_100 {dimension_numbers = #tpu.dot_dimension_numbers<[1], [0], [0], [1], [0, 0, 1, 1], [], []>} : vector<16x16xf32>, vector<16x32xf32>, vector<16x32xf32> -> vector<16x32xf32>
    %cst_101 = arith.constant dense<0.000000e+00> : vector<16x32xf32>
    %119 = tpu.matmul %118, %117, %cst_101 {dimension_numbers = #tpu.dot_dimension_numbers<[1], [0], [0], [1], [0, 0, 1, 1], [], []>} : vector<16x32xf32>, vector<32x32xf32>, vector<16x32xf32> -> vector<16x32xf32>
    %120 = arith.addf %115, %119 : vector<16x32xf32>
    %c0_102 = arith.constant 0 : index
    %c0_103 = arith.constant 0 : index
    %c0_104 = arith.constant 0 : index
    %121 = vector.load %arg5[%c0_102, %c0_103, %c0_104] : memref<2x19x64xf32, #tpu.memory_space<vmem>>, vector<1x19x64xf32>
    %122 = vector.shape_cast %121 : vector<1x19x64xf32> to vector<19x64xf32>
    %123 = vector.extract_strided_slice %122 {offsets = [12, 0], sizes = [1, 32], strides = [1, 1]} : vector<19x64xf32> to vector<1x32xf32>
    %c0_105 = arith.constant 0 : index
    %c0_106 = arith.constant 0 : index
    %c0_107 = arith.constant 0 : index
    %c0_108 = arith.constant 0 : index
    %124 = vector.load %arg4[%c0_105, %c0_106, %c0_107, %c0_108] : memref<2x18x64x64xf32, #tpu.memory_space<vmem>>, vector<1x1x64x64xf32>
    %125 = vector.shape_cast %124 : vector<1x1x64x64xf32> to vector<64x64xf32>
    %126 = vector.extract_strided_slice %125 {offsets = [0, 0], sizes = [32, 8], strides = [1, 1]} : vector<64x64xf32> to vector<32x8xf32>
    %c0_109 = arith.constant 0 : index
    %c4_110 = arith.constant 4 : index
    %c0_111 = arith.constant 0 : index
    %c0_112 = arith.constant 0 : index
    %127 = vector.load %arg4[%c0_109, %c4_110, %c0_111, %c0_112] : memref<2x18x64x64xf32, #tpu.memory_space<vmem>>, vector<1x1x64x64xf32>
    %128 = vector.shape_cast %127 : vector<1x1x64x64xf32> to vector<64x64xf32>
    %129 = vector.extract_strided_slice %128 {offsets = [0, 0], sizes = [32, 8], strides = [1, 1]} : vector<64x64xf32> to vector<32x8xf32>
    %c0_113 = arith.constant 0 : index
    %c8 = arith.constant 8 : index
    %c0_114 = arith.constant 0 : index
    %c0_115 = arith.constant 0 : index
    %130 = vector.load %arg4[%c0_113, %c8, %c0_114, %c0_115] : memref<2x18x64x64xf32, #tpu.memory_space<vmem>>, vector<1x1x64x64xf32>
    %131 = vector.shape_cast %130 : vector<1x1x64x64xf32> to vector<64x64xf32>
    %132 = vector.extract_strided_slice %131 {offsets = [0, 0], sizes = [32, 8], strides = [1, 1]} : vector<64x64xf32> to vector<32x8xf32>
    %c0_116 = arith.constant 0 : index
    %c12 = arith.constant 12 : index
    %c0_117 = arith.constant 0 : index
    %c0_118 = arith.constant 0 : index
    %133 = vector.load %arg4[%c0_116, %c12, %c0_117, %c0_118] : memref<2x18x64x64xf32, #tpu.memory_space<vmem>>, vector<1x1x64x64xf32>
    %134 = vector.shape_cast %133 : vector<1x1x64x64xf32> to vector<64x64xf32>
    %135 = vector.extract_strided_slice %134 {offsets = [0, 0], sizes = [8, 32], strides = [1, 1]} : vector<64x64xf32> to vector<8x32xf32>
    %cst_119 = arith.constant dense<0.000000e+00> : vector<16x8xf32>
    %136 = tpu.matmul %120, %126, %cst_119 {dimension_numbers = #tpu.dot_dimension_numbers<[1], [0], [0], [1], [0, 0, 1, 1], [], []>} : vector<16x32xf32>, vector<32x8xf32>, vector<16x8xf32> -> vector<16x8xf32>
    %137 = vector.extract_strided_slice %122 {offsets = [0, 0], sizes = [1, 8], strides = [1, 1]} : vector<19x64xf32> to vector<1x8xf32>
    %138 = vector.broadcast %137 : vector<1x8xf32> to vector<16x8xf32>
    %139 = arith.addf %136, %138 : vector<16x8xf32>
    %cst_120 = arith.constant 0.353553385 : f32
    %140 = vector.broadcast %cst_120 : f32 to vector<16x8xf32>
    %141 = arith.mulf %139, %140 : vector<16x8xf32>
    %cst_121 = arith.constant dense<0.000000e+00> : vector<16x8xf32>
    %142 = tpu.matmul %120, %129, %cst_121 {dimension_numbers = #tpu.dot_dimension_numbers<[1], [0], [0], [1], [0, 0, 1, 1], [], []>} : vector<16x32xf32>, vector<32x8xf32>, vector<16x8xf32> -> vector<16x8xf32>
    %143 = vector.extract_strided_slice %122 {offsets = [4, 0], sizes = [1, 8], strides = [1, 1]} : vector<19x64xf32> to vector<1x8xf32>
    %144 = vector.broadcast %143 : vector<1x8xf32> to vector<16x8xf32>
    %145 = arith.addf %142, %144 : vector<16x8xf32>
    %cst_122 = arith.constant dense<0.000000e+00> : vector<16x8xf32>
    %146 = tpu.matmul %120, %132, %cst_122 {dimension_numbers = #tpu.dot_dimension_numbers<[1], [0], [0], [1], [0, 0, 1, 1], [], []>} : vector<16x32xf32>, vector<32x8xf32>, vector<16x8xf32> -> vector<16x8xf32>
    %147 = vector.extract_strided_slice %122 {offsets = [8, 0], sizes = [1, 8], strides = [1, 1]} : vector<19x64xf32> to vector<1x8xf32>
    %148 = vector.broadcast %147 : vector<1x8xf32> to vector<16x8xf32>
    %149 = arith.addf %146, %148 : vector<16x8xf32>
    %cst_123 = arith.constant dense<0.000000e+00> : vector<16x16xf32>
    %150 = tpu.matmul %141, %145, %cst_123 {dimension_numbers = #tpu.dot_dimension_numbers<[1], [1], [0], [0], [0, 0, 1, 0], [], []>} : vector<16x8xf32>, vector<16x8xf32>, vector<16x16xf32> -> vector<16x16xf32>
    %cst_124 = arith.constant -1.000000e+30 : f32
    %151 = vector.broadcast %cst_124 : f32 to vector<16x16xf32>
    %152 = arith.select %15, %150, %151 : vector<16x16xi1>, vector<16x16xf32>
    %cst_125 = arith.constant dense<0xFF800000> : vector<16xf32>
    %153 = vector.multi_reduction <maximumf>, %152, %cst_125 [1] : vector<16x16xf32> to vector<16xf32>
    %154 = vector.shape_cast %153 : vector<16xf32> to vector<16x1xf32>
    %155 = vector.broadcast %154 : vector<16x1xf32> to vector<16x16xf32>
    %156 = arith.subf %152, %155 : vector<16x16xf32>
    %157 = math.exp %156 : vector<16x16xf32>
    %cst_126 = arith.constant dense<0.000000e+00> : vector<16xf32>
    %158 = vector.multi_reduction <add>, %157, %cst_126 [1] : vector<16x16xf32> to vector<16xf32>
    %159 = vector.shape_cast %158 : vector<16xf32> to vector<16x1xf32>
    %160 = tpu.reciprocal %159 {approx = true} : vector<16x1xf32> -> vector<16x1xf32>
    %161 = vector.broadcast %160 : vector<16x1xf32> to vector<16x16xf32>
    %162 = arith.mulf %157, %161 : vector<16x16xf32>
    %cst_127 = arith.constant dense<0.000000e+00> : vector<16x8xf32>
    %163 = tpu.matmul %162, %149, %cst_127 {dimension_numbers = #tpu.dot_dimension_numbers<[1], [0], [0], [1], [0, 0, 1, 1], [], []>} : vector<16x16xf32>, vector<16x8xf32>, vector<16x8xf32> -> vector<16x8xf32>
    %cst_128 = arith.constant dense<0.000000e+00> : vector<16x32xf32>
    %164 = tpu.matmul %163, %135, %cst_128 {dimension_numbers = #tpu.dot_dimension_numbers<[1], [0], [0], [1], [0, 0, 1, 1], [], []>} : vector<16x8xf32>, vector<8x32xf32>, vector<16x32xf32> -> vector<16x32xf32>
    %165 = vector.broadcast %123 : vector<1x32xf32> to vector<16x32xf32>
    %166 = arith.addf %165, %164 : vector<16x32xf32>
    %c0_129 = arith.constant 0 : index
    %c1_130 = arith.constant 1 : index
    %c0_131 = arith.constant 0 : index
    %c0_132 = arith.constant 0 : index
    %167 = vector.load %arg4[%c0_129, %c1_130, %c0_131, %c0_132] : memref<2x18x64x64xf32, #tpu.memory_space<vmem>>, vector<1x1x64x64xf32>
    %168 = vector.shape_cast %167 : vector<1x1x64x64xf32> to vector<64x64xf32>
    %169 = vector.extract_strided_slice %168 {offsets = [0, 0], sizes = [32, 8], strides = [1, 1]} : vector<64x64xf32> to vector<32x8xf32>
    %c0_133 = arith.constant 0 : index
    %c5_134 = arith.constant 5 : index
    %c0_135 = arith.constant 0 : index
    %c0_136 = arith.constant 0 : index
    %170 = vector.load %arg4[%c0_133, %c5_134, %c0_135, %c0_136] : memref<2x18x64x64xf32, #tpu.memory_space<vmem>>, vector<1x1x64x64xf32>
    %171 = vector.shape_cast %170 : vector<1x1x64x64xf32> to vector<64x64xf32>
    %172 = vector.extract_strided_slice %171 {offsets = [0, 0], sizes = [32, 8], strides = [1, 1]} : vector<64x64xf32> to vector<32x8xf32>
    %c0_137 = arith.constant 0 : index
    %c9 = arith.constant 9 : index
    %c0_138 = arith.constant 0 : index
    %c0_139 = arith.constant 0 : index
    %173 = vector.load %arg4[%c0_137, %c9, %c0_138, %c0_139] : memref<2x18x64x64xf32, #tpu.memory_space<vmem>>, vector<1x1x64x64xf32>
    %174 = vector.shape_cast %173 : vector<1x1x64x64xf32> to vector<64x64xf32>
    %175 = vector.extract_strided_slice %174 {offsets = [0, 0], sizes = [32, 8], strides = [1, 1]} : vector<64x64xf32> to vector<32x8xf32>
    %c0_140 = arith.constant 0 : index
    %c13 = arith.constant 13 : index
    %c0_141 = arith.constant 0 : index
    %c0_142 = arith.constant 0 : index
    %176 = vector.load %arg4[%c0_140, %c13, %c0_141, %c0_142] : memref<2x18x64x64xf32, #tpu.memory_space<vmem>>, vector<1x1x64x64xf32>
    %177 = vector.shape_cast %176 : vector<1x1x64x64xf32> to vector<64x64xf32>
    %178 = vector.extract_strided_slice %177 {offsets = [0, 0], sizes = [8, 32], strides = [1, 1]} : vector<64x64xf32> to vector<8x32xf32>
    %cst_143 = arith.constant dense<0.000000e+00> : vector<16x8xf32>
    %179 = tpu.matmul %120, %169, %cst_143 {dimension_numbers = #tpu.dot_dimension_numbers<[1], [0], [0], [1], [0, 0, 1, 1], [], []>} : vector<16x32xf32>, vector<32x8xf32>, vector<16x8xf32> -> vector<16x8xf32>
    %180 = vector.extract_strided_slice %122 {offsets = [1, 0], sizes = [1, 8], strides = [1, 1]} : vector<19x64xf32> to vector<1x8xf32>
    %181 = vector.broadcast %180 : vector<1x8xf32> to vector<16x8xf32>
    %182 = arith.addf %179, %181 : vector<16x8xf32>
    %cst_144 = arith.constant 0.353553385 : f32
    %183 = vector.broadcast %cst_144 : f32 to vector<16x8xf32>
    %184 = arith.mulf %182, %183 : vector<16x8xf32>
    %cst_145 = arith.constant dense<0.000000e+00> : vector<16x8xf32>
    %185 = tpu.matmul %120, %172, %cst_145 {dimension_numbers = #tpu.dot_dimension_numbers<[1], [0], [0], [1], [0, 0, 1, 1], [], []>} : vector<16x32xf32>, vector<32x8xf32>, vector<16x8xf32> -> vector<16x8xf32>
    %186 = vector.extract_strided_slice %122 {offsets = [5, 0], sizes = [1, 8], strides = [1, 1]} : vector<19x64xf32> to vector<1x8xf32>
    %187 = vector.broadcast %186 : vector<1x8xf32> to vector<16x8xf32>
    %188 = arith.addf %185, %187 : vector<16x8xf32>
    %cst_146 = arith.constant dense<0.000000e+00> : vector<16x8xf32>
    %189 = tpu.matmul %120, %175, %cst_146 {dimension_numbers = #tpu.dot_dimension_numbers<[1], [0], [0], [1], [0, 0, 1, 1], [], []>} : vector<16x32xf32>, vector<32x8xf32>, vector<16x8xf32> -> vector<16x8xf32>
    %190 = vector.extract_strided_slice %122 {offsets = [9, 0], sizes = [1, 8], strides = [1, 1]} : vector<19x64xf32> to vector<1x8xf32>
    %191 = vector.broadcast %190 : vector<1x8xf32> to vector<16x8xf32>
    %192 = arith.addf %189, %191 : vector<16x8xf32>
    %cst_147 = arith.constant dense<0.000000e+00> : vector<16x16xf32>
    %193 = tpu.matmul %184, %188, %cst_147 {dimension_numbers = #tpu.dot_dimension_numbers<[1], [1], [0], [0], [0, 0, 1, 0], [], []>} : vector<16x8xf32>, vector<16x8xf32>, vector<16x16xf32> -> vector<16x16xf32>
    %cst_148 = arith.constant -1.000000e+30 : f32
    %194 = vector.broadcast %cst_148 : f32 to vector<16x16xf32>
    %195 = arith.select %15, %193, %194 : vector<16x16xi1>, vector<16x16xf32>
    %cst_149 = arith.constant dense<0xFF800000> : vector<16xf32>
    %196 = vector.multi_reduction <maximumf>, %195, %cst_149 [1] : vector<16x16xf32> to vector<16xf32>
    %197 = vector.shape_cast %196 : vector<16xf32> to vector<16x1xf32>
    %198 = vector.broadcast %197 : vector<16x1xf32> to vector<16x16xf32>
    %199 = arith.subf %195, %198 : vector<16x16xf32>
    %200 = math.exp %199 : vector<16x16xf32>
    %cst_150 = arith.constant dense<0.000000e+00> : vector<16xf32>
    %201 = vector.multi_reduction <add>, %200, %cst_150 [1] : vector<16x16xf32> to vector<16xf32>
    %202 = vector.shape_cast %201 : vector<16xf32> to vector<16x1xf32>
    %203 = tpu.reciprocal %202 {approx = true} : vector<16x1xf32> -> vector<16x1xf32>
    %204 = vector.broadcast %203 : vector<16x1xf32> to vector<16x16xf32>
    %205 = arith.mulf %200, %204 : vector<16x16xf32>
    %cst_151 = arith.constant dense<0.000000e+00> : vector<16x8xf32>
    %206 = tpu.matmul %205, %192, %cst_151 {dimension_numbers = #tpu.dot_dimension_numbers<[1], [0], [0], [1], [0, 0, 1, 1], [], []>} : vector<16x16xf32>, vector<16x8xf32>, vector<16x8xf32> -> vector<16x8xf32>
    %cst_152 = arith.constant dense<0.000000e+00> : vector<16x32xf32>
    %207 = tpu.matmul %206, %178, %cst_152 {dimension_numbers = #tpu.dot_dimension_numbers<[1], [0], [0], [1], [0, 0, 1, 1], [], []>} : vector<16x8xf32>, vector<8x32xf32>, vector<16x32xf32> -> vector<16x32xf32>
    %208 = arith.addf %166, %207 : vector<16x32xf32>
    %c0_153 = arith.constant 0 : index
    %c2_154 = arith.constant 2 : index
    %c0_155 = arith.constant 0 : index
    %c0_156 = arith.constant 0 : index
    %209 = vector.load %arg4[%c0_153, %c2_154, %c0_155, %c0_156] : memref<2x18x64x64xf32, #tpu.memory_space<vmem>>, vector<1x1x64x64xf32>
    %210 = vector.shape_cast %209 : vector<1x1x64x64xf32> to vector<64x64xf32>
    %211 = vector.extract_strided_slice %210 {offsets = [0, 0], sizes = [32, 8], strides = [1, 1]} : vector<64x64xf32> to vector<32x8xf32>
    %c0_157 = arith.constant 0 : index
    %c6 = arith.constant 6 : index
    %c0_158 = arith.constant 0 : index
    %c0_159 = arith.constant 0 : index
    %212 = vector.load %arg4[%c0_157, %c6, %c0_158, %c0_159] : memref<2x18x64x64xf32, #tpu.memory_space<vmem>>, vector<1x1x64x64xf32>
    %213 = vector.shape_cast %212 : vector<1x1x64x64xf32> to vector<64x64xf32>
    %214 = vector.extract_strided_slice %213 {offsets = [0, 0], sizes = [32, 8], strides = [1, 1]} : vector<64x64xf32> to vector<32x8xf32>
    %c0_160 = arith.constant 0 : index
    %c10 = arith.constant 10 : index
    %c0_161 = arith.constant 0 : index
    %c0_162 = arith.constant 0 : index
    %215 = vector.load %arg4[%c0_160, %c10, %c0_161, %c0_162] : memref<2x18x64x64xf32, #tpu.memory_space<vmem>>, vector<1x1x64x64xf32>
    %216 = vector.shape_cast %215 : vector<1x1x64x64xf32> to vector<64x64xf32>
    %217 = vector.extract_strided_slice %216 {offsets = [0, 0], sizes = [32, 8], strides = [1, 1]} : vector<64x64xf32> to vector<32x8xf32>
    %c0_163 = arith.constant 0 : index
    %c14 = arith.constant 14 : index
    %c0_164 = arith.constant 0 : index
    %c0_165 = arith.constant 0 : index
    %218 = vector.load %arg4[%c0_163, %c14, %c0_164, %c0_165] : memref<2x18x64x64xf32, #tpu.memory_space<vmem>>, vector<1x1x64x64xf32>
    %219 = vector.shape_cast %218 : vector<1x1x64x64xf32> to vector<64x64xf32>
    %220 = vector.extract_strided_slice %219 {offsets = [0, 0], sizes = [8, 32], strides = [1, 1]} : vector<64x64xf32> to vector<8x32xf32>
    %cst_166 = arith.constant dense<0.000000e+00> : vector<16x8xf32>
    %221 = tpu.matmul %120, %211, %cst_166 {dimension_numbers = #tpu.dot_dimension_numbers<[1], [0], [0], [1], [0, 0, 1, 1], [], []>} : vector<16x32xf32>, vector<32x8xf32>, vector<16x8xf32> -> vector<16x8xf32>
    %222 = vector.extract_strided_slice %122 {offsets = [2, 0], sizes = [1, 8], strides = [1, 1]} : vector<19x64xf32> to vector<1x8xf32>
    %223 = vector.broadcast %222 : vector<1x8xf32> to vector<16x8xf32>
    %224 = arith.addf %221, %223 : vector<16x8xf32>
    %cst_167 = arith.constant 0.353553385 : f32
    %225 = vector.broadcast %cst_167 : f32 to vector<16x8xf32>
    %226 = arith.mulf %224, %225 : vector<16x8xf32>
    %cst_168 = arith.constant dense<0.000000e+00> : vector<16x8xf32>
    %227 = tpu.matmul %120, %214, %cst_168 {dimension_numbers = #tpu.dot_dimension_numbers<[1], [0], [0], [1], [0, 0, 1, 1], [], []>} : vector<16x32xf32>, vector<32x8xf32>, vector<16x8xf32> -> vector<16x8xf32>
    %228 = vector.extract_strided_slice %122 {offsets = [6, 0], sizes = [1, 8], strides = [1, 1]} : vector<19x64xf32> to vector<1x8xf32>
    %229 = vector.broadcast %228 : vector<1x8xf32> to vector<16x8xf32>
    %230 = arith.addf %227, %229 : vector<16x8xf32>
    %cst_169 = arith.constant dense<0.000000e+00> : vector<16x8xf32>
    %231 = tpu.matmul %120, %217, %cst_169 {dimension_numbers = #tpu.dot_dimension_numbers<[1], [0], [0], [1], [0, 0, 1, 1], [], []>} : vector<16x32xf32>, vector<32x8xf32>, vector<16x8xf32> -> vector<16x8xf32>
    %232 = vector.extract_strided_slice %122 {offsets = [10, 0], sizes = [1, 8], strides = [1, 1]} : vector<19x64xf32> to vector<1x8xf32>
    %233 = vector.broadcast %232 : vector<1x8xf32> to vector<16x8xf32>
    %234 = arith.addf %231, %233 : vector<16x8xf32>
    %cst_170 = arith.constant dense<0.000000e+00> : vector<16x16xf32>
    %235 = tpu.matmul %226, %230, %cst_170 {dimension_numbers = #tpu.dot_dimension_numbers<[1], [1], [0], [0], [0, 0, 1, 0], [], []>} : vector<16x8xf32>, vector<16x8xf32>, vector<16x16xf32> -> vector<16x16xf32>
    %cst_171 = arith.constant -1.000000e+30 : f32
    %236 = vector.broadcast %cst_171 : f32 to vector<16x16xf32>
    %237 = arith.select %15, %235, %236 : vector<16x16xi1>, vector<16x16xf32>
    %cst_172 = arith.constant dense<0xFF800000> : vector<16xf32>
    %238 = vector.multi_reduction <maximumf>, %237, %cst_172 [1] : vector<16x16xf32> to vector<16xf32>
    %239 = vector.shape_cast %238 : vector<16xf32> to vector<16x1xf32>
    %240 = vector.broadcast %239 : vector<16x1xf32> to vector<16x16xf32>
    %241 = arith.subf %237, %240 : vector<16x16xf32>
    %242 = math.exp %241 : vector<16x16xf32>
    %cst_173 = arith.constant dense<0.000000e+00> : vector<16xf32>
    %243 = vector.multi_reduction <add>, %242, %cst_173 [1] : vector<16x16xf32> to vector<16xf32>
    %244 = vector.shape_cast %243 : vector<16xf32> to vector<16x1xf32>
    %245 = tpu.reciprocal %244 {approx = true} : vector<16x1xf32> -> vector<16x1xf32>
    %246 = vector.broadcast %245 : vector<16x1xf32> to vector<16x16xf32>
    %247 = arith.mulf %242, %246 : vector<16x16xf32>
    %cst_174 = arith.constant dense<0.000000e+00> : vector<16x8xf32>
    %248 = tpu.matmul %247, %234, %cst_174 {dimension_numbers = #tpu.dot_dimension_numbers<[1], [0], [0], [1], [0, 0, 1, 1], [], []>} : vector<16x16xf32>, vector<16x8xf32>, vector<16x8xf32> -> vector<16x8xf32>
    %cst_175 = arith.constant dense<0.000000e+00> : vector<16x32xf32>
    %249 = tpu.matmul %248, %220, %cst_175 {dimension_numbers = #tpu.dot_dimension_numbers<[1], [0], [0], [1], [0, 0, 1, 1], [], []>} : vector<16x8xf32>, vector<8x32xf32>, vector<16x32xf32> -> vector<16x32xf32>
    %250 = arith.addf %208, %249 : vector<16x32xf32>
    %c0_176 = arith.constant 0 : index
    %c3_177 = arith.constant 3 : index
    %c0_178 = arith.constant 0 : index
    %c0_179 = arith.constant 0 : index
    %251 = vector.load %arg4[%c0_176, %c3_177, %c0_178, %c0_179] : memref<2x18x64x64xf32, #tpu.memory_space<vmem>>, vector<1x1x64x64xf32>
    %252 = vector.shape_cast %251 : vector<1x1x64x64xf32> to vector<64x64xf32>
    %253 = vector.extract_strided_slice %252 {offsets = [0, 0], sizes = [32, 8], strides = [1, 1]} : vector<64x64xf32> to vector<32x8xf32>
    %c0_180 = arith.constant 0 : index
    %c7 = arith.constant 7 : index
    %c0_181 = arith.constant 0 : index
    %c0_182 = arith.constant 0 : index
    %254 = vector.load %arg4[%c0_180, %c7, %c0_181, %c0_182] : memref<2x18x64x64xf32, #tpu.memory_space<vmem>>, vector<1x1x64x64xf32>
    %255 = vector.shape_cast %254 : vector<1x1x64x64xf32> to vector<64x64xf32>
    %256 = vector.extract_strided_slice %255 {offsets = [0, 0], sizes = [32, 8], strides = [1, 1]} : vector<64x64xf32> to vector<32x8xf32>
    %c0_183 = arith.constant 0 : index
    %c11 = arith.constant 11 : index
    %c0_184 = arith.constant 0 : index
    %c0_185 = arith.constant 0 : index
    %257 = vector.load %arg4[%c0_183, %c11, %c0_184, %c0_185] : memref<2x18x64x64xf32, #tpu.memory_space<vmem>>, vector<1x1x64x64xf32>
    %258 = vector.shape_cast %257 : vector<1x1x64x64xf32> to vector<64x64xf32>
    %259 = vector.extract_strided_slice %258 {offsets = [0, 0], sizes = [32, 8], strides = [1, 1]} : vector<64x64xf32> to vector<32x8xf32>
    %c0_186 = arith.constant 0 : index
    %c15 = arith.constant 15 : index
    %c0_187 = arith.constant 0 : index
    %c0_188 = arith.constant 0 : index
    %260 = vector.load %arg4[%c0_186, %c15, %c0_187, %c0_188] : memref<2x18x64x64xf32, #tpu.memory_space<vmem>>, vector<1x1x64x64xf32>
    %261 = vector.shape_cast %260 : vector<1x1x64x64xf32> to vector<64x64xf32>
    %262 = vector.extract_strided_slice %261 {offsets = [0, 0], sizes = [8, 32], strides = [1, 1]} : vector<64x64xf32> to vector<8x32xf32>
    %cst_189 = arith.constant dense<0.000000e+00> : vector<16x8xf32>
    %263 = tpu.matmul %120, %253, %cst_189 {dimension_numbers = #tpu.dot_dimension_numbers<[1], [0], [0], [1], [0, 0, 1, 1], [], []>} : vector<16x32xf32>, vector<32x8xf32>, vector<16x8xf32> -> vector<16x8xf32>
    %264 = vector.extract_strided_slice %122 {offsets = [3, 0], sizes = [1, 8], strides = [1, 1]} : vector<19x64xf32> to vector<1x8xf32>
    %265 = vector.broadcast %264 : vector<1x8xf32> to vector<16x8xf32>
    %266 = arith.addf %263, %265 : vector<16x8xf32>
    %cst_190 = arith.constant 0.353553385 : f32
    %267 = vector.broadcast %cst_190 : f32 to vector<16x8xf32>
    %268 = arith.mulf %266, %267 : vector<16x8xf32>
    %cst_191 = arith.constant dense<0.000000e+00> : vector<16x8xf32>
    %269 = tpu.matmul %120, %256, %cst_191 {dimension_numbers = #tpu.dot_dimension_numbers<[1], [0], [0], [1], [0, 0, 1, 1], [], []>} : vector<16x32xf32>, vector<32x8xf32>, vector<16x8xf32> -> vector<16x8xf32>
    %270 = vector.extract_strided_slice %122 {offsets = [7, 0], sizes = [1, 8], strides = [1, 1]} : vector<19x64xf32> to vector<1x8xf32>
    %271 = vector.broadcast %270 : vector<1x8xf32> to vector<16x8xf32>
    %272 = arith.addf %269, %271 : vector<16x8xf32>
    %cst_192 = arith.constant dense<0.000000e+00> : vector<16x8xf32>
    %273 = tpu.matmul %120, %259, %cst_192 {dimension_numbers = #tpu.dot_dimension_numbers<[1], [0], [0], [1], [0, 0, 1, 1], [], []>} : vector<16x32xf32>, vector<32x8xf32>, vector<16x8xf32> -> vector<16x8xf32>
    %274 = vector.extract_strided_slice %122 {offsets = [11, 0], sizes = [1, 8], strides = [1, 1]} : vector<19x64xf32> to vector<1x8xf32>
    %275 = vector.broadcast %274 : vector<1x8xf32> to vector<16x8xf32>
    %276 = arith.addf %273, %275 : vector<16x8xf32>
    %cst_193 = arith.constant dense<0.000000e+00> : vector<16x16xf32>
    %277 = tpu.matmul %268, %272, %cst_193 {dimension_numbers = #tpu.dot_dimension_numbers<[1], [1], [0], [0], [0, 0, 1, 0], [], []>} : vector<16x8xf32>, vector<16x8xf32>, vector<16x16xf32> -> vector<16x16xf32>
    %cst_194 = arith.constant -1.000000e+30 : f32
    %278 = vector.broadcast %cst_194 : f32 to vector<16x16xf32>
    %279 = arith.select %15, %277, %278 : vector<16x16xi1>, vector<16x16xf32>
    %cst_195 = arith.constant dense<0xFF800000> : vector<16xf32>
    %280 = vector.multi_reduction <maximumf>, %279, %cst_195 [1] : vector<16x16xf32> to vector<16xf32>
    %281 = vector.shape_cast %280 : vector<16xf32> to vector<16x1xf32>
    %282 = vector.broadcast %281 : vector<16x1xf32> to vector<16x16xf32>
    %283 = arith.subf %279, %282 : vector<16x16xf32>
    %284 = math.exp %283 : vector<16x16xf32>
    %cst_196 = arith.constant dense<0.000000e+00> : vector<16xf32>
    %285 = vector.multi_reduction <add>, %284, %cst_196 [1] : vector<16x16xf32> to vector<16xf32>
    %286 = vector.shape_cast %285 : vector<16xf32> to vector<16x1xf32>
    %287 = tpu.reciprocal %286 {approx = true} : vector<16x1xf32> -> vector<16x1xf32>
    %288 = vector.broadcast %287 : vector<16x1xf32> to vector<16x16xf32>
    %289 = arith.mulf %284, %288 : vector<16x16xf32>
    %cst_197 = arith.constant dense<0.000000e+00> : vector<16x8xf32>
    %290 = tpu.matmul %289, %276, %cst_197 {dimension_numbers = #tpu.dot_dimension_numbers<[1], [0], [0], [1], [0, 0, 1, 1], [], []>} : vector<16x16xf32>, vector<16x8xf32>, vector<16x8xf32> -> vector<16x8xf32>
    %cst_198 = arith.constant dense<0.000000e+00> : vector<16x32xf32>
    %291 = tpu.matmul %290, %262, %cst_198 {dimension_numbers = #tpu.dot_dimension_numbers<[1], [0], [0], [1], [0, 0, 1, 1], [], []>} : vector<16x8xf32>, vector<8x32xf32>, vector<16x32xf32> -> vector<16x32xf32>
    %292 = arith.addf %250, %291 : vector<16x32xf32>
    %293 = arith.addf %120, %292 : vector<16x32xf32>
    %294 = vector.extract_strided_slice %122 {offsets = [15, 0], sizes = [1, 32], strides = [1, 1]} : vector<19x64xf32> to vector<1x32xf32>
    %295 = vector.extract_strided_slice %122 {offsets = [16, 0], sizes = [1, 32], strides = [1, 1]} : vector<19x64xf32> to vector<1x32xf32>
    %cst_199 = arith.constant dense<0.000000e+00> : vector<16xf32>
    %296 = vector.multi_reduction <add>, %293, %cst_199 [1] : vector<16x32xf32> to vector<16xf32>
    %297 = vector.shape_cast %296 : vector<16xf32> to vector<16x1xf32>
    %cst_200 = arith.constant 3.200000e+01 : f32
    %298 = vector.broadcast %cst_200 : f32 to vector<16x1xf32>
    %299 = arith.divf %297, %298 : vector<16x1xf32>
    %300 = vector.broadcast %299 : vector<16x1xf32> to vector<16x32xf32>
    %301 = arith.subf %293, %300 : vector<16x32xf32>
    %302 = arith.mulf %301, %301 : vector<16x32xf32>
    %cst_201 = arith.constant dense<0.000000e+00> : vector<16xf32>
    %303 = vector.multi_reduction <add>, %302, %cst_201 [1] : vector<16x32xf32> to vector<16xf32>
    %304 = vector.shape_cast %303 : vector<16xf32> to vector<16x1xf32>
    %cst_202 = arith.constant 3.200000e+01 : f32
    %305 = vector.broadcast %cst_202 : f32 to vector<16x1xf32>
    %306 = arith.divf %304, %305 : vector<16x1xf32>
    %cst_203 = arith.constant 9.99999974E-6 : f32
    %307 = vector.broadcast %cst_203 : f32 to vector<16x1xf32>
    %308 = arith.addf %306, %307 : vector<16x1xf32>
    %309 = math.rsqrt %308 : vector<16x1xf32>
    %310 = vector.broadcast %309 : vector<16x1xf32> to vector<16x32xf32>
    %311 = arith.mulf %301, %310 : vector<16x32xf32>
    %312 = vector.broadcast %294 : vector<1x32xf32> to vector<16x32xf32>
    %313 = arith.mulf %311, %312 : vector<16x32xf32>
    %314 = vector.broadcast %295 : vector<1x32xf32> to vector<16x32xf32>
    %315 = arith.addf %313, %314 : vector<16x32xf32>
    %c0_204 = arith.constant 0 : index
    %c16 = arith.constant 16 : index
    %c0_205 = arith.constant 0 : index
    %c0_206 = arith.constant 0 : index
    %316 = vector.load %arg4[%c0_204, %c16, %c0_205, %c0_206] : memref<2x18x64x64xf32, #tpu.memory_space<vmem>>, vector<1x1x64x64xf32>
    %317 = vector.shape_cast %316 : vector<1x1x64x64xf32> to vector<64x64xf32>
    %318 = vector.extract_strided_slice %317 {offsets = [0, 0], sizes = [32, 64], strides = [1, 1]} : vector<64x64xf32> to vector<32x64xf32>
    %c0_207 = arith.constant 0 : index
    %c17 = arith.constant 17 : index
    %c0_208 = arith.constant 0 : index
    %c0_209 = arith.constant 0 : index
    %319 = vector.load %arg4[%c0_207, %c17, %c0_208, %c0_209] : memref<2x18x64x64xf32, #tpu.memory_space<vmem>>, vector<1x1x64x64xf32>
    %320 = vector.shape_cast %319 : vector<1x1x64x64xf32> to vector<64x64xf32>
    %321 = vector.extract_strided_slice %320 {offsets = [0, 0], sizes = [64, 32], strides = [1, 1]} : vector<64x64xf32> to vector<64x32xf32>
    %cst_210 = arith.constant dense<0.000000e+00> : vector<16x64xf32>
    %322 = tpu.matmul %315, %318, %cst_210 {dimension_numbers = #tpu.dot_dimension_numbers<[1], [0], [0], [1], [0, 0, 1, 1], [], []>} : vector<16x32xf32>, vector<32x64xf32>, vector<16x64xf32> -> vector<16x64xf32>
    %323 = vector.extract_strided_slice %122 {offsets = [13, 0], sizes = [1, 64], strides = [1, 1]} : vector<19x64xf32> to vector<1x64xf32>
    %324 = vector.broadcast %323 : vector<1x64xf32> to vector<16x64xf32>
    %325 = arith.addf %322, %324 : vector<16x64xf32>
    %cst_211 = arith.constant 0.000000e+00 : f32
    %326 = vector.broadcast %cst_211 : f32 to vector<16x64xf32>
    %327 = arith.maximumf %325, %326 : vector<16x64xf32>
    %cst_212 = arith.constant dense<0.000000e+00> : vector<16x32xf32>
    %328 = tpu.matmul %327, %321, %cst_212 {dimension_numbers = #tpu.dot_dimension_numbers<[1], [0], [0], [1], [0, 0, 1, 1], [], []>} : vector<16x64xf32>, vector<64x32xf32>, vector<16x32xf32> -> vector<16x32xf32>
    %329 = vector.extract_strided_slice %122 {offsets = [14, 0], sizes = [1, 32], strides = [1, 1]} : vector<19x64xf32> to vector<1x32xf32>
    %330 = vector.broadcast %329 : vector<1x32xf32> to vector<16x32xf32>
    %331 = arith.addf %328, %330 : vector<16x32xf32>
    %332 = arith.addf %315, %331 : vector<16x32xf32>
    %333 = vector.extract_strided_slice %122 {offsets = [17, 0], sizes = [1, 32], strides = [1, 1]} : vector<19x64xf32> to vector<1x32xf32>
    %334 = vector.extract_strided_slice %122 {offsets = [18, 0], sizes = [1, 32], strides = [1, 1]} : vector<19x64xf32> to vector<1x32xf32>
    %cst_213 = arith.constant dense<0.000000e+00> : vector<16xf32>
    %335 = vector.multi_reduction <add>, %332, %cst_213 [1] : vector<16x32xf32> to vector<16xf32>
    %336 = vector.shape_cast %335 : vector<16xf32> to vector<16x1xf32>
    %cst_214 = arith.constant 3.200000e+01 : f32
    %337 = vector.broadcast %cst_214 : f32 to vector<16x1xf32>
    %338 = arith.divf %336, %337 : vector<16x1xf32>
    %339 = vector.broadcast %338 : vector<16x1xf32> to vector<16x32xf32>
    %340 = arith.subf %332, %339 : vector<16x32xf32>
    %341 = arith.mulf %340, %340 : vector<16x32xf32>
    %cst_215 = arith.constant dense<0.000000e+00> : vector<16xf32>
    %342 = vector.multi_reduction <add>, %341, %cst_215 [1] : vector<16x32xf32> to vector<16xf32>
    %343 = vector.shape_cast %342 : vector<16xf32> to vector<16x1xf32>
    %cst_216 = arith.constant 3.200000e+01 : f32
    %344 = vector.broadcast %cst_216 : f32 to vector<16x1xf32>
    %345 = arith.divf %343, %344 : vector<16x1xf32>
    %cst_217 = arith.constant 9.99999974E-6 : f32
    %346 = vector.broadcast %cst_217 : f32 to vector<16x1xf32>
    %347 = arith.addf %345, %346 : vector<16x1xf32>
    %348 = math.rsqrt %347 : vector<16x1xf32>
    %349 = vector.broadcast %348 : vector<16x1xf32> to vector<16x32xf32>
    %350 = arith.mulf %340, %349 : vector<16x32xf32>
    %351 = vector.broadcast %333 : vector<1x32xf32> to vector<16x32xf32>
    %352 = arith.mulf %350, %351 : vector<16x32xf32>
    %353 = vector.broadcast %334 : vector<1x32xf32> to vector<16x32xf32>
    %354 = arith.addf %352, %353 : vector<16x32xf32>
    %c1_218 = arith.constant 1 : index
    %c0_219 = arith.constant 0 : index
    %c0_220 = arith.constant 0 : index
    %355 = vector.load %arg5[%c1_218, %c0_219, %c0_220] : memref<2x19x64xf32, #tpu.memory_space<vmem>>, vector<1x19x64xf32>
    %356 = vector.shape_cast %355 : vector<1x19x64xf32> to vector<19x64xf32>
    %357 = vector.extract_strided_slice %356 {offsets = [12, 0], sizes = [1, 32], strides = [1, 1]} : vector<19x64xf32> to vector<1x32xf32>
    %c1_221 = arith.constant 1 : index
    %c0_222 = arith.constant 0 : index
    %c0_223 = arith.constant 0 : index
    %c0_224 = arith.constant 0 : index
    %358 = vector.load %arg4[%c1_221, %c0_222, %c0_223, %c0_224] : memref<2x18x64x64xf32, #tpu.memory_space<vmem>>, vector<1x1x64x64xf32>
    %359 = vector.shape_cast %358 : vector<1x1x64x64xf32> to vector<64x64xf32>
    %360 = vector.extract_strided_slice %359 {offsets = [0, 0], sizes = [32, 8], strides = [1, 1]} : vector<64x64xf32> to vector<32x8xf32>
    %c1_225 = arith.constant 1 : index
    %c4_226 = arith.constant 4 : index
    %c0_227 = arith.constant 0 : index
    %c0_228 = arith.constant 0 : index
    %361 = vector.load %arg4[%c1_225, %c4_226, %c0_227, %c0_228] : memref<2x18x64x64xf32, #tpu.memory_space<vmem>>, vector<1x1x64x64xf32>
    %362 = vector.shape_cast %361 : vector<1x1x64x64xf32> to vector<64x64xf32>
    %363 = vector.extract_strided_slice %362 {offsets = [0, 0], sizes = [32, 8], strides = [1, 1]} : vector<64x64xf32> to vector<32x8xf32>
    %c1_229 = arith.constant 1 : index
    %c8_230 = arith.constant 8 : index
    %c0_231 = arith.constant 0 : index
    %c0_232 = arith.constant 0 : index
    %364 = vector.load %arg4[%c1_229, %c8_230, %c0_231, %c0_232] : memref<2x18x64x64xf32, #tpu.memory_space<vmem>>, vector<1x1x64x64xf32>
    %365 = vector.shape_cast %364 : vector<1x1x64x64xf32> to vector<64x64xf32>
    %366 = vector.extract_strided_slice %365 {offsets = [0, 0], sizes = [32, 8], strides = [1, 1]} : vector<64x64xf32> to vector<32x8xf32>
    %c1_233 = arith.constant 1 : index
    %c12_234 = arith.constant 12 : index
    %c0_235 = arith.constant 0 : index
    %c0_236 = arith.constant 0 : index
    %367 = vector.load %arg4[%c1_233, %c12_234, %c0_235, %c0_236] : memref<2x18x64x64xf32, #tpu.memory_space<vmem>>, vector<1x1x64x64xf32>
    %368 = vector.shape_cast %367 : vector<1x1x64x64xf32> to vector<64x64xf32>
    %369 = vector.extract_strided_slice %368 {offsets = [0, 0], sizes = [8, 32], strides = [1, 1]} : vector<64x64xf32> to vector<8x32xf32>
    %cst_237 = arith.constant dense<0.000000e+00> : vector<16x8xf32>
    %370 = tpu.matmul %354, %360, %cst_237 {dimension_numbers = #tpu.dot_dimension_numbers<[1], [0], [0], [1], [0, 0, 1, 1], [], []>} : vector<16x32xf32>, vector<32x8xf32>, vector<16x8xf32> -> vector<16x8xf32>
    %371 = vector.extract_strided_slice %356 {offsets = [0, 0], sizes = [1, 8], strides = [1, 1]} : vector<19x64xf32> to vector<1x8xf32>
    %372 = vector.broadcast %371 : vector<1x8xf32> to vector<16x8xf32>
    %373 = arith.addf %370, %372 : vector<16x8xf32>
    %cst_238 = arith.constant 0.353553385 : f32
    %374 = vector.broadcast %cst_238 : f32 to vector<16x8xf32>
    %375 = arith.mulf %373, %374 : vector<16x8xf32>
    %cst_239 = arith.constant dense<0.000000e+00> : vector<16x8xf32>
    %376 = tpu.matmul %354, %363, %cst_239 {dimension_numbers = #tpu.dot_dimension_numbers<[1], [0], [0], [1], [0, 0, 1, 1], [], []>} : vector<16x32xf32>, vector<32x8xf32>, vector<16x8xf32> -> vector<16x8xf32>
    %377 = vector.extract_strided_slice %356 {offsets = [4, 0], sizes = [1, 8], strides = [1, 1]} : vector<19x64xf32> to vector<1x8xf32>
    %378 = vector.broadcast %377 : vector<1x8xf32> to vector<16x8xf32>
    %379 = arith.addf %376, %378 : vector<16x8xf32>
    %cst_240 = arith.constant dense<0.000000e+00> : vector<16x8xf32>
    %380 = tpu.matmul %354, %366, %cst_240 {dimension_numbers = #tpu.dot_dimension_numbers<[1], [0], [0], [1], [0, 0, 1, 1], [], []>} : vector<16x32xf32>, vector<32x8xf32>, vector<16x8xf32> -> vector<16x8xf32>
    %381 = vector.extract_strided_slice %356 {offsets = [8, 0], sizes = [1, 8], strides = [1, 1]} : vector<19x64xf32> to vector<1x8xf32>
    %382 = vector.broadcast %381 : vector<1x8xf32> to vector<16x8xf32>
    %383 = arith.addf %380, %382 : vector<16x8xf32>
    %cst_241 = arith.constant dense<0.000000e+00> : vector<16x16xf32>
    %384 = tpu.matmul %375, %379, %cst_241 {dimension_numbers = #tpu.dot_dimension_numbers<[1], [1], [0], [0], [0, 0, 1, 0], [], []>} : vector<16x8xf32>, vector<16x8xf32>, vector<16x16xf32> -> vector<16x16xf32>
    %cst_242 = arith.constant -1.000000e+30 : f32
    %385 = vector.broadcast %cst_242 : f32 to vector<16x16xf32>
    %386 = arith.select %15, %384, %385 : vector<16x16xi1>, vector<16x16xf32>
    %cst_243 = arith.constant dense<0xFF800000> : vector<16xf32>
    %387 = vector.multi_reduction <maximumf>, %386, %cst_243 [1] : vector<16x16xf32> to vector<16xf32>
    %388 = vector.shape_cast %387 : vector<16xf32> to vector<16x1xf32>
    %389 = vector.broadcast %388 : vector<16x1xf32> to vector<16x16xf32>
    %390 = arith.subf %386, %389 : vector<16x16xf32>
    %391 = math.exp %390 : vector<16x16xf32>
    %cst_244 = arith.constant dense<0.000000e+00> : vector<16xf32>
    %392 = vector.multi_reduction <add>, %391, %cst_244 [1] : vector<16x16xf32> to vector<16xf32>
    %393 = vector.shape_cast %392 : vector<16xf32> to vector<16x1xf32>
    %394 = tpu.reciprocal %393 {approx = true} : vector<16x1xf32> -> vector<16x1xf32>
    %395 = vector.broadcast %394 : vector<16x1xf32> to vector<16x16xf32>
    %396 = arith.mulf %391, %395 : vector<16x16xf32>
    %cst_245 = arith.constant dense<0.000000e+00> : vector<16x8xf32>
    %397 = tpu.matmul %396, %383, %cst_245 {dimension_numbers = #tpu.dot_dimension_numbers<[1], [0], [0], [1], [0, 0, 1, 1], [], []>} : vector<16x16xf32>, vector<16x8xf32>, vector<16x8xf32> -> vector<16x8xf32>
    %cst_246 = arith.constant dense<0.000000e+00> : vector<16x32xf32>
    %398 = tpu.matmul %397, %369, %cst_246 {dimension_numbers = #tpu.dot_dimension_numbers<[1], [0], [0], [1], [0, 0, 1, 1], [], []>} : vector<16x8xf32>, vector<8x32xf32>, vector<16x32xf32> -> vector<16x32xf32>
    %399 = vector.broadcast %357 : vector<1x32xf32> to vector<16x32xf32>
    %400 = arith.addf %399, %398 : vector<16x32xf32>
    %c1_247 = arith.constant 1 : index
    %c1_248 = arith.constant 1 : index
    %c0_249 = arith.constant 0 : index
    %c0_250 = arith.constant 0 : index
    %401 = vector.load %arg4[%c1_247, %c1_248, %c0_249, %c0_250] : memref<2x18x64x64xf32, #tpu.memory_space<vmem>>, vector<1x1x64x64xf32>
    %402 = vector.shape_cast %401 : vector<1x1x64x64xf32> to vector<64x64xf32>
    %403 = vector.extract_strided_slice %402 {offsets = [0, 0], sizes = [32, 8], strides = [1, 1]} : vector<64x64xf32> to vector<32x8xf32>
    %c1_251 = arith.constant 1 : index
    %c5_252 = arith.constant 5 : index
    %c0_253 = arith.constant 0 : index
    %c0_254 = arith.constant 0 : index
    %404 = vector.load %arg4[%c1_251, %c5_252, %c0_253, %c0_254] : memref<2x18x64x64xf32, #tpu.memory_space<vmem>>, vector<1x1x64x64xf32>
    %405 = vector.shape_cast %404 : vector<1x1x64x64xf32> to vector<64x64xf32>
    %406 = vector.extract_strided_slice %405 {offsets = [0, 0], sizes = [32, 8], strides = [1, 1]} : vector<64x64xf32> to vector<32x8xf32>
    %c1_255 = arith.constant 1 : index
    %c9_256 = arith.constant 9 : index
    %c0_257 = arith.constant 0 : index
    %c0_258 = arith.constant 0 : index
    %407 = vector.load %arg4[%c1_255, %c9_256, %c0_257, %c0_258] : memref<2x18x64x64xf32, #tpu.memory_space<vmem>>, vector<1x1x64x64xf32>
    %408 = vector.shape_cast %407 : vector<1x1x64x64xf32> to vector<64x64xf32>
    %409 = vector.extract_strided_slice %408 {offsets = [0, 0], sizes = [32, 8], strides = [1, 1]} : vector<64x64xf32> to vector<32x8xf32>
    %c1_259 = arith.constant 1 : index
    %c13_260 = arith.constant 13 : index
    %c0_261 = arith.constant 0 : index
    %c0_262 = arith.constant 0 : index
    %410 = vector.load %arg4[%c1_259, %c13_260, %c0_261, %c0_262] : memref<2x18x64x64xf32, #tpu.memory_space<vmem>>, vector<1x1x64x64xf32>
    %411 = vector.shape_cast %410 : vector<1x1x64x64xf32> to vector<64x64xf32>
    %412 = vector.extract_strided_slice %411 {offsets = [0, 0], sizes = [8, 32], strides = [1, 1]} : vector<64x64xf32> to vector<8x32xf32>
    %cst_263 = arith.constant dense<0.000000e+00> : vector<16x8xf32>
    %413 = tpu.matmul %354, %403, %cst_263 {dimension_numbers = #tpu.dot_dimension_numbers<[1], [0], [0], [1], [0, 0, 1, 1], [], []>} : vector<16x32xf32>, vector<32x8xf32>, vector<16x8xf32> -> vector<16x8xf32>
    %414 = vector.extract_strided_slice %356 {offsets = [1, 0], sizes = [1, 8], strides = [1, 1]} : vector<19x64xf32> to vector<1x8xf32>
    %415 = vector.broadcast %414 : vector<1x8xf32> to vector<16x8xf32>
    %416 = arith.addf %413, %415 : vector<16x8xf32>
    %cst_264 = arith.constant 0.353553385 : f32
    %417 = vector.broadcast %cst_264 : f32 to vector<16x8xf32>
    %418 = arith.mulf %416, %417 : vector<16x8xf32>
    %cst_265 = arith.constant dense<0.000000e+00> : vector<16x8xf32>
    %419 = tpu.matmul %354, %406, %cst_265 {dimension_numbers = #tpu.dot_dimension_numbers<[1], [0], [0], [1], [0, 0, 1, 1], [], []>} : vector<16x32xf32>, vector<32x8xf32>, vector<16x8xf32> -> vector<16x8xf32>
    %420 = vector.extract_strided_slice %356 {offsets = [5, 0], sizes = [1, 8], strides = [1, 1]} : vector<19x64xf32> to vector<1x8xf32>
    %421 = vector.broadcast %420 : vector<1x8xf32> to vector<16x8xf32>
    %422 = arith.addf %419, %421 : vector<16x8xf32>
    %cst_266 = arith.constant dense<0.000000e+00> : vector<16x8xf32>
    %423 = tpu.matmul %354, %409, %cst_266 {dimension_numbers = #tpu.dot_dimension_numbers<[1], [0], [0], [1], [0, 0, 1, 1], [], []>} : vector<16x32xf32>, vector<32x8xf32>, vector<16x8xf32> -> vector<16x8xf32>
    %424 = vector.extract_strided_slice %356 {offsets = [9, 0], sizes = [1, 8], strides = [1, 1]} : vector<19x64xf32> to vector<1x8xf32>
    %425 = vector.broadcast %424 : vector<1x8xf32> to vector<16x8xf32>
    %426 = arith.addf %423, %425 : vector<16x8xf32>
    %cst_267 = arith.constant dense<0.000000e+00> : vector<16x16xf32>
    %427 = tpu.matmul %418, %422, %cst_267 {dimension_numbers = #tpu.dot_dimension_numbers<[1], [1], [0], [0], [0, 0, 1, 0], [], []>} : vector<16x8xf32>, vector<16x8xf32>, vector<16x16xf32> -> vector<16x16xf32>
    %cst_268 = arith.constant -1.000000e+30 : f32
    %428 = vector.broadcast %cst_268 : f32 to vector<16x16xf32>
    %429 = arith.select %15, %427, %428 : vector<16x16xi1>, vector<16x16xf32>
    %cst_269 = arith.constant dense<0xFF800000> : vector<16xf32>
    %430 = vector.multi_reduction <maximumf>, %429, %cst_269 [1] : vector<16x16xf32> to vector<16xf32>
    %431 = vector.shape_cast %430 : vector<16xf32> to vector<16x1xf32>
    %432 = vector.broadcast %431 : vector<16x1xf32> to vector<16x16xf32>
    %433 = arith.subf %429, %432 : vector<16x16xf32>
    %434 = math.exp %433 : vector<16x16xf32>
    %cst_270 = arith.constant dense<0.000000e+00> : vector<16xf32>
    %435 = vector.multi_reduction <add>, %434, %cst_270 [1] : vector<16x16xf32> to vector<16xf32>
    %436 = vector.shape_cast %435 : vector<16xf32> to vector<16x1xf32>
    %437 = tpu.reciprocal %436 {approx = true} : vector<16x1xf32> -> vector<16x1xf32>
    %438 = vector.broadcast %437 : vector<16x1xf32> to vector<16x16xf32>
    %439 = arith.mulf %434, %438 : vector<16x16xf32>
    %cst_271 = arith.constant dense<0.000000e+00> : vector<16x8xf32>
    %440 = tpu.matmul %439, %426, %cst_271 {dimension_numbers = #tpu.dot_dimension_numbers<[1], [0], [0], [1], [0, 0, 1, 1], [], []>} : vector<16x16xf32>, vector<16x8xf32>, vector<16x8xf32> -> vector<16x8xf32>
    %cst_272 = arith.constant dense<0.000000e+00> : vector<16x32xf32>
    %441 = tpu.matmul %440, %412, %cst_272 {dimension_numbers = #tpu.dot_dimension_numbers<[1], [0], [0], [1], [0, 0, 1, 1], [], []>} : vector<16x8xf32>, vector<8x32xf32>, vector<16x32xf32> -> vector<16x32xf32>
    %442 = arith.addf %400, %441 : vector<16x32xf32>
    %c1_273 = arith.constant 1 : index
    %c2_274 = arith.constant 2 : index
    %c0_275 = arith.constant 0 : index
    %c0_276 = arith.constant 0 : index
    %443 = vector.load %arg4[%c1_273, %c2_274, %c0_275, %c0_276] : memref<2x18x64x64xf32, #tpu.memory_space<vmem>>, vector<1x1x64x64xf32>
    %444 = vector.shape_cast %443 : vector<1x1x64x64xf32> to vector<64x64xf32>
    %445 = vector.extract_strided_slice %444 {offsets = [0, 0], sizes = [32, 8], strides = [1, 1]} : vector<64x64xf32> to vector<32x8xf32>
    %c1_277 = arith.constant 1 : index
    %c6_278 = arith.constant 6 : index
    %c0_279 = arith.constant 0 : index
    %c0_280 = arith.constant 0 : index
    %446 = vector.load %arg4[%c1_277, %c6_278, %c0_279, %c0_280] : memref<2x18x64x64xf32, #tpu.memory_space<vmem>>, vector<1x1x64x64xf32>
    %447 = vector.shape_cast %446 : vector<1x1x64x64xf32> to vector<64x64xf32>
    %448 = vector.extract_strided_slice %447 {offsets = [0, 0], sizes = [32, 8], strides = [1, 1]} : vector<64x64xf32> to vector<32x8xf32>
    %c1_281 = arith.constant 1 : index
    %c10_282 = arith.constant 10 : index
    %c0_283 = arith.constant 0 : index
    %c0_284 = arith.constant 0 : index
    %449 = vector.load %arg4[%c1_281, %c10_282, %c0_283, %c0_284] : memref<2x18x64x64xf32, #tpu.memory_space<vmem>>, vector<1x1x64x64xf32>
    %450 = vector.shape_cast %449 : vector<1x1x64x64xf32> to vector<64x64xf32>
    %451 = vector.extract_strided_slice %450 {offsets = [0, 0], sizes = [32, 8], strides = [1, 1]} : vector<64x64xf32> to vector<32x8xf32>
    %c1_285 = arith.constant 1 : index
    %c14_286 = arith.constant 14 : index
    %c0_287 = arith.constant 0 : index
    %c0_288 = arith.constant 0 : index
    %452 = vector.load %arg4[%c1_285, %c14_286, %c0_287, %c0_288] : memref<2x18x64x64xf32, #tpu.memory_space<vmem>>, vector<1x1x64x64xf32>
    %453 = vector.shape_cast %452 : vector<1x1x64x64xf32> to vector<64x64xf32>
    %454 = vector.extract_strided_slice %453 {offsets = [0, 0], sizes = [8, 32], strides = [1, 1]} : vector<64x64xf32> to vector<8x32xf32>
    %cst_289 = arith.constant dense<0.000000e+00> : vector<16x8xf32>
    %455 = tpu.matmul %354, %445, %cst_289 {dimension_numbers = #tpu.dot_dimension_numbers<[1], [0], [0], [1], [0, 0, 1, 1], [], []>} : vector<16x32xf32>, vector<32x8xf32>, vector<16x8xf32> -> vector<16x8xf32>
    %456 = vector.extract_strided_slice %356 {offsets = [2, 0], sizes = [1, 8], strides = [1, 1]} : vector<19x64xf32> to vector<1x8xf32>
    %457 = vector.broadcast %456 : vector<1x8xf32> to vector<16x8xf32>
    %458 = arith.addf %455, %457 : vector<16x8xf32>
    %cst_290 = arith.constant 0.353553385 : f32
    %459 = vector.broadcast %cst_290 : f32 to vector<16x8xf32>
    %460 = arith.mulf %458, %459 : vector<16x8xf32>
    %cst_291 = arith.constant dense<0.000000e+00> : vector<16x8xf32>
    %461 = tpu.matmul %354, %448, %cst_291 {dimension_numbers = #tpu.dot_dimension_numbers<[1], [0], [0], [1], [0, 0, 1, 1], [], []>} : vector<16x32xf32>, vector<32x8xf32>, vector<16x8xf32> -> vector<16x8xf32>
    %462 = vector.extract_strided_slice %356 {offsets = [6, 0], sizes = [1, 8], strides = [1, 1]} : vector<19x64xf32> to vector<1x8xf32>
    %463 = vector.broadcast %462 : vector<1x8xf32> to vector<16x8xf32>
    %464 = arith.addf %461, %463 : vector<16x8xf32>
    %cst_292 = arith.constant dense<0.000000e+00> : vector<16x8xf32>
    %465 = tpu.matmul %354, %451, %cst_292 {dimension_numbers = #tpu.dot_dimension_numbers<[1], [0], [0], [1], [0, 0, 1, 1], [], []>} : vector<16x32xf32>, vector<32x8xf32>, vector<16x8xf32> -> vector<16x8xf32>
    %466 = vector.extract_strided_slice %356 {offsets = [10, 0], sizes = [1, 8], strides = [1, 1]} : vector<19x64xf32> to vector<1x8xf32>
    %467 = vector.broadcast %466 : vector<1x8xf32> to vector<16x8xf32>
    %468 = arith.addf %465, %467 : vector<16x8xf32>
    %cst_293 = arith.constant dense<0.000000e+00> : vector<16x16xf32>
    %469 = tpu.matmul %460, %464, %cst_293 {dimension_numbers = #tpu.dot_dimension_numbers<[1], [1], [0], [0], [0, 0, 1, 0], [], []>} : vector<16x8xf32>, vector<16x8xf32>, vector<16x16xf32> -> vector<16x16xf32>
    %cst_294 = arith.constant -1.000000e+30 : f32
    %470 = vector.broadcast %cst_294 : f32 to vector<16x16xf32>
    %471 = arith.select %15, %469, %470 : vector<16x16xi1>, vector<16x16xf32>
    %cst_295 = arith.constant dense<0xFF800000> : vector<16xf32>
    %472 = vector.multi_reduction <maximumf>, %471, %cst_295 [1] : vector<16x16xf32> to vector<16xf32>
    %473 = vector.shape_cast %472 : vector<16xf32> to vector<16x1xf32>
    %474 = vector.broadcast %473 : vector<16x1xf32> to vector<16x16xf32>
    %475 = arith.subf %471, %474 : vector<16x16xf32>
    %476 = math.exp %475 : vector<16x16xf32>
    %cst_296 = arith.constant dense<0.000000e+00> : vector<16xf32>
    %477 = vector.multi_reduction <add>, %476, %cst_296 [1] : vector<16x16xf32> to vector<16xf32>
    %478 = vector.shape_cast %477 : vector<16xf32> to vector<16x1xf32>
    %479 = tpu.reciprocal %478 {approx = true} : vector<16x1xf32> -> vector<16x1xf32>
    %480 = vector.broadcast %479 : vector<16x1xf32> to vector<16x16xf32>
    %481 = arith.mulf %476, %480 : vector<16x16xf32>
    %cst_297 = arith.constant dense<0.000000e+00> : vector<16x8xf32>
    %482 = tpu.matmul %481, %468, %cst_297 {dimension_numbers = #tpu.dot_dimension_numbers<[1], [0], [0], [1], [0, 0, 1, 1], [], []>} : vector<16x16xf32>, vector<16x8xf32>, vector<16x8xf32> -> vector<16x8xf32>
    %cst_298 = arith.constant dense<0.000000e+00> : vector<16x32xf32>
    %483 = tpu.matmul %482, %454, %cst_298 {dimension_numbers = #tpu.dot_dimension_numbers<[1], [0], [0], [1], [0, 0, 1, 1], [], []>} : vector<16x8xf32>, vector<8x32xf32>, vector<16x32xf32> -> vector<16x32xf32>
    %484 = arith.addf %442, %483 : vector<16x32xf32>
    %c1_299 = arith.constant 1 : index
    %c3_300 = arith.constant 3 : index
    %c0_301 = arith.constant 0 : index
    %c0_302 = arith.constant 0 : index
    %485 = vector.load %arg4[%c1_299, %c3_300, %c0_301, %c0_302] : memref<2x18x64x64xf32, #tpu.memory_space<vmem>>, vector<1x1x64x64xf32>
    %486 = vector.shape_cast %485 : vector<1x1x64x64xf32> to vector<64x64xf32>
    %487 = vector.extract_strided_slice %486 {offsets = [0, 0], sizes = [32, 8], strides = [1, 1]} : vector<64x64xf32> to vector<32x8xf32>
    %c1_303 = arith.constant 1 : index
    %c7_304 = arith.constant 7 : index
    %c0_305 = arith.constant 0 : index
    %c0_306 = arith.constant 0 : index
    %488 = vector.load %arg4[%c1_303, %c7_304, %c0_305, %c0_306] : memref<2x18x64x64xf32, #tpu.memory_space<vmem>>, vector<1x1x64x64xf32>
    %489 = vector.shape_cast %488 : vector<1x1x64x64xf32> to vector<64x64xf32>
    %490 = vector.extract_strided_slice %489 {offsets = [0, 0], sizes = [32, 8], strides = [1, 1]} : vector<64x64xf32> to vector<32x8xf32>
    %c1_307 = arith.constant 1 : index
    %c11_308 = arith.constant 11 : index
    %c0_309 = arith.constant 0 : index
    %c0_310 = arith.constant 0 : index
    %491 = vector.load %arg4[%c1_307, %c11_308, %c0_309, %c0_310] : memref<2x18x64x64xf32, #tpu.memory_space<vmem>>, vector<1x1x64x64xf32>
    %492 = vector.shape_cast %491 : vector<1x1x64x64xf32> to vector<64x64xf32>
    %493 = vector.extract_strided_slice %492 {offsets = [0, 0], sizes = [32, 8], strides = [1, 1]} : vector<64x64xf32> to vector<32x8xf32>
    %c1_311 = arith.constant 1 : index
    %c15_312 = arith.constant 15 : index
    %c0_313 = arith.constant 0 : index
    %c0_314 = arith.constant 0 : index
    %494 = vector.load %arg4[%c1_311, %c15_312, %c0_313, %c0_314] : memref<2x18x64x64xf32, #tpu.memory_space<vmem>>, vector<1x1x64x64xf32>
    %495 = vector.shape_cast %494 : vector<1x1x64x64xf32> to vector<64x64xf32>
    %496 = vector.extract_strided_slice %495 {offsets = [0, 0], sizes = [8, 32], strides = [1, 1]} : vector<64x64xf32> to vector<8x32xf32>
    %cst_315 = arith.constant dense<0.000000e+00> : vector<16x8xf32>
    %497 = tpu.matmul %354, %487, %cst_315 {dimension_numbers = #tpu.dot_dimension_numbers<[1], [0], [0], [1], [0, 0, 1, 1], [], []>} : vector<16x32xf32>, vector<32x8xf32>, vector<16x8xf32> -> vector<16x8xf32>
    %498 = vector.extract_strided_slice %356 {offsets = [3, 0], sizes = [1, 8], strides = [1, 1]} : vector<19x64xf32> to vector<1x8xf32>
    %499 = vector.broadcast %498 : vector<1x8xf32> to vector<16x8xf32>
    %500 = arith.addf %497, %499 : vector<16x8xf32>
    %cst_316 = arith.constant 0.353553385 : f32
    %501 = vector.broadcast %cst_316 : f32 to vector<16x8xf32>
    %502 = arith.mulf %500, %501 : vector<16x8xf32>
    %cst_317 = arith.constant dense<0.000000e+00> : vector<16x8xf32>
    %503 = tpu.matmul %354, %490, %cst_317 {dimension_numbers = #tpu.dot_dimension_numbers<[1], [0], [0], [1], [0, 0, 1, 1], [], []>} : vector<16x32xf32>, vector<32x8xf32>, vector<16x8xf32> -> vector<16x8xf32>
    %504 = vector.extract_strided_slice %356 {offsets = [7, 0], sizes = [1, 8], strides = [1, 1]} : vector<19x64xf32> to vector<1x8xf32>
    %505 = vector.broadcast %504 : vector<1x8xf32> to vector<16x8xf32>
    %506 = arith.addf %503, %505 : vector<16x8xf32>
    %cst_318 = arith.constant dense<0.000000e+00> : vector<16x8xf32>
    %507 = tpu.matmul %354, %493, %cst_318 {dimension_numbers = #tpu.dot_dimension_numbers<[1], [0], [0], [1], [0, 0, 1, 1], [], []>} : vector<16x32xf32>, vector<32x8xf32>, vector<16x8xf32> -> vector<16x8xf32>
    %508 = vector.extract_strided_slice %356 {offsets = [11, 0], sizes = [1, 8], strides = [1, 1]} : vector<19x64xf32> to vector<1x8xf32>
    %509 = vector.broadcast %508 : vector<1x8xf32> to vector<16x8xf32>
    %510 = arith.addf %507, %509 : vector<16x8xf32>
    %cst_319 = arith.constant dense<0.000000e+00> : vector<16x16xf32>
    %511 = tpu.matmul %502, %506, %cst_319 {dimension_numbers = #tpu.dot_dimension_numbers<[1], [1], [0], [0], [0, 0, 1, 0], [], []>} : vector<16x8xf32>, vector<16x8xf32>, vector<16x16xf32> -> vector<16x16xf32>
    %cst_320 = arith.constant -1.000000e+30 : f32
    %512 = vector.broadcast %cst_320 : f32 to vector<16x16xf32>
    %513 = arith.select %15, %511, %512 : vector<16x16xi1>, vector<16x16xf32>
    %cst_321 = arith.constant dense<0xFF800000> : vector<16xf32>
    %514 = vector.multi_reduction <maximumf>, %513, %cst_321 [1] : vector<16x16xf32> to vector<16xf32>
    %515 = vector.shape_cast %514 : vector<16xf32> to vector<16x1xf32>
    %516 = vector.broadcast %515 : vector<16x1xf32> to vector<16x16xf32>
    %517 = arith.subf %513, %516 : vector<16x16xf32>
    %518 = math.exp %517 : vector<16x16xf32>
    %cst_322 = arith.constant dense<0.000000e+00> : vector<16xf32>
    %519 = vector.multi_reduction <add>, %518, %cst_322 [1] : vector<16x16xf32> to vector<16xf32>
    %520 = vector.shape_cast %519 : vector<16xf32> to vector<16x1xf32>
    %521 = tpu.reciprocal %520 {approx = true} : vector<16x1xf32> -> vector<16x1xf32>
    %522 = vector.broadcast %521 : vector<16x1xf32> to vector<16x16xf32>
    %523 = arith.mulf %518, %522 : vector<16x16xf32>
    %cst_323 = arith.constant dense<0.000000e+00> : vector<16x8xf32>
    %524 = tpu.matmul %523, %510, %cst_323 {dimension_numbers = #tpu.dot_dimension_numbers<[1], [0], [0], [1], [0, 0, 1, 1], [], []>} : vector<16x16xf32>, vector<16x8xf32>, vector<16x8xf32> -> vector<16x8xf32>
    %cst_324 = arith.constant dense<0.000000e+00> : vector<16x32xf32>
    %525 = tpu.matmul %524, %496, %cst_324 {dimension_numbers = #tpu.dot_dimension_numbers<[1], [0], [0], [1], [0, 0, 1, 1], [], []>} : vector<16x8xf32>, vector<8x32xf32>, vector<16x32xf32> -> vector<16x32xf32>
    %526 = arith.addf %484, %525 : vector<16x32xf32>
    %527 = arith.addf %354, %526 : vector<16x32xf32>
    %528 = vector.extract_strided_slice %356 {offsets = [15, 0], sizes = [1, 32], strides = [1, 1]} : vector<19x64xf32> to vector<1x32xf32>
    %529 = vector.extract_strided_slice %356 {offsets = [16, 0], sizes = [1, 32], strides = [1, 1]} : vector<19x64xf32> to vector<1x32xf32>
    %cst_325 = arith.constant dense<0.000000e+00> : vector<16xf32>
    %530 = vector.multi_reduction <add>, %527, %cst_325 [1] : vector<16x32xf32> to vector<16xf32>
    %531 = vector.shape_cast %530 : vector<16xf32> to vector<16x1xf32>
    %cst_326 = arith.constant 3.200000e+01 : f32
    %532 = vector.broadcast %cst_326 : f32 to vector<16x1xf32>
    %533 = arith.divf %531, %532 : vector<16x1xf32>
    %534 = vector.broadcast %533 : vector<16x1xf32> to vector<16x32xf32>
    %535 = arith.subf %527, %534 : vector<16x32xf32>
    %536 = arith.mulf %535, %535 : vector<16x32xf32>
    %cst_327 = arith.constant dense<0.000000e+00> : vector<16xf32>
    %537 = vector.multi_reduction <add>, %536, %cst_327 [1] : vector<16x32xf32> to vector<16xf32>
    %538 = vector.shape_cast %537 : vector<16xf32> to vector<16x1xf32>
    %cst_328 = arith.constant 3.200000e+01 : f32
    %539 = vector.broadcast %cst_328 : f32 to vector<16x1xf32>
    %540 = arith.divf %538, %539 : vector<16x1xf32>
    %cst_329 = arith.constant 9.99999974E-6 : f32
    %541 = vector.broadcast %cst_329 : f32 to vector<16x1xf32>
    %542 = arith.addf %540, %541 : vector<16x1xf32>
    %543 = math.rsqrt %542 : vector<16x1xf32>
    %544 = vector.broadcast %543 : vector<16x1xf32> to vector<16x32xf32>
    %545 = arith.mulf %535, %544 : vector<16x32xf32>
    %546 = vector.broadcast %528 : vector<1x32xf32> to vector<16x32xf32>
    %547 = arith.mulf %545, %546 : vector<16x32xf32>
    %548 = vector.broadcast %529 : vector<1x32xf32> to vector<16x32xf32>
    %549 = arith.addf %547, %548 : vector<16x32xf32>
    %c1_330 = arith.constant 1 : index
    %c16_331 = arith.constant 16 : index
    %c0_332 = arith.constant 0 : index
    %c0_333 = arith.constant 0 : index
    %550 = vector.load %arg4[%c1_330, %c16_331, %c0_332, %c0_333] : memref<2x18x64x64xf32, #tpu.memory_space<vmem>>, vector<1x1x64x64xf32>
    %551 = vector.shape_cast %550 : vector<1x1x64x64xf32> to vector<64x64xf32>
    %552 = vector.extract_strided_slice %551 {offsets = [0, 0], sizes = [32, 64], strides = [1, 1]} : vector<64x64xf32> to vector<32x64xf32>
    %c1_334 = arith.constant 1 : index
    %c17_335 = arith.constant 17 : index
    %c0_336 = arith.constant 0 : index
    %c0_337 = arith.constant 0 : index
    %553 = vector.load %arg4[%c1_334, %c17_335, %c0_336, %c0_337] : memref<2x18x64x64xf32, #tpu.memory_space<vmem>>, vector<1x1x64x64xf32>
    %554 = vector.shape_cast %553 : vector<1x1x64x64xf32> to vector<64x64xf32>
    %555 = vector.extract_strided_slice %554 {offsets = [0, 0], sizes = [64, 32], strides = [1, 1]} : vector<64x64xf32> to vector<64x32xf32>
    %cst_338 = arith.constant dense<0.000000e+00> : vector<16x64xf32>
    %556 = tpu.matmul %549, %552, %cst_338 {dimension_numbers = #tpu.dot_dimension_numbers<[1], [0], [0], [1], [0, 0, 1, 1], [], []>} : vector<16x32xf32>, vector<32x64xf32>, vector<16x64xf32> -> vector<16x64xf32>
    %557 = vector.extract_strided_slice %356 {offsets = [13, 0], sizes = [1, 64], strides = [1, 1]} : vector<19x64xf32> to vector<1x64xf32>
    %558 = vector.broadcast %557 : vector<1x64xf32> to vector<16x64xf32>
    %559 = arith.addf %556, %558 : vector<16x64xf32>
    %cst_339 = arith.constant 0.000000e+00 : f32
    %560 = vector.broadcast %cst_339 : f32 to vector<16x64xf32>
    %561 = arith.maximumf %559, %560 : vector<16x64xf32>
    %cst_340 = arith.constant dense<0.000000e+00> : vector<16x32xf32>
    %562 = tpu.matmul %561, %555, %cst_340 {dimension_numbers = #tpu.dot_dimension_numbers<[1], [0], [0], [1], [0, 0, 1, 1], [], []>} : vector<16x64xf32>, vector<64x32xf32>, vector<16x32xf32> -> vector<16x32xf32>
    %563 = vector.extract_strided_slice %356 {offsets = [14, 0], sizes = [1, 32], strides = [1, 1]} : vector<19x64xf32> to vector<1x32xf32>
    %564 = vector.broadcast %563 : vector<1x32xf32> to vector<16x32xf32>
    %565 = arith.addf %562, %564 : vector<16x32xf32>
    %566 = arith.addf %549, %565 : vector<16x32xf32>
    %567 = vector.extract_strided_slice %356 {offsets = [17, 0], sizes = [1, 32], strides = [1, 1]} : vector<19x64xf32> to vector<1x32xf32>
    %568 = vector.extract_strided_slice %356 {offsets = [18, 0], sizes = [1, 32], strides = [1, 1]} : vector<19x64xf32> to vector<1x32xf32>
    %cst_341 = arith.constant dense<0.000000e+00> : vector<16xf32>
    %569 = vector.multi_reduction <add>, %566, %cst_341 [1] : vector<16x32xf32> to vector<16xf32>
    %570 = vector.shape_cast %569 : vector<16xf32> to vector<16x1xf32>
    %cst_342 = arith.constant 3.200000e+01 : f32
    %571 = vector.broadcast %cst_342 : f32 to vector<16x1xf32>
    %572 = arith.divf %570, %571 : vector<16x1xf32>
    %573 = vector.broadcast %572 : vector<16x1xf32> to vector<16x32xf32>
    %574 = arith.subf %566, %573 : vector<16x32xf32>
    %575 = arith.mulf %574, %574 : vector<16x32xf32>
    %cst_343 = arith.constant dense<0.000000e+00> : vector<16xf32>
    %576 = vector.multi_reduction <add>, %575, %cst_343 [1] : vector<16x32xf32> to vector<16xf32>
    %577 = vector.shape_cast %576 : vector<16xf32> to vector<16x1xf32>
    %cst_344 = arith.constant 3.200000e+01 : f32
    %578 = vector.broadcast %cst_344 : f32 to vector<16x1xf32>
    %579 = arith.divf %577, %578 : vector<16x1xf32>
    %cst_345 = arith.constant 9.99999974E-6 : f32
    %580 = vector.broadcast %cst_345 : f32 to vector<16x1xf32>
    %581 = arith.addf %579, %580 : vector<16x1xf32>
    %582 = math.rsqrt %581 : vector<16x1xf32>
    %583 = vector.broadcast %582 : vector<16x1xf32> to vector<16x32xf32>
    %584 = arith.mulf %574, %583 : vector<16x32xf32>
    %585 = vector.broadcast %567 : vector<1x32xf32> to vector<16x32xf32>
    %586 = arith.mulf %584, %585 : vector<16x32xf32>
    %587 = vector.broadcast %568 : vector<1x32xf32> to vector<16x32xf32>
    %588 = arith.addf %586, %587 : vector<16x32xf32>
    %cst_346 = arith.constant dense<0.000000e+00> : vector<32xf32>
    %589 = vector.multi_reduction <add>, %588, %cst_346 [0] : vector<16x32xf32> to vector<32xf32>
    %590 = vector.shape_cast %589 : vector<32xf32> to vector<1x32xf32>
    %cst_347 = arith.constant 1.600000e+01 : f32
    %591 = vector.broadcast %cst_347 : f32 to vector<1x32xf32>
    %592 = arith.divf %590, %591 : vector<1x32xf32>
    %593 = vector.broadcast %592 : vector<1x32xf32> to vector<16x32xf32>
    %594 = arith.subf %588, %593 : vector<16x32xf32>
    %595 = vector.extract_strided_slice %0 {offsets = [6, 0], sizes = [1, 128], strides = [1, 1]} : vector<12x128xf32> to vector<1x128xf32>
    %c0_348 = arith.constant 0 : index
    %c0_349 = arith.constant 0 : index
    %c0_350 = arith.constant 0 : index
    %c0_351 = arith.constant 0 : index
    %596 = vector.load %arg2[%c0_348, %c0_349, %c0_350, %c0_351] : memref<6x3x128x128xf32, #tpu.memory_space<vmem>>, vector<1x1x128x128xf32>
    %597 = vector.shape_cast %596 : vector<1x1x128x128xf32> to vector<128x128xf32>
    %598 = vector.extract_strided_slice %597 {offsets = [0, 0], sizes = [32, 128], strides = [1, 1]} : vector<128x128xf32> to vector<32x128xf32>
    %cst_352 = arith.constant dense<0.000000e+00> : vector<16x32xf32>
    %599 = tpu.matmul %7, %594, %cst_352 {dimension_numbers = #tpu.dot_dimension_numbers<[1], [0], [0], [1], [0, 0, 1, 1], [], []>} : vector<16x16xf32>, vector<16x32xf32>, vector<16x32xf32> -> vector<16x32xf32>
    %cst_353 = arith.constant dense<0.000000e+00> : vector<16x128xf32>
    %600 = tpu.matmul %599, %598, %cst_353 {dimension_numbers = #tpu.dot_dimension_numbers<[1], [0], [0], [1], [0, 0, 1, 1], [], []>} : vector<16x32xf32>, vector<32x128xf32>, vector<16x128xf32> -> vector<16x128xf32>
    %601 = vector.broadcast %595 : vector<1x128xf32> to vector<16x128xf32>
    %602 = arith.addf %601, %600 : vector<16x128xf32>
    %c0_354 = arith.constant 0 : index
    %c1_355 = arith.constant 1 : index
    %c0_356 = arith.constant 0 : index
    %c0_357 = arith.constant 0 : index
    %603 = vector.load %arg2[%c0_354, %c1_355, %c0_356, %c0_357] : memref<6x3x128x128xf32, #tpu.memory_space<vmem>>, vector<1x1x128x128xf32>
    %604 = vector.shape_cast %603 : vector<1x1x128x128xf32> to vector<128x128xf32>
    %605 = vector.extract_strided_slice %604 {offsets = [0, 0], sizes = [32, 128], strides = [1, 1]} : vector<128x128xf32> to vector<32x128xf32>
    %cst_358 = arith.constant dense<0.000000e+00> : vector<16x128xf32>
    %606 = tpu.matmul %594, %605, %cst_358 {dimension_numbers = #tpu.dot_dimension_numbers<[1], [0], [0], [1], [0, 0, 1, 1], [], []>} : vector<16x32xf32>, vector<32x128xf32>, vector<16x128xf32> -> vector<16x128xf32>
    %607 = arith.addf %602, %606 : vector<16x128xf32>
    %c0_359 = arith.constant 0 : index
    %c2_360 = arith.constant 2 : index
    %c0_361 = arith.constant 0 : index
    %c0_362 = arith.constant 0 : index
    %608 = vector.load %arg2[%c0_359, %c2_360, %c0_361, %c0_362] : memref<6x3x128x128xf32, #tpu.memory_space<vmem>>, vector<1x1x128x128xf32>
    %609 = vector.shape_cast %608 : vector<1x1x128x128xf32> to vector<128x128xf32>
    %610 = vector.extract_strided_slice %609 {offsets = [0, 0], sizes = [32, 128], strides = [1, 1]} : vector<128x128xf32> to vector<32x128xf32>
    %cst_363 = arith.constant dense<0.000000e+00> : vector<16x32xf32>
    %611 = tpu.matmul %12, %594, %cst_363 {dimension_numbers = #tpu.dot_dimension_numbers<[1], [0], [0], [1], [0, 0, 1, 1], [], []>} : vector<16x16xf32>, vector<16x32xf32>, vector<16x32xf32> -> vector<16x32xf32>
    %cst_364 = arith.constant dense<0.000000e+00> : vector<16x128xf32>
    %612 = tpu.matmul %611, %610, %cst_364 {dimension_numbers = #tpu.dot_dimension_numbers<[1], [0], [0], [1], [0, 0, 1, 1], [], []>} : vector<16x32xf32>, vector<32x128xf32>, vector<16x128xf32> -> vector<16x128xf32>
    %613 = arith.addf %607, %612 : vector<16x128xf32>
    %cst_365 = arith.constant 0.000000e+00 : f32
    %614 = vector.broadcast %cst_365 : f32 to vector<16x128xf32>
    %615 = arith.maximumf %613, %614 : vector<16x128xf32>
    %616 = vector.extract_strided_slice %0 {offsets = [7, 0], sizes = [1, 128], strides = [1, 1]} : vector<12x128xf32> to vector<1x128xf32>
    %c1_366 = arith.constant 1 : index
    %c0_367 = arith.constant 0 : index
    %c0_368 = arith.constant 0 : index
    %c0_369 = arith.constant 0 : index
    %617 = vector.load %arg2[%c1_366, %c0_367, %c0_368, %c0_369] : memref<6x3x128x128xf32, #tpu.memory_space<vmem>>, vector<1x1x128x128xf32>
    %618 = vector.shape_cast %617 : vector<1x1x128x128xf32> to vector<128x128xf32>
    %cst_370 = arith.constant dense<0.000000e+00> : vector<16x128xf32>
    %619 = tpu.matmul %7, %615, %cst_370 {dimension_numbers = #tpu.dot_dimension_numbers<[1], [0], [0], [1], [0, 0, 1, 1], [], []>} : vector<16x16xf32>, vector<16x128xf32>, vector<16x128xf32> -> vector<16x128xf32>
    %cst_371 = arith.constant dense<0.000000e+00> : vector<16x128xf32>
    %620 = tpu.matmul %619, %618, %cst_371 {dimension_numbers = #tpu.dot_dimension_numbers<[1], [0], [0], [1], [0, 0, 1, 1], [], []>} : vector<16x128xf32>, vector<128x128xf32>, vector<16x128xf32> -> vector<16x128xf32>
    %621 = vector.broadcast %616 : vector<1x128xf32> to vector<16x128xf32>
    %622 = arith.addf %621, %620 : vector<16x128xf32>
    %c1_372 = arith.constant 1 : index
    %c1_373 = arith.constant 1 : index
    %c0_374 = arith.constant 0 : index
    %c0_375 = arith.constant 0 : index
    %623 = vector.load %arg2[%c1_372, %c1_373, %c0_374, %c0_375] : memref<6x3x128x128xf32, #tpu.memory_space<vmem>>, vector<1x1x128x128xf32>
    %624 = vector.shape_cast %623 : vector<1x1x128x128xf32> to vector<128x128xf32>
    %cst_376 = arith.constant dense<0.000000e+00> : vector<16x128xf32>
    %625 = tpu.matmul %615, %624, %cst_376 {dimension_numbers = #tpu.dot_dimension_numbers<[1], [0], [0], [1], [0, 0, 1, 1], [], []>} : vector<16x128xf32>, vector<128x128xf32>, vector<16x128xf32> -> vector<16x128xf32>
    %626 = arith.addf %622, %625 : vector<16x128xf32>
    %c1_377 = arith.constant 1 : index
    %c2_378 = arith.constant 2 : index
    %c0_379 = arith.constant 0 : index
    %c0_380 = arith.constant 0 : index
    %627 = vector.load %arg2[%c1_377, %c2_378, %c0_379, %c0_380] : memref<6x3x128x128xf32, #tpu.memory_space<vmem>>, vector<1x1x128x128xf32>
    %628 = vector.shape_cast %627 : vector<1x1x128x128xf32> to vector<128x128xf32>
    %cst_381 = arith.constant dense<0.000000e+00> : vector<16x128xf32>
    %629 = tpu.matmul %12, %615, %cst_381 {dimension_numbers = #tpu.dot_dimension_numbers<[1], [0], [0], [1], [0, 0, 1, 1], [], []>} : vector<16x16xf32>, vector<16x128xf32>, vector<16x128xf32> -> vector<16x128xf32>
    %cst_382 = arith.constant dense<0.000000e+00> : vector<16x128xf32>
    %630 = tpu.matmul %629, %628, %cst_382 {dimension_numbers = #tpu.dot_dimension_numbers<[1], [0], [0], [1], [0, 0, 1, 1], [], []>} : vector<16x128xf32>, vector<128x128xf32>, vector<16x128xf32> -> vector<16x128xf32>
    %631 = arith.addf %626, %630 : vector<16x128xf32>
    %cst_383 = arith.constant 0.000000e+00 : f32
    %632 = vector.broadcast %cst_383 : f32 to vector<16x128xf32>
    %633 = arith.maximumf %631, %632 : vector<16x128xf32>
    %634 = vector.extract_strided_slice %0 {offsets = [8, 0], sizes = [1, 128], strides = [1, 1]} : vector<12x128xf32> to vector<1x128xf32>
    %c2_384 = arith.constant 2 : index
    %c0_385 = arith.constant 0 : index
    %c0_386 = arith.constant 0 : index
    %c0_387 = arith.constant 0 : index
    %635 = vector.load %arg2[%c2_384, %c0_385, %c0_386, %c0_387] : memref<6x3x128x128xf32, #tpu.memory_space<vmem>>, vector<1x1x128x128xf32>
    %636 = vector.shape_cast %635 : vector<1x1x128x128xf32> to vector<128x128xf32>
    %cst_388 = arith.constant dense<0.000000e+00> : vector<16x128xf32>
    %637 = tpu.matmul %7, %633, %cst_388 {dimension_numbers = #tpu.dot_dimension_numbers<[1], [0], [0], [1], [0, 0, 1, 1], [], []>} : vector<16x16xf32>, vector<16x128xf32>, vector<16x128xf32> -> vector<16x128xf32>
    %cst_389 = arith.constant dense<0.000000e+00> : vector<16x128xf32>
    %638 = tpu.matmul %637, %636, %cst_389 {dimension_numbers = #tpu.dot_dimension_numbers<[1], [0], [0], [1], [0, 0, 1, 1], [], []>} : vector<16x128xf32>, vector<128x128xf32>, vector<16x128xf32> -> vector<16x128xf32>
    %639 = vector.broadcast %634 : vector<1x128xf32> to vector<16x128xf32>
    %640 = arith.addf %639, %638 : vector<16x128xf32>
    %c2_390 = arith.constant 2 : index
    %c1_391 = arith.constant 1 : index
    %c0_392 = arith.constant 0 : index
    %c0_393 = arith.constant 0 : index
    %641 = vector.load %arg2[%c2_390, %c1_391, %c0_392, %c0_393] : memref<6x3x128x128xf32, #tpu.memory_space<vmem>>, vector<1x1x128x128xf32>
    %642 = vector.shape_cast %641 : vector<1x1x128x128xf32> to vector<128x128xf32>
    %cst_394 = arith.constant dense<0.000000e+00> : vector<16x128xf32>
    %643 = tpu.matmul %633, %642, %cst_394 {dimension_numbers = #tpu.dot_dimension_numbers<[1], [0], [0], [1], [0, 0, 1, 1], [], []>} : vector<16x128xf32>, vector<128x128xf32>, vector<16x128xf32> -> vector<16x128xf32>
    %644 = arith.addf %640, %643 : vector<16x128xf32>
    %c2_395 = arith.constant 2 : index
    %c2_396 = arith.constant 2 : index
    %c0_397 = arith.constant 0 : index
    %c0_398 = arith.constant 0 : index
    %645 = vector.load %arg2[%c2_395, %c2_396, %c0_397, %c0_398] : memref<6x3x128x128xf32, #tpu.memory_space<vmem>>, vector<1x1x128x128xf32>
    %646 = vector.shape_cast %645 : vector<1x1x128x128xf32> to vector<128x128xf32>
    %cst_399 = arith.constant dense<0.000000e+00> : vector<16x128xf32>
    %647 = tpu.matmul %12, %633, %cst_399 {dimension_numbers = #tpu.dot_dimension_numbers<[1], [0], [0], [1], [0, 0, 1, 1], [], []>} : vector<16x16xf32>, vector<16x128xf32>, vector<16x128xf32> -> vector<16x128xf32>
    %cst_400 = arith.constant dense<0.000000e+00> : vector<16x128xf32>
    %648 = tpu.matmul %647, %646, %cst_400 {dimension_numbers = #tpu.dot_dimension_numbers<[1], [0], [0], [1], [0, 0, 1, 1], [], []>} : vector<16x128xf32>, vector<128x128xf32>, vector<16x128xf32> -> vector<16x128xf32>
    %649 = arith.addf %644, %648 : vector<16x128xf32>
    %650 = arith.addf %615, %649 : vector<16x128xf32>
    %651 = vector.extract_strided_slice %0 {offsets = [9, 0], sizes = [1, 128], strides = [1, 1]} : vector<12x128xf32> to vector<1x128xf32>
    %c3_401 = arith.constant 3 : index
    %c0_402 = arith.constant 0 : index
    %c0_403 = arith.constant 0 : index
    %c0_404 = arith.constant 0 : index
    %652 = vector.load %arg2[%c3_401, %c0_402, %c0_403, %c0_404] : memref<6x3x128x128xf32, #tpu.memory_space<vmem>>, vector<1x1x128x128xf32>
    %653 = vector.shape_cast %652 : vector<1x1x128x128xf32> to vector<128x128xf32>
    %cst_405 = arith.constant dense<0.000000e+00> : vector<16x128xf32>
    %654 = tpu.matmul %7, %615, %cst_405 {dimension_numbers = #tpu.dot_dimension_numbers<[1], [0], [0], [1], [0, 0, 1, 1], [], []>} : vector<16x16xf32>, vector<16x128xf32>, vector<16x128xf32> -> vector<16x128xf32>
    %cst_406 = arith.constant dense<0.000000e+00> : vector<16x128xf32>
    %655 = tpu.matmul %654, %653, %cst_406 {dimension_numbers = #tpu.dot_dimension_numbers<[1], [0], [0], [1], [0, 0, 1, 1], [], []>} : vector<16x128xf32>, vector<128x128xf32>, vector<16x128xf32> -> vector<16x128xf32>
    %656 = vector.broadcast %651 : vector<1x128xf32> to vector<16x128xf32>
    %657 = arith.addf %656, %655 : vector<16x128xf32>
    %c3_407 = arith.constant 3 : index
    %c1_408 = arith.constant 1 : index
    %c0_409 = arith.constant 0 : index
    %c0_410 = arith.constant 0 : index
    %658 = vector.load %arg2[%c3_407, %c1_408, %c0_409, %c0_410] : memref<6x3x128x128xf32, #tpu.memory_space<vmem>>, vector<1x1x128x128xf32>
    %659 = vector.shape_cast %658 : vector<1x1x128x128xf32> to vector<128x128xf32>
    %cst_411 = arith.constant dense<0.000000e+00> : vector<16x128xf32>
    %660 = tpu.matmul %615, %659, %cst_411 {dimension_numbers = #tpu.dot_dimension_numbers<[1], [0], [0], [1], [0, 0, 1, 1], [], []>} : vector<16x128xf32>, vector<128x128xf32>, vector<16x128xf32> -> vector<16x128xf32>
    %661 = arith.addf %657, %660 : vector<16x128xf32>
    %c3_412 = arith.constant 3 : index
    %c2_413 = arith.constant 2 : index
    %c0_414 = arith.constant 0 : index
    %c0_415 = arith.constant 0 : index
    %662 = vector.load %arg2[%c3_412, %c2_413, %c0_414, %c0_415] : memref<6x3x128x128xf32, #tpu.memory_space<vmem>>, vector<1x1x128x128xf32>
    %663 = vector.shape_cast %662 : vector<1x1x128x128xf32> to vector<128x128xf32>
    %cst_416 = arith.constant dense<0.000000e+00> : vector<16x128xf32>
    %664 = tpu.matmul %12, %615, %cst_416 {dimension_numbers = #tpu.dot_dimension_numbers<[1], [0], [0], [1], [0, 0, 1, 1], [], []>} : vector<16x16xf32>, vector<16x128xf32>, vector<16x128xf32> -> vector<16x128xf32>
    %cst_417 = arith.constant dense<0.000000e+00> : vector<16x128xf32>
    %665 = tpu.matmul %664, %663, %cst_417 {dimension_numbers = #tpu.dot_dimension_numbers<[1], [0], [0], [1], [0, 0, 1, 1], [], []>} : vector<16x128xf32>, vector<128x128xf32>, vector<16x128xf32> -> vector<16x128xf32>
    %666 = arith.addf %661, %665 : vector<16x128xf32>
    %cst_418 = arith.constant 0.000000e+00 : f32
    %667 = vector.broadcast %cst_418 : f32 to vector<16x128xf32>
    %668 = arith.maximumf %666, %667 : vector<16x128xf32>
    %669 = vector.extract_strided_slice %0 {offsets = [10, 0], sizes = [1, 128], strides = [1, 1]} : vector<12x128xf32> to vector<1x128xf32>
    %c4_419 = arith.constant 4 : index
    %c0_420 = arith.constant 0 : index
    %c0_421 = arith.constant 0 : index
    %c0_422 = arith.constant 0 : index
    %670 = vector.load %arg2[%c4_419, %c0_420, %c0_421, %c0_422] : memref<6x3x128x128xf32, #tpu.memory_space<vmem>>, vector<1x1x128x128xf32>
    %671 = vector.shape_cast %670 : vector<1x1x128x128xf32> to vector<128x128xf32>
    %cst_423 = arith.constant dense<0.000000e+00> : vector<16x128xf32>
    %672 = tpu.matmul %7, %668, %cst_423 {dimension_numbers = #tpu.dot_dimension_numbers<[1], [0], [0], [1], [0, 0, 1, 1], [], []>} : vector<16x16xf32>, vector<16x128xf32>, vector<16x128xf32> -> vector<16x128xf32>
    %cst_424 = arith.constant dense<0.000000e+00> : vector<16x128xf32>
    %673 = tpu.matmul %672, %671, %cst_424 {dimension_numbers = #tpu.dot_dimension_numbers<[1], [0], [0], [1], [0, 0, 1, 1], [], []>} : vector<16x128xf32>, vector<128x128xf32>, vector<16x128xf32> -> vector<16x128xf32>
    %674 = vector.broadcast %669 : vector<1x128xf32> to vector<16x128xf32>
    %675 = arith.addf %674, %673 : vector<16x128xf32>
    %c4_425 = arith.constant 4 : index
    %c1_426 = arith.constant 1 : index
    %c0_427 = arith.constant 0 : index
    %c0_428 = arith.constant 0 : index
    %676 = vector.load %arg2[%c4_425, %c1_426, %c0_427, %c0_428] : memref<6x3x128x128xf32, #tpu.memory_space<vmem>>, vector<1x1x128x128xf32>
    %677 = vector.shape_cast %676 : vector<1x1x128x128xf32> to vector<128x128xf32>
    %cst_429 = arith.constant dense<0.000000e+00> : vector<16x128xf32>
    %678 = tpu.matmul %668, %677, %cst_429 {dimension_numbers = #tpu.dot_dimension_numbers<[1], [0], [0], [1], [0, 0, 1, 1], [], []>} : vector<16x128xf32>, vector<128x128xf32>, vector<16x128xf32> -> vector<16x128xf32>
    %679 = arith.addf %675, %678 : vector<16x128xf32>
    %c4_430 = arith.constant 4 : index
    %c2_431 = arith.constant 2 : index
    %c0_432 = arith.constant 0 : index
    %c0_433 = arith.constant 0 : index
    %680 = vector.load %arg2[%c4_430, %c2_431, %c0_432, %c0_433] : memref<6x3x128x128xf32, #tpu.memory_space<vmem>>, vector<1x1x128x128xf32>
    %681 = vector.shape_cast %680 : vector<1x1x128x128xf32> to vector<128x128xf32>
    %cst_434 = arith.constant dense<0.000000e+00> : vector<16x128xf32>
    %682 = tpu.matmul %12, %668, %cst_434 {dimension_numbers = #tpu.dot_dimension_numbers<[1], [0], [0], [1], [0, 0, 1, 1], [], []>} : vector<16x16xf32>, vector<16x128xf32>, vector<16x128xf32> -> vector<16x128xf32>
    %cst_435 = arith.constant dense<0.000000e+00> : vector<16x128xf32>
    %683 = tpu.matmul %682, %681, %cst_435 {dimension_numbers = #tpu.dot_dimension_numbers<[1], [0], [0], [1], [0, 0, 1, 1], [], []>} : vector<16x128xf32>, vector<128x128xf32>, vector<16x128xf32> -> vector<16x128xf32>
    %684 = arith.addf %679, %683 : vector<16x128xf32>
    %685 = arith.addf %650, %684 : vector<16x128xf32>
    %686 = vector.extract_strided_slice %0 {offsets = [11, 0], sizes = [1, 128], strides = [1, 1]} : vector<12x128xf32> to vector<1x128xf32>
    %c5_436 = arith.constant 5 : index
    %c0_437 = arith.constant 0 : index
    %c0_438 = arith.constant 0 : index
    %c0_439 = arith.constant 0 : index
    %687 = vector.load %arg2[%c5_436, %c0_437, %c0_438, %c0_439] : memref<6x3x128x128xf32, #tpu.memory_space<vmem>>, vector<1x1x128x128xf32>
    %688 = vector.shape_cast %687 : vector<1x1x128x128xf32> to vector<128x128xf32>
    %cst_440 = arith.constant dense<0.000000e+00> : vector<16x128xf32>
    %689 = tpu.matmul %7, %685, %cst_440 {dimension_numbers = #tpu.dot_dimension_numbers<[1], [0], [0], [1], [0, 0, 1, 1], [], []>} : vector<16x16xf32>, vector<16x128xf32>, vector<16x128xf32> -> vector<16x128xf32>
    %cst_441 = arith.constant dense<0.000000e+00> : vector<16x128xf32>
    %690 = tpu.matmul %689, %688, %cst_441 {dimension_numbers = #tpu.dot_dimension_numbers<[1], [0], [0], [1], [0, 0, 1, 1], [], []>} : vector<16x128xf32>, vector<128x128xf32>, vector<16x128xf32> -> vector<16x128xf32>
    %691 = vector.broadcast %686 : vector<1x128xf32> to vector<16x128xf32>
    %692 = arith.addf %691, %690 : vector<16x128xf32>
    %c5_442 = arith.constant 5 : index
    %c1_443 = arith.constant 1 : index
    %c0_444 = arith.constant 0 : index
    %c0_445 = arith.constant 0 : index
    %693 = vector.load %arg2[%c5_442, %c1_443, %c0_444, %c0_445] : memref<6x3x128x128xf32, #tpu.memory_space<vmem>>, vector<1x1x128x128xf32>
    %694 = vector.shape_cast %693 : vector<1x1x128x128xf32> to vector<128x128xf32>
    %cst_446 = arith.constant dense<0.000000e+00> : vector<16x128xf32>
    %695 = tpu.matmul %685, %694, %cst_446 {dimension_numbers = #tpu.dot_dimension_numbers<[1], [0], [0], [1], [0, 0, 1, 1], [], []>} : vector<16x128xf32>, vector<128x128xf32>, vector<16x128xf32> -> vector<16x128xf32>
    %696 = arith.addf %692, %695 : vector<16x128xf32>
    %c5_447 = arith.constant 5 : index
    %c2_448 = arith.constant 2 : index
    %c0_449 = arith.constant 0 : index
    %c0_450 = arith.constant 0 : index
    %697 = vector.load %arg2[%c5_447, %c2_448, %c0_449, %c0_450] : memref<6x3x128x128xf32, #tpu.memory_space<vmem>>, vector<1x1x128x128xf32>
    %698 = vector.shape_cast %697 : vector<1x1x128x128xf32> to vector<128x128xf32>
    %cst_451 = arith.constant dense<0.000000e+00> : vector<16x128xf32>
    %699 = tpu.matmul %12, %685, %cst_451 {dimension_numbers = #tpu.dot_dimension_numbers<[1], [0], [0], [1], [0, 0, 1, 1], [], []>} : vector<16x16xf32>, vector<16x128xf32>, vector<16x128xf32> -> vector<16x128xf32>
    %cst_452 = arith.constant dense<0.000000e+00> : vector<16x128xf32>
    %700 = tpu.matmul %699, %698, %cst_452 {dimension_numbers = #tpu.dot_dimension_numbers<[1], [0], [0], [1], [0, 0, 1, 1], [], []>} : vector<16x128xf32>, vector<128x128xf32>, vector<16x128xf32> -> vector<16x128xf32>
    %701 = arith.addf %696, %700 : vector<16x128xf32>
    %c0_453 = arith.constant 0 : index
    %c0_454 = arith.constant 0 : index
    %702 = vector.load %arg6[%c0_453, %c0_454] : memref<16x128xf32, #tpu.memory_space<vmem>>, vector<16x128xf32>
    tpu.vector_store %arg6[%c0_453, %c0_454], %701 {strides = array<i32>} : memref<16x128xf32, #tpu.memory_space<vmem>>, vector<16x128xf32>,
    return
  }
}

</mosaic_0001>

<bundles_post_ra>
// kernel: tpu_custom_call.1
= control target key start
LH: loop header
LB: loop body
LE: loop exit
PB: predicated region body
PF: predicated region fallthrough
CT: control target
= control target key end

     0   :  { %11 = vsyncpa [#allocation3], 0  ;;  %s5299_s0 = inlined_call_operand.hbm [shape: f32[16,32], index: 0, kind: input, shape index: {}]   ;;  %s5300_s1 = inlined_call_operand.hbm [shape: f32[6,3,32,32], index: 1, kind: input, shape index: {}]   ;;  %s5301_s2 = inlined_call_operand.hbm [shape: f32[6,3,128,128], index: 2, kind: input, shape index: {}]   ;;  %s5302_s3 = inlined_call_operand.hbm [shape: f32[12,128], index: 3, kind: input, shape index: {}]   ;;  %s5303_s4 = inlined_call_operand.hbm [shape: f32[2,18,64,64], index: 4, kind: input, shape index: {}]   ;;  %s5304_s5 = inlined_call_operand.vmem [shape: f32[2,19,64], index: 5, kind: input, shape index: {}]   ;;  %s5305_s6 = inlined_call_operand.hbm [shape: f32[16,128], index: 6, kind: output, shape index: {}]  }
   0x1   :  { %12 = vsyncpa [#allocation6], 0 }
   0x2   :  { %13 = vsyncpa [#allocation9], 0 }
   0x3   :  { %14 = vsyncpa [#allocation4], 0  ;;  %s32_s23 = sshll.u32 %s5300_s1, 4  ;;  %s4573_s24 = smov [#allocation5]   ;;  %s33_s23 = int_to_ptr.hbm [resolvable:$true] %s32_s23 }
   0x4   :  { %s34_s25 = sshll.u32 %s4573_s24, 4  ;;  %s58_s28 = sshll.u32 %s5302_s3, 4  ;;  %s35_s25 = int_to_ptr.vmem [resolvable:$true] %s34_s25  ;;  %s59_s28 = int_to_ptr.hbm [resolvable:$true] %s58_s28 }
   0x5   :  { %s4574_s29 = smov 128   ;;  %s4575_s30 = smov 8  }
   0x6   :  { %40 = dma.hbm_to_vmem [thread:$0]  %s33_s23, 9216, %s35_s25, [#allocation6], %s4574_s29, %s4574_s29, %s4575_s30  }
   0x7   :  { %s4576_s7 = smov [#allocation8]   ;;  %s19_s1 = sshll.u32 %s5299_s0, 4  ;;  %s20_s1 = int_to_ptr.hbm [resolvable:$true] %s19_s1 }
   0x8   :  { %s60_s8 = sshll.u32 %s4576_s7, 4  ;;  %s45_s12 = sshll.u32 %s5301_s2, 4  ;;  %s61_s8 = int_to_ptr.vmem [resolvable:$true] %s60_s8  ;;  %s46_s12 = int_to_ptr.hbm [resolvable:$true] %s45_s12 }
   0x9   :  { %66 = dma.hbm_to_vmem [thread:$0]  %s59_s28, 256, %s61_s8, [#allocation9], %s4574_s29, %s4574_s29, %s4575_s30  }
   0xa   :  { %s4577_s13 = smov [#allocation2]   ;;  %s4578_s15 = smov [#allocation7]  }
   0xb   :  { %s21_s14 = sshll.u32 %s4577_s13, 4  ;;  %s47_s0 = sshll.u32 %s4578_s15, 4  ;;  %s22_s14 = int_to_ptr.vmem [resolvable:$true] %s21_s14  ;;  %s48_s0 = int_to_ptr.vmem [resolvable:$true] %s47_s0 }
   0xc   :  { %27 = dma.hbm_to_vmem [thread:$0]  %s20_s1, 256, %s22_s14, [#allocation3], %s4574_s29, %s4574_s29, %s4575_s30  }
   0xd   :  { %s71_s18 = sshll.u32 %s5303_s4, 4  ;;  %s4579_s2 = smov [#allocation10]   ;;  %s72_s18 = int_to_ptr.hbm [resolvable:$true] %s71_s18 }
   0xe   :  { %53 = dma.hbm_to_vmem [thread:$0]  %s46_s12, 36864, %s48_s0, [#allocation6], %s4574_s29, %s4574_s29, %s4575_s30  }
   0xf   :  { %s73_s19 = sshll.u32 %s4579_s2, 4  ;;  %s74_s19 = int_to_ptr.vmem [resolvable:$true] %s73_s19 }
  0x10   :  { %79 = dma.hbm_to_vmem [thread:$0]  %s72_s18, 36864, %s74_s19, [#allocation9], %s4574_s29, %s4574_s29, %s4575_s30  }
  0x11   :  { %4565 = dma.done.wait [#allocation3], 256  }
  0x12   :  { %4566 = vsyncadd [#allocation3], 4294967040 }
  0x13   :  { %4567 = dma.done.wait [#allocation6], 46080  }
  0x14   :  { %4568 = vsyncadd [#allocation6], 4294921216 }
  0x15   :  { %4569 = dma.done.wait [#allocation9], 37120  }
  0x16   :  { %4570 = vsyncadd [#allocation9], 4294930176  ;;  %v104_v0 = vlaneseq  ;;  %v128_v6 = vld [vmem:[#allocation2 + $0x8] sm:$0xff]  ;;  %v127_v7 = vld [vmem:[#allocation2] sm:$0xff]  ;;  %v4580_v9 = vmov 0.0   ;;  %vm133_vm2 = vcmask 130048  }
  0x17   :  { %v132_v8 = vld [vmem:[#allocation5 + $0x18] sm:$0xff]  ;;  %154 = vmatpush.msra.mxu0 %v128_v6  ;;  %257 = vmatpush.msra.mxu3 %v128_v6  ;;  %v131_v15 = vld [vmem:[#allocation5 + $0x10] sm:$0xff]  ;;  %v130_v16 = vld [vmem:[#allocation5 + $0x8] sm:$0xff]  ;;  %vm163_vm5 = vcmask 261120   ;;  %vm1117_vm6 = vcmask 64512   ;;  %s4097_s3 = sshll.u32 %s5305_s6, 4  ;;  %s4098_s3 = int_to_ptr.hbm [resolvable:$true] %s4097_s3 }
  0x18   :  { %v4649_v1 = vshrl.u32 %v104_v0, 7  ;;  %v4651_v2 = vand.u32 127, %v104_v0  ;;  %v200_v12 = vld [vmem:[#allocation5 + $0x38] sm:$0xff]  ;;  %182 = vmatpush.msra.mxu1 %v132_v8  ;;  %v129_v19 = vld [vmem:[#allocation5] sm:$0xff]  ;;  %v199_v20 = vld [vmem:[#allocation5 + $0x30] sm:$0xff] }
  0x19   :  { %4321 = vmatpush.msra.mxu2 %v200_v12  ;;  %155 = vmatpush.msra.mxu0 %v127_v7  ;;  %v236_v21 = vld [vmem:[#allocation5 + $0x58] sm:$0xff]  ;;  %v198_v22 = vld [vmem:[#allocation5 + $0x28] sm:$0xff]  ;;  %v235_v23 = vld [vmem:[#allocation5 + $0x50] sm:$0xff] }
  0x1a   :  { %v109_v3 = vadd.s32 4294967295, %v4649_v1  ;;  %v117_v4 = vadd.s32 1, %v4649_v1  ;;  %v4656_v5 = vadd.s32 8, %v4649_v1  ;;  %258 = vmatpush.msra.mxu3 %v127_v7  ;;  %183 = vmatpush.msra.mxu1 %v131_v15  ;;  %v197_v24 = vld [vmem:[#allocation5 + $0x20] sm:$0xff]  ;;  %v234_v25 = vld [vmem:[#allocation5 + $0x48] sm:$0xff]  ;;  %v363_v31 = vld [vmem:[#allocation5 + $0x98] sm:$0xff]  ;;  %vm4833_vm7 = vcmp.ge.s32.totalorder %v4649_v1, %v4651_v2 }
  0x1b   :  { %4322 = vmatpush.msra.mxu2 %v199_v20  ;;  %284 = vmatpush.msrb.mxu0 %v236_v21  ;;  %v233_v26 = vld [vmem:[#allocation5 + $0x40] sm:$0xff]  ;;  %v362_v32 = vld [vmem:[#allocation5 + $0x90] sm:$0xff]  ;;  %v361_v33 = vld [vmem:[#allocation5 + $0x88] sm:$0xff] }
  0x1c   :  { %vm111_vm0 = vcmp.eq.s32.totalorder %v4651_v2, %v109_v3  ;;  %vm119_vm1 = vcmp.eq.s32.totalorder %v4651_v2, %v117_v4  ;;  %v110_v13 = vadd.s32 4294967295, %v4656_v5  ;;  %v118_v14 = vadd.s32 1, %v4656_v5  ;;  %184 = vmatpush.msra.mxu1 %v130_v16  ;;  %v360_v34 = vld [vmem:[#allocation5 + $0x80] sm:$0xff]  ;;  %v303_v36 = vld [vmem:[#allocation5 + $0x78] sm:$0xff]  ;;  %v302_v37 = vld [vmem:[#allocation5 + $0x70] sm:$0xff] }
  0x1d   :  { %v4660_v10 = vsel %vm111_vm0, 1.0, %v4580_v9  ;;  %v4662_v11 = vsel %vm119_vm1, 1.0, %v4580_v9  ;;  %4323 = vmatpush.msra.mxu2 %v198_v22  ;;  %285 = vmatpush.msrb.mxu0 %v235_v23  ;;  %v301_v38 = vld [vmem:[#allocation5 + $0x68] sm:$0xff]  ;;  %v4686_v39 = vld [vmem:[#allocation8] sm:$0xff]  ;;  %v399_v54 = vld [vmem:[#allocation5 + $0xb8] sm:$0xff]  ;;  %vm4842_vm8 = vcmp.ge.s32.totalorder %v4656_v5, %v4651_v2  ;;  %vm1974_vm0 = vcmask 523264  }
  0x1e   :  { %4116 = vmatmul.msk.f32.vlgmr.msra.gmra.mxu0 %vm133_vm2, %v4660_v10  ;;  %4122 = vmatmul.msk.f32.vlgmr.msra.gmra.mxu3 %vm133_vm2, %v4662_v11  ;;  %vm112_vm3 = vcmp.eq.s32.totalorder %v4651_v2, %v110_v13  ;;  %vm120_vm4 = vcmp.eq.s32.totalorder %v4651_v2, %v118_v14  ;;  %v193_v41 = vperm.slane %v4686_v39, 0  ;;  %v398_v55 = vld [vmem:[#allocation5 + $0xb0] sm:$0xff]  ;;  %v397_v56 = vld [vmem:[#allocation5 + $0xa8] sm:$0xff]  ;;  %v396_v57 = vld [vmem:[#allocation5 + $0xa0] sm:$0xff] }
  0x1f   :  { %v4672_v17 = vsel %vm112_vm3, 1.0, %v4580_v9  ;;  %v4674_v18 = vsel %vm120_vm4, 1.0, %v4580_v9  ;;  %185 = vmatpush.msra.mxu1 %v129_v19  ;;  %4324 = vmatpush.msra.mxu2 %v197_v24  ;;  %v300_v58 = vld [vmem:[#allocation5 + $0x60] sm:$0xff]  ;;  %v520_v63 = vld [vmem:[#allocation5 + $0xf8] sm:$0xff]  ;;  %v519_v0 = vld [vmem:[#allocation5 + $0xf0] sm:$0xff] }
  0x20   :  { %286 = vmatpush.msrb.mxu0 %v234_v25  ;;  %4121 = vmatmul.msk.f32.vlgmr.msra.gmra.mxu2 %vm163_vm5, %v128_v6  ;;  %v518_v3 = vld [vmem:[#allocation5 + $0xe8] sm:$0xff]  ;;  %v517_v4 = vld [vmem:[#allocation5 + $0xe0] sm:$0xff]  ;;  %v648_v6 = vld [vmem:[#allocation5 + $0x158] sm:$0xff] }
  0x21   :  { %219 = vmatpush.msrb.mxu1 %v200_v12  ;;  %382 = vmatpush.msrb.mxu2 %v363_v31  ;;  %v646_v8 = vld [vmem:[#allocation5 + $0x148] sm:$0xff]  ;;  %v645_v9 = vld [vmem:[#allocation5 + $0x140] sm:$0xff]  ;;  %v356_v12 = vperm.slane %v4686_v39, 1 }
  0x22   :  { %287 = vmatpush.msrb.mxu0 %v233_v26  ;;  %v676_v31 = vld [vmem:[#allocation5 + $0x168] sm:$0xff] }
  0x23   :  { %220 = vmatpush.msrb.mxu1 %v199_v20  ;;  %383 = vmatpush.msrb.mxu2 %v362_v32  ;;  %v675_v32 = vld [vmem:[#allocation5 + $0x160] sm:$0xff] }
  0x25   :  { %221 = vmatpush.msrb.mxu1 %v198_v22  ;;  %384 = vmatpush.msrb.mxu2 %v361_v33  ;;  %v460_v33 = vld [vmem:[#allocation5 + $0xd8] sm:$0xff] }
  0x26   :  { %4117 = vmatmul.msk.f32.gmra.mxu0 %vm133_vm2, %v4672_v17  ;;  %4123 = vmatmul.msk.f32.gmra.mxu3 %vm133_vm2, %v4674_v18 }
  0x27   :  { %222 = vmatpush.msrb.mxu1 %v197_v24  ;;  %385 = vmatpush.msrb.mxu2 %v360_v34  ;;  %v459_v34 = vld [vmem:[#allocation5 + $0xd0] sm:$0xff] }
  0x29   :  { %502 = vmatpush.msra.mxu2 %v460_v33  ;;  %v926_v33 = vld [vmem:[#allocation5 + $0x210] sm:$0xff] }
  0x2b   :  { %503 = vmatpush.msra.mxu2 %v459_v34  ;;  %v925_v34 = vld [vmem:[#allocation5 + $0x208] sm:$0xff] }
  0x9b   :  { %v157_v27 = vpop.f32.mrf.mxu0 }
  0x9c   :  { %4118 = vmatmul.msk.f32.vlgmr.msra.gmra.mxu1 %vm163_vm5, %v157_v27 }
  0x9d   :  { %345 = vmatpush.msra.mxu1 %v303_v36  ;;  %v457_v36 = vld [vmem:[#allocation5 + $0xc0] sm:$0xff] }
  0x9f   :  { %346 = vmatpush.msra.mxu1 %v302_v37  ;;  %v556_v37 = vld [vmem:[#allocation5 + $0x118] sm:$0xff] }
  0xa1   :  { %v260_v28 = vpop.f32.mrf.mxu3  ;;  %347 = vmatpush.msra.mxu1 %v301_v38  ;;  %v555_v38 = vld [vmem:[#allocation5 + $0x110] sm:$0xff] }
  0xa2   :  { %4124 = vmatmul.msk.f32.vlgmr.msrb.gmra.mxu0 %vm163_vm5, %v260_v28 }
  0xa3   :  { %v160_v29 = vpop.f32.mrf.mxu0  ;;  %v227_v44 = vpop.f32.mrf.mxu2  ;;  %348 = vmatpush.msra.mxu1 %v300_v58 }
  0xa4   :  { %4119 = vmatmul.msk.f32.gmra.mxu1 %vm163_vm5, %v160_v29  ;;  %v678_v29 = vld [vmem:[#allocation5 + $0x178] sm:$0xff] }
  0xa9   :  { %v263_v30 = vpop.f32.mrf.mxu3 }
  0xaa   :  { %4125 = vmatmul.msk.f32.gmra.mxu0 %vm163_vm5, %v263_v30  ;;  %v677_v30 = vld [vmem:[#allocation5 + $0x170] sm:$0xff] }
  0xac   :  { %4120 = vmatmul.msk.f32.vlgmr.msrb.gmra.mxu1 %vm163_vm5, %v127_v7  ;;  %v647_v7 = vld [vmem:[#allocation5 + $0x150] sm:$0xff] }
 0x119   :  { %v187_v35 = vpop.f32.mrf.mxu1 }
 0x11a   :  { %v194_v47 = vadd.f32 %v193_v41, %v187_v35  ;;  %v458_v35 = vld [vmem:[#allocation5 + $0xc8] sm:$0xff] }
 0x11b   :  { %504 = vmatpush.msra.mxu2 %v458_v35  ;;  %v924_v35 = vld [vmem:[#allocation5 + $0x200] sm:$0xff] }
 0x11d   :  { %505 = vmatpush.msra.mxu2 %v457_v36  ;;  %v513_v36 = vperm.slane %v4686_v39, 2 }
 0x11f   :  { %v289_v40 = vpop.f32.mrf.mxu0 }
 0x121   :  { %v190_v42 = vpop.f32.mrf.mxu1 }
 0x122   :  { %v195_v43 = vadd.f32 %v193_v41, %v190_v42  ;;  %v553_v41 = vld [vmem:[#allocation5 + $0x100] sm:$0xff]  ;;  %v617_v42 = vld [vmem:[#allocation5 + $0x138] sm:$0xff] }
 0x124   :  { %v231_v45 = vadd.f32 %v227_v44, %v195_v43  ;;  %v616_v43 = vld [vmem:[#allocation5 + $0x130] sm:$0xff]  ;;  %v615_v44 = vld [vmem:[#allocation5 + $0x128] sm:$0xff] }
 0x127   :  { %v292_v46 = vpop.f32.mrf.mxu0 }
 0x128   :  { %v296_v48 = vadd.f32 %v292_v46, %v231_v45  ;;  %v614_v45 = vld [vmem:[#allocation5 + $0x120] sm:$0xff] }
 0x129   :  { %v224_v49 = vpop.f32.mrf.mxu1 }
 0x12a   :  { %v4689_v50 = vmax.f32 %v296_v48, 0.0  ;;  %v230_v51 = vadd.f32 %v224_v49, %v194_v47 }
 0x12c   :  { %v295_v52 = vadd.f32 %v289_v40, %v230_v51  ;;  %318 = vmatpush.msrb.mxu3 %v4689_v50  ;;  %414 = vmatpush.msra.mxu0 %v4689_v50  ;;  %v554_v40 = vld [vmem:[#allocation5 + $0x108] sm:$0xff]  ;;  %v770_v51 = vld [vmem:[#allocation5 + $0x1b8] sm:$0xff] }
 0x12e   :  { %v4693_v53 = vmax.f32 %v295_v52, 0.0  ;;  %v769_v52 = vld [vmem:[#allocation5 + $0x1b0] sm:$0xff] }
 0x130   :  { %319 = vmatpush.msrb.mxu3 %v4693_v53  ;;  %4130 = vmatmul.msk.f32.vlgmr.msrb.gmra.mxu2 %vm163_vm5, %v4693_v53 }
 0x131   :  { %415 = vmatpush.msra.mxu0 %v4693_v53  ;;  %4126 = vmatmul.msk.f32.vlgmr.msrb.gmra.mxu3 %vm133_vm2, %v4660_v10 }
 0x132   :  { %4132 = vmatmul.msk.f32.vlgmr.msra.gmra.mxu0 %vm133_vm2, %v4662_v11  ;;  %441 = vmatpush.msra.mxu3 %v399_v54  ;;  %v768_v54 = vld [vmem:[#allocation5 + $0x1a8] sm:$0xff] }
 0x133   :  { %539 = vmatpush.msrb.mxu0 %v520_v63  ;;  %630 = vmatpush.msrb.mxu2 %v617_v42 }
 0x134   :  { %442 = vmatpush.msra.mxu3 %v398_v55  ;;  %v767_v55 = vld [vmem:[#allocation5 + $0x1a0] sm:$0xff] }
 0x135   :  { %540 = vmatpush.msrb.mxu0 %v519_v0  ;;  %631 = vmatpush.msrb.mxu2 %v616_v43 }
 0x136   :  { %443 = vmatpush.msra.mxu3 %v397_v56 }
 0x137   :  { %541 = vmatpush.msrb.mxu0 %v518_v3  ;;  %632 = vmatpush.msrb.mxu2 %v615_v44 }
 0x138   :  { %4131 = vmatmul.msk.f32.gmra.mxu2 %vm163_vm5, %v4689_v50  ;;  %444 = vmatpush.msra.mxu3 %v396_v57 }
 0x139   :  { %4127 = vmatmul.msk.f32.gmra.mxu3 %vm133_vm2, %v4672_v17  ;;  %542 = vmatpush.msrb.mxu0 %v517_v4 }
 0x13a   :  { %4133 = vmatmul.msk.f32.gmra.mxu0 %vm133_vm2, %v4674_v18  ;;  %633 = vmatpush.msrb.mxu2 %v614_v45 }
 0x13b   :  { %661 = vmatpush.msra.mxu0 %v648_v6 }
 0x13d   :  { %662 = vmatpush.msra.mxu0 %v647_v7 }
 0x13f   :  { %663 = vmatpush.msra.mxu0 %v646_v8 }
 0x141   :  { %664 = vmatpush.msra.mxu0 %v645_v9 }
 0x1af   :  { %v417_v59 = vpop.f32.mrf.mxu0 }
 0x1b0   :  { %4134 = vmatmul.msk.f32.vlgmr.msra.gmra.mxu3 %vm163_vm5, %v417_v59 }
 0x1b3   :  { %v387_v13 = vpop.f32.mrf.mxu2 }
 0x1b4   :  { %v4710_v60 = vpop.f32.mrf.mxu3 }
 0x1b5   :  { %4128 = vmatmul.msk.f32.vlgmr.msra.gmra.mxu1 %vm163_vm5, %v4710_v60 }
 0x1b7   :  { %v420_v61 = vpop.f32.mrf.mxu0 }
 0x1b8   :  { %4135 = vmatmul.msk.f32.gmra.mxu3 %vm163_vm5, %v420_v61 }
 0x1bb   :  { %v390_v24 = vpop.f32.mrf.mxu2 }
 0x1bc   :  { %v4715_v62 = vpop.f32.mrf.mxu3 }
 0x1bd   :  { %4129 = vmatmul.msk.f32.gmra.mxu1 %vm163_vm5, %v4715_v62 }
 0x232   :  { %v350_v14 = vpop.f32.mrf.mxu1 }
 0x233   :  { %v357_v15 = vadd.f32 %v356_v12, %v350_v14  ;;  %v446_v16 = vpop.f32.mrf.mxu3 }
 0x235   :  { %v393_v19 = vadd.f32 %v387_v13, %v357_v15 }
 0x237   :  { %v452_v20 = vadd.f32 %v446_v16, %v393_v19  ;;  %v710_v16 = vld [vmem:[#allocation5 + $0x198] sm:$0xff]  ;;  %v709_v19 = vld [vmem:[#allocation5 + $0x190] sm:$0xff] }
 0x239   :  { %v454_v21 = vmax.f32 %v452_v20, 0.0  ;;  %v708_v20 = vld [vmem:[#allocation5 + $0x188] sm:$0xff] }
 0x23a   :  { %v353_v22 = vpop.f32.mrf.mxu1 }
 0x23b   :  { %v358_v23 = vadd.f32 %v356_v12, %v353_v22  ;;  %4140 = vmatmul.msk.f32.vlgmr.msrb.gmra.mxu0 %vm163_vm5, %v454_v21  ;;  %v449_v25 = vpop.f32.mrf.mxu3  ;;  %v806_v22 = vld [vmem:[#allocation5 + $0x1d8] sm:$0xff] }
 0x23c   :  { %789 = vmatpush.msrb.mxu0 %v770_v51 }
 0x23d   :  { %v394_v26 = vadd.f32 %v390_v24, %v358_v23  ;;  %v805_v23 = vld [vmem:[#allocation5 + $0x1d0] sm:$0xff]  ;;  %v804_v24 = vld [vmem:[#allocation5 + $0x1c8] sm:$0xff] }
 0x23e   :  { %790 = vmatpush.msrb.mxu0 %v769_v52 }
 0x23f   :  { %v453_v27 = vadd.f32 %v449_v25, %v394_v26  ;;  %v803_v25 = vld [vmem:[#allocation5 + $0x1c0] sm:$0xff] }
 0x240   :  { %791 = vmatpush.msrb.mxu0 %v768_v54 }
 0x241   :  { %v455_v28 = vmax.f32 %v453_v27, 0.0 }
 0x242   :  { %792 = vmatpush.msrb.mxu0 %v767_v55 }
 0x243   :  { %475 = vmatpush.msrb.mxu1 %v455_v28  ;;  %4141 = vmatmul.msk.f32.gmra.mxu0 %vm163_vm5, %v455_v28 }
 0x244   :  { %571 = vmatpush.msrb.mxu3 %v455_v28 }
 0x245   :  { %476 = vmatpush.msrb.mxu1 %v454_v21 }
 0x246   :  { %572 = vmatpush.msrb.mxu3 %v454_v21  ;;  %4136 = vmatmul.msk.f32.vlgmr.msrb.gmra.mxu1 %vm133_vm2, %v4660_v10  ;;  %v707_v21 = vld [vmem:[#allocation5 + $0x180] sm:$0xff] }
 0x247   :  { %4142 = vmatmul.msk.f32.vlgmr.msrb.gmra.mxu3 %vm133_vm2, %v4662_v11  ;;  %598 = vmatpush.msra.mxu1 %v556_v37 }
 0x248   :  { %691 = vmatpush.msra.mxu3 %v678_v29 }
 0x249   :  { %599 = vmatpush.msra.mxu1 %v555_v38 }
 0x24a   :  { %692 = vmatpush.msra.mxu3 %v677_v30 }
 0x24b   :  { %4148 = vmatmul.msk.f32.vlgmr.msra.gmra.mxu0 %vm163_vm5, %v4693_v53  ;;  %600 = vmatpush.msra.mxu1 %v554_v40  ;;  %v763_v40 = vperm.slane %v4686_v39, 4 }
 0x24c   :  { %693 = vmatpush.msra.mxu3 %v676_v31 }
 0x24d   :  { %601 = vmatpush.msra.mxu1 %v553_v41 }
 0x24e   :  { %4137 = vmatmul.msk.f32.gmra.mxu1 %vm133_vm2, %v4672_v17  ;;  %694 = vmatpush.msra.mxu3 %v675_v32  ;;  %v927_v32 = vld [vmem:[#allocation5 + $0x218] sm:$0xff] }
 0x24f   :  { %4143 = vmatmul.msk.f32.gmra.mxu3 %vm133_vm2, %v4674_v18 }
 0x253   :  { %4149 = vmatmul.msk.f32.gmra.mxu0 %vm163_vm5, %v4689_v50 }
 0x257   :  { %4150 = vmatmul.msk.f32.vlgmr.msra.gmra.mxu3 %vm163_vm5, %v417_v59 }
 0x25f   :  { %4151 = vmatmul.msk.f32.gmra.mxu3 %vm163_vm5, %v420_v61 }
 0x2b8   :  { %v4744_v56 = vpop.f32.mrf.mxu0 }
 0x2c0   :  { %v4748_v58 = vpop.f32.mrf.mxu0 }
 0x2c3   :  { %v478_v46 = vpop.f32.mrf.mxu1 }
 0x2c4   :  { %4138 = vmatmul.msk.f32.vlgmr.msra.gmra.mxu2 %vm163_vm5, %v478_v46 }
 0x2c5   :  { %752 = vmatpush.msra.mxu2 %v710_v16  ;;  %v1034_v16 = vld [vmem:[#allocation10 + $0x218] sm:$0xff] }
 0x2c7   :  { %753 = vmatpush.msra.mxu2 %v709_v19  ;;  %v1023_v19 = vld [vmem:[#allocation10 + $0x10] sm:$0xff] }
 0x2c8   :  { %v666_v61 = vpop.f32.mrf.mxu0 }
 0x2c9   :  { %754 = vmatpush.msra.mxu2 %v708_v20  ;;  %v1028_v20 = vld [vmem:[#allocation10 + $0x110] sm:$0xff] }
 0x2ca   :  { %v574_v47 = vpop.f32.mrf.mxu3 }
 0x2cb   :  { %v481_v48 = vpop.f32.mrf.mxu1  ;;  %4144 = vmatmul.msk.f32.vlgmr.msra.gmra.mxu1 %vm163_vm5, %v574_v47  ;;  %755 = vmatpush.msra.mxu2 %v707_v21  ;;  %v1033_v21 = vld [vmem:[#allocation10 + $0x210] sm:$0xff] }
 0x2cc   :  { %4139 = vmatmul.msk.f32.gmra.mxu2 %vm163_vm5, %v481_v48 }
 0x2d0   :  { %v669_v9 = vpop.f32.mrf.mxu0 }
 0x2d2   :  { %v577_v49 = vpop.f32.mrf.mxu3 }
 0x2d3   :  { %4145 = vmatmul.msk.f32.gmra.mxu1 %vm163_vm5, %v577_v49 }
 0x2d4   :  { %4146 = vmatmul.msk.f32.vlgmr.msrb.gmra.mxu2 %vm163_vm5, %v4710_v60  ;;  %v641_v60 = vperm.slane %v4686_v39, 3 }
 0x2da   :  { %v696_v0 = vpop.f32.mrf.mxu3 }
 0x2dc   :  { %4147 = vmatmul.msk.f32.gmra.mxu2 %vm163_vm5, %v4715_v62 }
 0x2e2   :  { %v699_v13 = vpop.f32.mrf.mxu3 }
 0x347   :  { %v4746_v57 = vpop.f32.mrf.mxu2 }
 0x348   :  { %v603_v26 = vpop.f32.mrf.mxu1  ;;  %v514_v37 = vadd.f32 %v513_v36, %v4746_v57 }
 0x34a   :  { %v550_v38 = vadd.f32 %v4744_v56, %v514_v37 }
 0x34c   :  { %v609_v43 = vadd.f32 %v603_v26, %v550_v38  ;;  %v1026_v26 = vld [vmem:[#allocation10 + $0x100] sm:$0xff] }
 0x34e   :  { %v611_v48 = vadd.f32 %v609_v43, %v4693_v53  ;;  %v867_v53 = vld [vmem:[#allocation5 + $0x1f8] sm:$0xff] }
 0x34f   :  { %v4750_v59 = vpop.f32.mrf.mxu2  ;;  %909 = vmatpush.msra.mxu0 %v867_v53  ;;  %v1246_v53 = vld [vmem:[#allocation10 + $0x150] sm:$0xff] }
 0x350   :  { %v606_v27 = vpop.f32.mrf.mxu1  ;;  %v515_v44 = vadd.f32 %v513_v36, %v4750_v59 }
 0x352   :  { %v551_v49 = vadd.f32 %v4748_v58, %v515_v44  ;;  %v962_v58 = vld [vmem:[#allocation5 + $0x230] sm:$0xff] }
 0x354   :  { %v610_v55 = vadd.f32 %v606_v27, %v551_v49  ;;  %v1031_v27 = vld [vmem:[#allocation10 + $0x200] sm:$0xff] }
 0x357   :  { %v635_v62 = vpop.f32.mrf.mxu2 }
 0x358   :  { %v642_v63 = vadd.f32 %v641_v60, %v635_v62  ;;  %v612_v62 = vadd.f32 %v610_v55, %v4689_v50  ;;  %v963_v50 = vld [vmem:[#allocation5 + $0x238] sm:$0xff] }
 0x35a   :  { %v672_v3 = vadd.f32 %v666_v61, %v642_v63 }
 0x35c   :  { %v702_v4 = vadd.f32 %v696_v0, %v672_v3  ;;  %v866_v0 = vld [vmem:[#allocation5 + $0x1f0] sm:$0xff]  ;;  %v961_v3 = vld [vmem:[#allocation5 + $0x228] sm:$0xff] }
 0x35d   :  { %910 = vmatpush.msra.mxu0 %v866_v0  ;;  %v1245_v0 = vld [vmem:[#allocation10 + $0x148] sm:$0xff] }
 0x35e   :  { %v704_v6 = vmax.f32 %v702_v4, 0.0  ;;  %v865_v4 = vld [vmem:[#allocation5 + $0x1e8] sm:$0xff] }
 0x35f   :  { %v638_v7 = vpop.f32.mrf.mxu2  ;;  %911 = vmatpush.msra.mxu0 %v865_v4  ;;  %v1244_v4 = vld [vmem:[#allocation10 + $0x140] sm:$0xff] }
 0x360   :  { %v643_v8 = vadd.f32 %v641_v60, %v638_v7  ;;  %4156 = vmatmul.msk.f32.vlgmr.msrb.gmra.mxu0 %vm163_vm5, %v704_v6  ;;  %v864_v7 = vld [vmem:[#allocation5 + $0x1e0] sm:$0xff] }
 0x361   :  { %912 = vmatpush.msra.mxu0 %v864_v7  ;;  %v1036_v7 = vld [vmem:[#allocation10 + $0x300] sm:$0xff] }
 0x362   :  { %v673_v12 = vadd.f32 %v669_v9, %v643_v8 }
 0x364   :  { %v703_v14 = vadd.f32 %v699_v13, %v673_v12 }
 0x366   :  { %v705_v15 = vmax.f32 %v703_v14, 0.0  ;;  %v1024_v14 = vld [vmem:[#allocation10 + $0x18] sm:$0xff] }
 0x367   :  { %1056 = vmatpush.msrb.mxu0 %v1024_v14  ;;  %v2713_v14 = vld [vmem:[#allocation10 + $0x840] sm:$0xff] }
 0x368   :  { %725 = vmatpush.msrb.mxu1 %v705_v15  ;;  %4157 = vmatmul.msk.f32.gmra.mxu0 %vm163_vm5, %v705_v15 }
 0x369   :  { %821 = vmatpush.msrb.mxu3 %v705_v15  ;;  %v1029_v15 = vld [vmem:[#allocation10 + $0x118] sm:$0xff]  ;;  %1057 = vmatpush.msrb.mxu0 %v1023_v19 }
 0x36a   :  { %726 = vmatpush.msrb.mxu1 %v704_v6 }
 0x36b   :  { %822 = vmatpush.msrb.mxu3 %v704_v6  ;;  %4152 = vmatmul.msk.f32.vlgmr.msrb.gmra.mxu1 %vm133_vm2, %v4660_v10  ;;  %v960_v6 = vld [vmem:[#allocation5 + $0x220] sm:$0xff] }
 0x36c   :  { %4158 = vmatmul.msk.f32.vlgmr.msrb.gmra.mxu3 %vm133_vm2, %v4662_v11  ;;  %848 = vmatpush.msra.mxu1 %v806_v22  ;;  %v1022_v22 = vld [vmem:[#allocation10 + $0x8] sm:$0xff] }
 0x36d   :  { %946 = vmatpush.msra.mxu3 %v927_v32  ;;  %1058 = vmatpush.msrb.mxu0 %v1022_v22  ;;  %v920_v32 = vperm.slane %v4686_v39, 5 }
 0x36e   :  { %849 = vmatpush.msra.mxu1 %v805_v23  ;;  %v1027_v23 = vld [vmem:[#allocation10 + $0x108] sm:$0xff] }
 0x36f   :  { %947 = vmatpush.msra.mxu3 %v926_v33 }
 0x370   :  { %850 = vmatpush.msra.mxu1 %v804_v24  ;;  %v1032_v24 = vld [vmem:[#allocation10 + $0x208] sm:$0xff] }
 0x371   :  { %948 = vmatpush.msra.mxu3 %v925_v34 }
 0x372   :  { %851 = vmatpush.msra.mxu1 %v803_v25  ;;  %v1021_v25 = vld [vmem:[#allocation10] sm:$0xff] }
 0x373   :  { %4153 = vmatmul.msk.f32.gmra.mxu1 %vm133_vm2, %v4672_v17  ;;  %949 = vmatpush.msra.mxu3 %v924_v35 }
 0x374   :  { %4159 = vmatmul.msk.f32.gmra.mxu3 %vm133_vm2, %v4674_v18  ;;  %1059 = vmatpush.msrb.mxu0 %v1021_v25 }
 0x375   :  { %1082 = vmatpush.msrb.mxu3 %v1029_v15 }
 0x377   :  { %1083 = vmatpush.msrb.mxu3 %v1028_v20 }
 0x379   :  { %1084 = vmatpush.msrb.mxu3 %v1027_v23 }
 0x37b   :  { %1085 = vmatpush.msrb.mxu3 %v1026_v26 }
 0x3dd   :  { %v794_v41 = vpop.f32.mrf.mxu0 }
 0x3e5   :  { %v797_v56 = vpop.f32.mrf.mxu0 }
 0x3e8   :  { %v728_v28 = vpop.f32.mrf.mxu1 }
 0x3e9   :  { %4154 = vmatmul.msk.f32.vlgmr.msra.gmra.mxu2 %vm163_vm5, %v728_v28  ;;  %v1242_v28 = vld [vmem:[#allocation10 + $0x58] sm:$0xff] }
 0x3ef   :  { %v824_v29 = vpop.f32.mrf.mxu3 }
 0x3f0   :  { %v731_v30 = vpop.f32.mrf.mxu1  ;;  %4160 = vmatmul.msk.f32.vlgmr.msra.gmra.mxu1 %vm163_vm5, %v824_v29  ;;  %v1241_v29 = vld [vmem:[#allocation10 + $0x50] sm:$0xff] }
 0x3f1   :  { %4155 = vmatmul.msk.f32.gmra.mxu2 %vm163_vm5, %v731_v30  ;;  %v1240_v30 = vld [vmem:[#allocation10 + $0x48] sm:$0xff] }
 0x3f7   :  { %v827_v31 = vpop.f32.mrf.mxu3 }
 0x3f8   :  { %4161 = vmatmul.msk.f32.gmra.mxu1 %vm163_vm5, %v827_v31  ;;  %v1239_v31 = vld [vmem:[#allocation10 + $0x40] sm:$0xff] }
 0x46c   :  { %v757_v42 = vpop.f32.mrf.mxu2 }
 0x46d   :  { %v764_v45 = vadd.f32 %v763_v40, %v757_v42  ;;  %v853_v46 = vpop.f32.mrf.mxu1 }
 0x46f   :  { %v800_v47 = vadd.f32 %v794_v41, %v764_v45 }
 0x471   :  { %v859_v51 = vadd.f32 %v853_v46, %v800_v47  ;;  %v4813_v46 = vld [vmem:[%s5304_s5 + $0x8] sm:$0xff] }
 0x473   :  { %v861_v52 = vadd.f32 %v859_v51, %v611_v48  ;;  %v1093_v48 = vperm.slane %v4813_v46, 0 }
 0x474   :  { %v760_v54 = vpop.f32.mrf.mxu2 }
 0x475   :  { %v765_v57 = vadd.f32 %v763_v40, %v760_v54  ;;  %4166 = vmatmul.msk.f32.vlgmr.msra.gmra.mxu3 %vm163_vm5, %v861_v52  ;;  %v856_v60 = vpop.f32.mrf.mxu1 }
 0x476   :  { %1227 = vmatpush.msra.mxu3 %v1036_v7 }
 0x477   :  { %v801_v61 = vadd.f32 %v797_v56, %v765_v57 }
 0x479   :  { %v860_v59 = vadd.f32 %v856_v60, %v801_v61 }
 0x47b   :  { %v862_v63 = vadd.f32 %v860_v59, %v612_v62 }
 0x47d   :  { %882 = vmatpush.msrb.mxu2 %v862_v63  ;;  %4167 = vmatmul.msk.f32.gmra.mxu3 %vm163_vm5, %v862_v63 }
 0x47e   :  { %978 = vmatpush.msrb.mxu1 %v862_v63  ;;  %v1247_v63 = vld [vmem:[#allocation10 + $0x158] sm:$0xff] }
 0x47f   :  { %883 = vmatpush.msrb.mxu2 %v861_v52 }
 0x480   :  { %979 = vmatpush.msrb.mxu1 %v861_v52  ;;  %4162 = vmatmul.msk.f32.vlgmr.msrb.gmra.mxu2 %vm133_vm2, %v4660_v10  ;;  %v4819_v52 = vld [vmem:[%s5304_s5] sm:$0xff] }
 0x481   :  { %4168 = vmatmul.msk.f32.vlgmr.msrb.gmra.mxu1 %vm133_vm2, %v4662_v11  ;;  %1005 = vmatpush.msra.mxu2 %v963_v50  ;;  %v1069_v57 = vperm.slane %v4819_v52, 4  ;;  %v1037_v56 = vperm.slane %v4819_v52, 0  ;;  %v1281_v20 = vperm.slane %v4819_v52, 5 }
 0x482   :  { %1106 = vmatpush.msra.mxu1 %v1034_v16 }
 0x483   :  { %1006 = vmatpush.msra.mxu2 %v962_v58 }
 0x484   :  { %1107 = vmatpush.msra.mxu1 %v1033_v21 }
 0x485   :  { %1007 = vmatpush.msra.mxu2 %v961_v3 }
 0x486   :  { %1108 = vmatpush.msra.mxu1 %v1032_v24 }
 0x487   :  { %1008 = vmatpush.msra.mxu2 %v960_v6 }
 0x488   :  { %4163 = vmatmul.msk.f32.gmra.mxu2 %vm133_vm2, %v4672_v17  ;;  %1109 = vmatpush.msra.mxu1 %v1031_v27 }
 0x489   :  { %4169 = vmatmul.msk.f32.gmra.mxu1 %vm133_vm2, %v4674_v18 }
 0x48a   :  { %1268 = vmatpush.msrb.mxu1 %v1242_v28 }
 0x48c   :  { %1269 = vmatpush.msrb.mxu1 %v1241_v29 }
 0x48e   :  { %1270 = vmatpush.msrb.mxu1 %v1240_v30 }
 0x490   :  { %1271 = vmatpush.msrb.mxu1 %v1239_v31 }
 0x4f8   :  { %v951_v33 = vpop.f32.mrf.mxu3 }
 0x4fe   :  { %v981_v8 = vpop.f32.mrf.mxu1 }
 0x4ff   :  { %4170 = vmatmul.msk.f32.vlgmr.msra.gmra.mxu2 %vm163_vm5, %v981_v8 }
 0x500   :  { %v954_v42 = vpop.f32.mrf.mxu3 }
 0x503   :  { %v885_v9 = vpop.f32.mrf.mxu2 }
 0x504   :  { %4164 = vmatmul.msk.f32.vlgmr.msra.gmra.mxu0 %vm163_vm5, %v885_v9 }
 0x506   :  { %v984_v12 = vpop.f32.mrf.mxu1 }
 0x507   :  { %4171 = vmatmul.msk.f32.gmra.mxu2 %vm163_vm5, %v984_v12 }
 0x50b   :  { %v888_v13 = vpop.f32.mrf.mxu2 }
 0x50c   :  { %4165 = vmatmul.msk.f32.gmra.mxu0 %vm163_vm5, %v888_v13 }
 0x581   :  { %v914_v34 = vpop.f32.mrf.mxu0 }
 0x582   :  { %v921_v35 = vadd.f32 %v920_v32, %v914_v34  ;;  %v1010_v36 = vpop.f32.mrf.mxu2  ;;  %v1250_v34 = vld [vmem:[#allocation10 + $0x248] sm:$0xff] }
 0x584   :  { %v957_v37 = vadd.f32 %v951_v33, %v921_v35  ;;  %v1251_v33 = vld [vmem:[#allocation10 + $0x250] sm:$0xff]  ;;  %v1249_v35 = vld [vmem:[#allocation10 + $0x240] sm:$0xff] }
 0x586   :  { %v4790_v38 = vadd.f32 %v1010_v36, %v957_v37 }
 0x588   :  { %4172 = vmatmul.msk.f32.vlgmr.msrb.gmra.mxu0 %vm163_vm5, %v4790_v38  ;;  %4174 = vmatmul.msk.f32.vlgmr.msrb.gmra.mxu3 %vm163_vm5, %v4790_v38 }
 0x589   :  { %4176 = vmatmul.msk.f32.vlgmr.msra.gmra.mxu1 %vm163_vm5, %v4790_v38  ;;  %v917_v40 = vpop.f32.mrf.mxu0 }
 0x58a   :  { %v922_v41 = vadd.f32 %v920_v32, %v917_v40  ;;  %v1013_v39 = vpop.f32.mrf.mxu2  ;;  %v1252_v32 = vld [vmem:[#allocation10 + $0x258] sm:$0xff] }
 0x58c   :  { %v958_v43 = vadd.f32 %v954_v42, %v922_v41  ;;  %v1452_v42 = vld [vmem:[#allocation10 + $0x98] sm:$0xff] }
 0x58e   :  { %v4798_v44 = vadd.f32 %v1013_v39, %v958_v43  ;;  %v1451_v39 = vld [vmem:[#allocation10 + $0x90] sm:$0xff]  ;;  %v1450_v43 = vld [vmem:[#allocation10 + $0x88] sm:$0xff] }
 0x590   :  { %4173 = vmatmul.msk.f32.gmra.mxu0 %vm163_vm5, %v4798_v44  ;;  %4175 = vmatmul.msk.f32.gmra.mxu3 %vm163_vm5, %v4798_v44 }
 0x591   :  { %4177 = vmatmul.msk.f32.gmra.mxu1 %vm163_vm5, %v4798_v44 }
 0x599   :  { %4186 = vmatmul.msk.f32.vlgmr.msrb.gmra.mxu1 %vm163_vm5, %v4790_v38 }
 0x5a1   :  { %4187 = vmatmul.msk.f32.gmra.mxu1 %vm163_vm5, %v4798_v44 }
 0x605   :  { %v1061_v55 = vpop.f32.mrf.mxu0 }
 0x606   :  { %v1111_v45 = vpop.f32.mrf.mxu1  ;;  %v1062_v62 = vadd.f32 %v1061_v55, %v1037_v56  ;;  %v1455_v55 = vld [vmem:[#allocation10 + $0x188] sm:$0xff] }
 0x607   :  { %v1112_v54 = vadd.f32 %v1111_v45, %v1093_v48  ;;  %v1449_v45 = vld [vmem:[#allocation10 + $0x80] sm:$0xff] }
 0x608   :  { %v1067_v50 = vmul.f32 0.35355338, %v1062_v62 }
 0x60b   :  { %v1087_v47 = vpop.f32.mrf.mxu3 }
 0x60c   :  { %v1088_v59 = vadd.f32 %v1087_v47, %v1069_v57 }
 0x60d   :  { %v1064_v58 = vpop.f32.mrf.mxu0 }
 0x60e   :  { %v1114_v49 = vpop.f32.mrf.mxu1  ;;  %v1065_v3 = vadd.f32 %v1064_v58, %v1037_v56 }
 0x60f   :  { %v1115_v51 = vadd.f32 %v1114_v49, %v1093_v48  ;;  %v1457_v49 = vld [vmem:[#allocation10 + $0x198] sm:$0xff] }
 0x610   :  { %v1068_v6 = vmul.f32 0.35355338, %v1065_v3 }
 0x611   :  { %1197 = vmatpush.msra.mxu0 %v1115_v51 }
 0x613   :  { %1198 = vmatpush.msra.mxu0 %v1112_v54  ;;  %v1090_v60 = vpop.f32.mrf.mxu3  ;;  %v1456_v54 = vld [vmem:[#allocation10 + $0x190] sm:$0xff] }
 0x614   :  { %v1091_v61 = vadd.f32 %v1090_v60, %v1069_v57  ;;  %v1454_v57 = vld [vmem:[#allocation10 + $0x180] sm:$0xff]  ;;  %v1255_v60 = vperm.slane %v4819_v52, 1 }
 0x615   :  { %1318 = vmatpush.msrb.mxu0 %v1252_v32 }
 0x616   :  { %4178 = vmatpush.xpose.msk.msrb.mxu2 %vm1117_vm6, %v1091_v61  ;;  %v1273_v56 = vpop.f32.mrf.mxu1 }
 0x617   :  { %1319 = vmatpush.msrb.mxu0 %v1251_v33  ;;  %v1274_v62 = vadd.f32 %v1273_v56, %v1255_v60  ;;  %v1665_v56 = vld [vmem:[#allocation10 + $0x1c8] sm:$0xff] }
 0x619   :  { %1320 = vmatpush.msrb.mxu0 %v1250_v34  ;;  %v1462_v34 = vld [vmem:[#allocation10 + $0x298] sm:$0xff] }
 0x61a   :  { %4179 = vmatpush.xpose.msk.msrb.mxu2 %vm1117_vm6, %v1088_v59  ;;  %v1279_v59 = vmul.f32 0.35355338, %v1274_v62  ;;  %v1465_v62 = vperm.slane %v4819_v52, 2 }
 0x61b   :  { %1321 = vmatpush.msrb.mxu0 %v1249_v35  ;;  %v1461_v35 = vld [vmem:[#allocation10 + $0x290] sm:$0xff] }
 0x61d   :  { %4180 = vmatmul.msk.f32.vlgmr.msrb.gmra.mxu2 %vm1117_vm6, %v1067_v50 }
 0x61e   :  { %1294 = vmatpush.msra.mxu2 %v1247_v63  ;;  %v1276_v63 = vpop.f32.mrf.mxu1 }
 0x620   :  { %1295 = vmatpush.msra.mxu2 %v1246_v53  ;;  %v1277_v53 = vadd.f32 %v1276_v63, %v1255_v60  ;;  %v1664_v60 = vld [vmem:[#allocation10 + $0x1c0] sm:$0xff] }
 0x622   :  { %1296 = vmatpush.msra.mxu2 %v1245_v0  ;;  %v1280_v58 = vmul.f32 0.35355338, %v1277_v53  ;;  %v1305_v0 = vperm.slane %v4813_v46, 1 }
 0x624   :  { %1297 = vmatpush.msra.mxu2 %v1244_v4 }
 0x625   :  { %4181 = vmatmul.msk.f32.gmra.mxu2 %vm1117_vm6, %v1068_v6 }
 0x62d   :  { %4188 = vmatmul.msk.f32.vlgmr.msra.gmra.mxu2 %vm163_vm5, %v4790_v38 }
 0x635   :  { %4189 = vmatmul.msk.f32.gmra.mxu2 %vm163_vm5, %v4798_v44 }
 0x6a0   :  { %v1147_v9 = vpop.f32.mrf.mxu2 }
 0x6a1   :  { %v1153_v12 = vsel %vm4833_vm7, %v1147_v9, -1e+30 }
 0x6a2   :  { %v1155_v13 = vsel %vm133_vm2, %v1153_v12, -inf }
 0x6a3   :  { %1156 = vmax.xlane.f32.xlu0 %v1155_v13 }
 0x6a8   :  { %v1150_v15 = vpop.f32.mrf.mxu2 }
 0x6a9   :  { %v1154_v1 = vsel %vm4842_vm8, %v1150_v15, -1e+30 }
 0x6aa   :  { %v1158_v16 = vsel %vm133_vm2, %v1154_v1, -inf }
 0x6ab   :  { %1159 = vmax.xlane.f32.xlu0 %v1158_v16 }
 0x6b0   :  { %v1299_v19 = vpop.f32.mrf.mxu2 }
 0x6b1   :  { %v1300_v23 = vadd.f32 %v1299_v19, %v1281_v20 }
 0x6b8   :  { %v1302_v21 = vpop.f32.mrf.mxu2 }
 0x6b9   :  { %v1303_v22 = vadd.f32 %v1302_v21, %v1281_v20 }
 0x6bb   :  { %4192 = vmatpush.xpose.msk.msrb.mxu3 %vm1117_vm6, %v1303_v22  ;;  %v1491_v22 = vperm.slane %v4819_v52, 6 }
 0x6bf   :  { %4193 = vmatpush.xpose.msk.msrb.mxu3 %vm1117_vm6, %v1300_v23 }
 0x716   :  { %v1157_v2 = vpop.xlane.xlu0 %1156 }
 0x717   :  { %v1161_v5 = vsub.f32 %v1153_v12, %v1157_v2  ;;  %v1254_v12 = vld [vmem:[#allocation10 + $0x340] sm:$0xff] }
 0x718   :  { %1438 = vmatpush.msrb.mxu2 %v1254_v12 }
 0x719   :  { %v1163_v24 = vmul.f32 1.442695, %v1161_v5 }
 0x71b   :  { %4336 = vpow2.f32 %v1163_v24 }
 0x71e   :  { %v1160_v25 = vpop.xlane.xlu0 %1159 }
 0x71f   :  { %v1162_v26 = vsub.f32 %v1154_v1, %v1160_v25 }
 0x721   :  { %v4337_v27 = vpop.eup %4336  ;;  %v1165_v28 = vmul.f32 1.442695, %v1162_v26 }
 0x722   :  { %v1167_v29 = vsel %vm133_vm2, %v4337_v27, 0.0 }
 0x723   :  { %4338 = vpow2.f32 %v1165_v28  ;;  %1168 = vadd.xlane.f32.xlu1 %v1167_v29 }
 0x729   :  { %v4339_v30 = vpop.eup %4338 }
 0x72a   :  { %v1170_v31 = vsel %vm133_vm2, %v4339_v30, 0.0 }
 0x72b   :  { %1171 = vadd.xlane.f32.xlu1 %v1170_v31 }
 0x796   :  { %v1169_v36 = vpop.xlane.xlu1 %1168 }
 0x797   :  { %4340 = vrcp.f32 %v1169_v36  ;;  %v1460_v36 = vld [vmem:[#allocation10 + $0x288] sm:$0xff] }
 0x79d   :  { %v4341_v37 = vpop.eup %4340 }
 0x79e   :  { %v1175_v40 = vmul.f32 %v4341_v37, %v4337_v27  ;;  %v1172_v41 = vpop.xlane.xlu1 %1171  ;;  %v1459_v37 = vld [vmem:[#allocation10 + $0x280] sm:$0xff] }
 0x79f   :  { %4342 = vrcp.f32 %v1172_v41 }
 0x7a0   :  { %4182 = vmatmul.msk.f32.vlgmr.msra.gmra.mxu0 %vm133_vm2, %v1175_v40 }
 0x7a1   :  { %1478 = vmatpush.msra.mxu0 %v1452_v42 }
 0x7a3   :  { %1479 = vmatpush.msra.mxu0 %v1451_v39 }
 0x7a5   :  { %v4343_v47 = vpop.eup %4342  ;;  %1480 = vmatpush.msra.mxu0 %v1450_v43  ;;  %v1662_v43 = vld [vmem:[#allocation10 + $0xd8] sm:$0xff] }
 0x7a6   :  { %v1176_v48 = vmul.f32 %v4343_v47, %v4339_v30  ;;  %v1660_v47 = vld [vmem:[#allocation10 + $0xc8] sm:$0xff] }
 0x7a7   :  { %1481 = vmatpush.msra.mxu0 %v1449_v45  ;;  %v1661_v45 = vld [vmem:[#allocation10 + $0xd0] sm:$0xff] }
 0x7a8   :  { %4183 = vmatmul.msk.f32.gmra.mxu0 %vm133_vm2, %v1176_v48  ;;  %v1659_v48 = vld [vmem:[#allocation10 + $0xc0] sm:$0xff] }
 0x7b0   :  { %4190 = vmatmul.msk.f32.vlgmr.msrb.gmra.mxu0 %vm163_vm5, %v4790_v38 }
 0x7b8   :  { %4191 = vmatmul.msk.f32.gmra.mxu0 %vm163_vm5, %v4798_v44 }
 0x7c0   :  { %4200 = vmatmul.msk.f32.vlgmr.msra.gmra.mxu0 %vm163_vm5, %v4790_v38 }
 0x7c8   :  { %4201 = vmatmul.msk.f32.gmra.mxu0 %vm163_vm5, %v4798_v44 }
 0x81d   :  { %v1200_v51 = vpop.f32.mrf.mxu0 }
 0x81e   :  { %4184 = vmatmul.msk.f32.vlgmr.msra.gmra.mxu3 %vm1117_vm6, %v1200_v51 }
 0x81f   :  { %1504 = vmatpush.msra.mxu3 %v1457_v49 }
 0x821   :  { %1505 = vmatpush.msra.mxu3 %v1456_v54  ;;  %v1667_v54 = vld [vmem:[#allocation10 + $0x1d8] sm:$0xff] }
 0x823   :  { %1506 = vmatpush.msra.mxu3 %v1455_v55 }
 0x825   :  { %v1203_v61 = vpop.f32.mrf.mxu0  ;;  %1507 = vmatpush.msra.mxu3 %v1454_v57  ;;  %v1666_v57 = vld [vmem:[#allocation10 + $0x1d0] sm:$0xff] }
 0x826   :  { %4185 = vmatmul.msk.f32.gmra.mxu3 %vm1117_vm6, %v1203_v61 }
 0x82d   :  { %v1323_v50 = vpop.f32.mrf.mxu0 }
 0x82e   :  { %4194 = vmatmul.msk.f32.vlgmr.msrb.gmra.mxu3 %vm1117_vm6, %v1279_v59  ;;  %v1324_v6 = vadd.f32 %v1323_v50, %v1305_v0 }
 0x835   :  { %v1326_v3 = vpop.f32.mrf.mxu0 }
 0x836   :  { %v1327_v4 = vadd.f32 %v1326_v3, %v1305_v0  ;;  %4195 = vmatmul.msk.f32.gmra.mxu3 %vm1117_vm6, %v1280_v58 }
 0x838   :  { %1408 = vmatpush.msra.mxu1 %v1327_v4  ;;  %v1515_v4 = vperm.slane %v4813_v46, 2 }
 0x83a   :  { %1409 = vmatpush.msra.mxu1 %v1324_v6 }
 0x83c   :  { %1528 = vmatpush.msrb.mxu1 %v1462_v34 }
 0x83d   :  { %v1483_v61 = vpop.f32.mrf.mxu0 }
 0x83e   :  { %4202 = vmatmul.msk.f32.vlgmr.msra.gmra.mxu3 %vm163_vm5, %v4790_v38  ;;  %1529 = vmatpush.msrb.mxu1 %v1461_v35  ;;  %v1484_v63 = vadd.f32 %v1483_v61, %v1465_v62 }
 0x840   :  { %1530 = vmatpush.msrb.mxu1 %v1460_v36  ;;  %v1489_v50 = vmul.f32 0.35355338, %v1484_v63 }
 0x842   :  { %1531 = vmatpush.msrb.mxu1 %v1459_v37 }
 0x845   :  { %v1486_v53 = vpop.f32.mrf.mxu0 }
 0x846   :  { %4203 = vmatmul.msk.f32.gmra.mxu3 %vm163_vm5, %v4798_v44  ;;  %v1487_v0 = vadd.f32 %v1486_v53, %v1465_v62  ;;  %v1725_v53 = vperm.slane %v4813_v46, 3 }
 0x848   :  { %v1490_v3 = vmul.f32 0.35355338, %v1487_v0 }
 0x8a1   :  { %v4874_v7 = vpop.f32.mrf.mxu3 }
 0x8a9   :  { %v4876_v9 = vpop.f32.mrf.mxu3 }
 0x8b1   :  { %v1358_v13 = vpop.f32.mrf.mxu3 }
 0x8b2   :  { %v1364_v15 = vsel %vm4833_vm7, %v1358_v13, -1e+30 }
 0x8b3   :  { %v1366_v1 = vsel %vm133_vm2, %v1364_v15, -inf }
 0x8b4   :  { %1367 = vmax.xlane.f32.xlu2 %v1366_v1 }
 0x8b9   :  { %v1361_v16 = vpop.f32.mrf.mxu3 }
 0x8ba   :  { %v1365_v19 = vsel %vm4842_vm8, %v1361_v16, -1e+30  ;;  %v1464_v16 = vld [vmem:[#allocation10 + $0x380] sm:$0xff] }
 0x8bb   :  { %v1369_v20 = vsel %vm133_vm2, %v1365_v19, -inf  ;;  %1648 = vmatpush.msrb.mxu3 %v1464_v16 }
 0x8bc   :  { %1370 = vmax.xlane.f32.xlu2 %v1369_v20 }
 0x8c1   :  { %v1509_v21 = vpop.f32.mrf.mxu3 }
 0x8c2   :  { %v1510_v5 = vadd.f32 %v1509_v21, %v1491_v22 }
 0x8c9   :  { %v1512_v23 = vpop.f32.mrf.mxu3 }
 0x8ca   :  { %v1513_v2 = vadd.f32 %v1512_v23, %v1491_v22 }
 0x8cc   :  { %4206 = vmatpush.xpose.msk.msra.mxu2 %vm1117_vm6, %v1513_v2 }
 0x8d0   :  { %4207 = vmatpush.xpose.msk.msra.mxu2 %vm1117_vm6, %v1510_v5 }
 0x927   :  { %v1368_v24 = vpop.xlane.xlu2 %1367 }
 0x928   :  { %v1372_v25 = vsub.f32 %v1364_v15, %v1368_v24  ;;  %v1701_v24 = vperm.slane %v4819_v52, 7 }
 0x92a   :  { %v1374_v26 = vmul.f32 1.442695, %v1372_v25 }
 0x92c   :  { %4344 = vpow2.f32 %v1374_v26 }
 0x92f   :  { %v1371_v27 = vpop.xlane.xlu2 %1370 }
 0x930   :  { %v1373_v28 = vsub.f32 %v1365_v19, %v1371_v27 }
 0x932   :  { %v4345_v29 = vpop.eup %4344  ;;  %v1376_v30 = vmul.f32 1.442695, %v1373_v28 }
 0x933   :  { %v1378_v31 = vsel %vm133_vm2, %v4345_v29, 0.0 }
 0x934   :  { %4346 = vpow2.f32 %v1376_v30  ;;  %1379 = vadd.xlane.f32.xlu0 %v1378_v31 }
 0x93a   :  { %v4347_v32 = vpop.eup %4346 }
 0x93b   :  { %v1381_v33 = vsel %vm133_vm2, %v4347_v32, 0.0 }
 0x93c   :  { %1382 = vadd.xlane.f32.xlu1 %v1381_v33 }
 0x9a7   :  { %v1380_v40 = vpop.xlane.xlu0 %1379 }
 0x9a8   :  { %4348 = vrcp.f32 %v1380_v40  ;;  %v1672_v40 = vld [vmem:[#allocation10 + $0x2d8] sm:$0xff] }
 0x9ae   :  { %v4349_v41 = vpop.eup %4348 }
 0x9af   :  { %v1386_v42 = vmul.f32 %v4349_v41, %v4345_v29  ;;  %v1383_v39 = vpop.xlane.xlu1 %1382  ;;  %v1671_v41 = vld [vmem:[#allocation10 + $0x2d0] sm:$0xff] }
 0x9b0   :  { %4350 = vrcp.f32 %v1383_v39  ;;  %v1669_v39 = vld [vmem:[#allocation10 + $0x2c0] sm:$0xff] }
 0x9b1   :  { %4196 = vmatmul.msk.f32.vlgmr.msra.gmra.mxu1 %vm133_vm2, %v1386_v42  ;;  %v1670_v42 = vld [vmem:[#allocation10 + $0x2c8] sm:$0xff] }
 0x9b2   :  { %1688 = vmatpush.msra.mxu1 %v1662_v43 }
 0x9b4   :  { %1689 = vmatpush.msra.mxu1 %v1661_v45 }
 0x9b6   :  { %v4351_v49 = vpop.eup %4350  ;;  %1690 = vmatpush.msra.mxu1 %v1660_v47 }
 0x9b7   :  { %v1387_v51 = vmul.f32 %v4351_v49, %v4347_v32 }
 0x9b8   :  { %1691 = vmatpush.msra.mxu1 %v1659_v48 }
 0x9b9   :  { %4197 = vmatmul.msk.f32.gmra.mxu1 %vm133_vm2, %v1387_v51 }
 0x9c1   :  { %4204 = vmatmul.msk.f32.vlgmr.msrb.gmra.mxu1 %vm163_vm5, %v4790_v38 }
 0x9c9   :  { %4205 = vmatmul.msk.f32.gmra.mxu1 %vm163_vm5, %v4798_v44 }
 0x9d1   :  { %4214 = vmatmul.msk.f32.vlgmr.msra.gmra.mxu1 %vm163_vm5, %v4790_v38 }
 0x9d9   :  { %4215 = vmatmul.msk.f32.gmra.mxu1 %vm163_vm5, %v4798_v44 }
 0xa2e   :  { %v1411_v55 = vpop.f32.mrf.mxu1 }
 0xa2f   :  { %4198 = vmatmul.msk.f32.vlgmr.msrb.gmra.mxu2 %vm1117_vm6, %v1411_v55 }
 0xa30   :  { %1714 = vmatpush.msrb.mxu2 %v1667_v54 }
 0xa32   :  { %1715 = vmatpush.msrb.mxu2 %v1666_v57  ;;  %v1675_v57 = vperm.slane %v4819_v52, 3 }
 0xa34   :  { %1716 = vmatpush.msrb.mxu2 %v1665_v56 }
 0xa36   :  { %v1414_v59 = vpop.f32.mrf.mxu1  ;;  %1717 = vmatpush.msrb.mxu2 %v1664_v60 }
 0xa37   :  { %4199 = vmatmul.msk.f32.gmra.mxu2 %vm1117_vm6, %v1414_v59 }
 0xa3e   :  { %v1533_v58 = vpop.f32.mrf.mxu1 }
 0xa3f   :  { %4208 = vmatmul.msk.f32.vlgmr.msra.gmra.mxu2 %vm1117_vm6, %v1489_v50  ;;  %v1534_v13 = vadd.f32 %v1533_v58, %v1515_v4 }
 0xa46   :  { %v1536_v6 = vpop.f32.mrf.mxu1 }
 0xa47   :  { %v1537_v12 = vadd.f32 %v1536_v6, %v1515_v4  ;;  %4209 = vmatmul.msk.f32.gmra.mxu2 %vm1117_vm6, %v1490_v3 }
 0xa49   :  { %1618 = vmatpush.msrb.mxu0 %v1537_v12 }
 0xa4b   :  { %1619 = vmatpush.msrb.mxu0 %v1534_v13 }
 0xa4d   :  { %1738 = vmatpush.msra.mxu0 %v1672_v40  ;;  %v1235_v40 = vperm.slane %v4813_v46, 4 }
 0xa4e   :  { %v1693_v55 = vpop.f32.mrf.mxu1 }
 0xa4f   :  { %4216 = vmatmul.msk.f32.vlgmr.msrb.gmra.mxu2 %vm163_vm5, %v4790_v38  ;;  %1739 = vmatpush.msra.mxu0 %v1671_v41  ;;  %v1694_v60 = vadd.f32 %v1693_v55, %v1675_v57  ;;  %v1236_v41 = vadd.f32 %v1235_v40, %v4874_v7 }
 0xa51   :  { %1740 = vmatpush.msra.mxu0 %v1670_v42  ;;  %v1699_v61 = vmul.f32 0.35355338, %v1694_v60 }
 0xa53   :  { %1741 = vmatpush.msra.mxu0 %v1669_v39 }
 0xa56   :  { %v1696_v62 = vpop.f32.mrf.mxu1 }
 0xa57   :  { %4217 = vmatmul.msk.f32.gmra.mxu2 %vm163_vm5, %v4798_v44  ;;  %v1697_v63 = vadd.f32 %v1696_v62, %v1675_v57 }
 0xa59   :  { %v1700_v50 = vmul.f32 0.35355338, %v1697_v63 }
 0xab2   :  { %v4909_v15 = vpop.f32.mrf.mxu2 }
 0xab3   :  { %v1446_v42 = vadd.f32 %v4909_v15, %v1236_v41  ;;  %v4581_v15 = vmov 32.0  }
 0xaba   :  { %v4911_v1 = vpop.f32.mrf.mxu2 }
 0xac2   :  { %v1568_v19 = vpop.f32.mrf.mxu2 }
 0xac3   :  { %v1574_v20 = vsel %vm4833_vm7, %v1568_v19, -1e+30 }
 0xac4   :  { %v1576_v21 = vsel %vm133_vm2, %v1574_v20, -inf }
 0xac5   :  { %1577 = vmax.xlane.f32.xlu2 %v1576_v21 }
 0xaca   :  { %v1571_v22 = vpop.f32.mrf.mxu2 }
 0xacb   :  { %v1575_v23 = vsel %vm4842_vm8, %v1571_v22, -1e+30 }
 0xacc   :  { %v1579_v2 = vsel %vm133_vm2, %v1575_v23, -inf }
 0xacd   :  { %1580 = vmax.xlane.f32.xlu0 %v1579_v2 }
 0xad2   :  { %v1719_v5 = vpop.f32.mrf.mxu2 }
 0xad3   :  { %v1720_v27 = vadd.f32 %v1719_v5, %v1701_v24 }
 0xada   :  { %v1722_v25 = vpop.f32.mrf.mxu2 }
 0xadb   :  { %v1723_v26 = vadd.f32 %v1722_v25, %v1701_v24 }
 0xadd   :  { %4220 = vmatpush.xpose.msk.msra.mxu3 %vm1117_vm6, %v1723_v26 }
 0xae1   :  { %4221 = vmatpush.xpose.msk.msra.mxu3 %vm1117_vm6, %v1720_v27 }
 0xb38   :  { %v1578_v28 = vpop.xlane.xlu2 %1577 }
 0xb39   :  { %v1582_v29 = vsub.f32 %v1574_v20, %v1578_v28 }
 0xb3b   :  { %v1584_v30 = vmul.f32 1.442695, %v1582_v29  ;;  %v1674_v29 = vld [vmem:[#allocation10 + $0x3c0] sm:$0xff] }
 0xb3c   :  { %1858 = vmatpush.msra.mxu2 %v1674_v29 }
 0xb3d   :  { %4352 = vpow2.f32 %v1584_v30 }
 0xb40   :  { %v1581_v31 = vpop.xlane.xlu0 %1580 }
 0xb41   :  { %v1583_v32 = vsub.f32 %v1575_v23, %v1581_v31 }
 0xb43   :  { %v4353_v33 = vpop.eup %4352  ;;  %v1586_v34 = vmul.f32 1.442695, %v1583_v32 }
 0xb44   :  { %v1588_v35 = vsel %vm133_vm2, %v4353_v33, 0.0 }
 0xb45   :  { %4354 = vpow2.f32 %v1586_v34  ;;  %1589 = vadd.xlane.f32.xlu1 %v1588_v35 }
 0xb4b   :  { %v4355_v36 = vpop.eup %4354 }
 0xb4c   :  { %v1591_v37 = vsel %vm133_vm2, %v4355_v36, 0.0 }
 0xb4d   :  { %1592 = vadd.xlane.f32.xlu2 %v1591_v37 }
 0xbb8   :  { %v1590_v43 = vpop.xlane.xlu1 %1589 }
 0xbb9   :  { %4356 = vrcp.f32 %v1590_v43 }
 0xbbf   :  { %v4357_v45 = vpop.eup %4356 }
 0xbc0   :  { %v1596_v47 = vmul.f32 %v4357_v45, %v4353_v33  ;;  %v1593_v48 = vpop.xlane.xlu2 %1592 }
 0xbc1   :  { %4358 = vrcp.f32 %v1593_v48 }
 0xbc2   :  { %4210 = vmatmul.msk.f32.vlgmr.msrb.gmra.mxu0 %vm133_vm2, %v1596_v47  ;;  %v1237_v47 = vadd.f32 %v1235_v40, %v4876_v9 }
 0xbc7   :  { %v4359_v49 = vpop.eup %4358 }
 0xbc8   :  { %v1597_v51 = vmul.f32 %v4359_v49, %v4355_v36  ;;  %v1447_v49 = vadd.f32 %v4911_v1, %v1237_v47 }
 0xbca   :  { %4211 = vmatmul.msk.f32.gmra.mxu0 %vm133_vm2, %v1597_v51 }
 0xbd2   :  { %4218 = vmatmul.msk.f32.vlgmr.msra.gmra.mxu0 %vm163_vm5, %v4790_v38 }
 0xbda   :  { %4219 = vmatmul.msk.f32.gmra.mxu0 %vm163_vm5, %v4798_v44 }
 0xc3f   :  { %v1621_v54 = vpop.f32.mrf.mxu0 }
 0xc40   :  { %4212 = vmatmul.msk.f32.vlgmr.msrb.gmra.mxu3 %vm1117_vm6, %v1621_v54 }
 0xc47   :  { %v1624_v56 = vpop.f32.mrf.mxu0 }
 0xc48   :  { %4213 = vmatmul.msk.f32.gmra.mxu3 %vm1117_vm6, %v1624_v56 }
 0xc4f   :  { %v1743_v59 = vpop.f32.mrf.mxu0 }
 0xc50   :  { %4222 = vmatmul.msk.f32.vlgmr.msra.gmra.mxu3 %vm1117_vm6, %v1699_v61  ;;  %v1744_v3 = vadd.f32 %v1743_v59, %v1725_v53 }
 0xc57   :  { %v1746_v58 = vpop.f32.mrf.mxu0 }
 0xc58   :  { %v1747_v0 = vadd.f32 %v1746_v58, %v1725_v53  ;;  %4223 = vmatmul.msk.f32.gmra.mxu3 %vm1117_vm6, %v1700_v50 }
 0xc5a   :  { %1828 = vmatpush.msrb.mxu1 %v1747_v0 }
 0xc5c   :  { %1829 = vmatpush.msrb.mxu1 %v1744_v3 }
 0xcc3   :  { %v1650_v52 = vpop.f32.mrf.mxu3 }
 0xcc4   :  { %v1656_v39 = vadd.f32 %v1650_v52, %v1446_v42 }
 0xccb   :  { %v1653_v4 = vpop.f32.mrf.mxu3 }
 0xccc   :  { %v1657_v54 = vadd.f32 %v1653_v4, %v1447_v49 }
 0xcd3   :  { %v1778_v6 = vpop.f32.mrf.mxu3 }
 0xcd4   :  { %v1784_v12 = vsel %vm4833_vm7, %v1778_v6, -1e+30  ;;  %v1931_v6 = vld [vmem:[#allocation10 + $0x418] sm:$0xff] }
 0xcd5   :  { %v1786_v13 = vsel %vm133_vm2, %v1784_v12, -inf  ;;  %1960 = vmatpush.msrb.mxu0 %v1931_v6 }
 0xcd6   :  { %1787 = vmax.xlane.f32.xlu0 %v1786_v13  ;;  %v1929_v13 = vld [vmem:[#allocation10 + $0x408] sm:$0xff] }
 0xcdb   :  { %v1781_v16 = vpop.f32.mrf.mxu3 }
 0xcdc   :  { %v1785_v19 = vsel %vm4842_vm8, %v1781_v16, -1e+30  ;;  %v1928_v16 = vld [vmem:[#allocation10 + $0x400] sm:$0xff] }
 0xcdd   :  { %v1789_v20 = vsel %vm133_vm2, %v1785_v19, -inf }
 0xcde   :  { %1790 = vmax.xlane.f32.xlu1 %v1789_v20 }
 0xd49   :  { %v1788_v21 = vpop.xlane.xlu0 %1787 }
 0xd4a   :  { %v1792_v22 = vsub.f32 %v1784_v12, %v1788_v21  ;;  %v1930_v12 = vld [vmem:[#allocation10 + $0x410] sm:$0xff] }
 0xd4b   :  { %1961 = vmatpush.msrb.mxu0 %v1930_v12 }
 0xd4c   :  { %v1794_v23 = vmul.f32 1.442695, %v1792_v22  ;;  %v1940_v22 = vld [vmem:[#allocation10 + $0x478] sm:$0xff] }
 0xd4d   :  { %1962 = vmatpush.msrb.mxu0 %v1929_v13  ;;  %1989 = vmatpush.msrb.mxu3 %v1940_v22 }
 0xd4e   :  { %4360 = vpow2.f32 %v1794_v23  ;;  %v1939_v23 = vld [vmem:[#allocation10 + $0x470] sm:$0xff] }
 0xd4f   :  { %1963 = vmatpush.msrb.mxu0 %v1928_v16  ;;  %1990 = vmatpush.msrb.mxu3 %v1939_v23 }
 0xd51   :  { %v1791_v2 = vpop.xlane.xlu1 %1790 }
 0xd52   :  { %v1793_v5 = vsub.f32 %v1785_v19, %v1791_v2  ;;  %v1938_v2 = vld [vmem:[#allocation10 + $0x468] sm:$0xff] }
 0xd53   :  { %1991 = vmatpush.msrb.mxu3 %v1938_v2 }
 0xd54   :  { %v4361_v24 = vpop.eup %4360  ;;  %v1796_v25 = vmul.f32 1.442695, %v1793_v5 }
 0xd55   :  { %v1798_v26 = vsel %vm133_vm2, %v4361_v24, 0.0 }
 0xd56   :  { %4362 = vpow2.f32 %v1796_v25  ;;  %1799 = vadd.xlane.f32.xlu2 %v1798_v26  ;;  %v1937_v25 = vld [vmem:[#allocation10 + $0x460] sm:$0xff] }
 0xd57   :  { %1992 = vmatpush.msrb.mxu3 %v1937_v25  ;;  %v2074_v25 = vld [vmem:[#allocation10 + $0x698] sm:$0xff] }
 0xd58   :  { %2146 = vmatpush.msra.mxu0 %v2074_v25  ;;  %v2286_v25 = vld [vmem:[#allocation10 + $0x5d8] sm:$0xff] }
 0xd5c   :  { %v4363_v27 = vpop.eup %4362 }
 0xd5d   :  { %v1801_v28 = vsel %vm133_vm2, %v4363_v27, 0.0 }
 0xd5e   :  { %1802 = vadd.xlane.f32.xlu0 %v1801_v28  ;;  %v1936_v28 = vld [vmem:[#allocation10 + $0x458] sm:$0xff] }
 0xd5f   :  { %1993 = vmatpush.msrb.mxu3 %v1936_v28  ;;  %v2073_v28 = vld [vmem:[#allocation10 + $0x690] sm:$0xff] }
 0xd60   :  { %2147 = vmatpush.msra.mxu0 %v2073_v28 }
 0xdc9   :  { %v1800_v30 = vpop.xlane.xlu2 %1799 }
 0xdca   :  { %4364 = vrcp.f32 %v1800_v30 }
 0xdd0   :  { %v4365_v31 = vpop.eup %4364 }
 0xdd1   :  { %v1806_v32 = vmul.f32 %v4365_v31, %v4361_v24  ;;  %v1803_v33 = vpop.xlane.xlu0 %1802 }
 0xdd2   :  { %4366 = vrcp.f32 %v1803_v33 }
 0xdd3   :  { %4224 = vmatmul.msk.f32.vlgmr.msrb.gmra.mxu1 %vm133_vm2, %v1806_v32  ;;  %4368 = vrcp.f32 %v4581_v15  ;;  %v1933_v15 = vld [vmem:[#allocation10 + $0x440] sm:$0xff] }
 0xdd8   :  { %v4367_v34 = vpop.eup %4366 }
 0xdd9   :  { %v1807_v35 = vmul.f32 %v4367_v34, %v4363_v27  ;;  %v4369_v60 = vpop.eup %4368  ;;  %v4968_v34 = vld [vmem:[%s5304_s5 + $0x10] sm:$0x7] }
 0xdda   :  { %v1877_v61 = vmul.f32 32.0, %v4369_v60  ;;  %vm1881_vm9 = vweird.f32 %v4369_v60  ;;  %v1924_v42 = vperm.slane %v4968_v34, 0 }
 0xddb   :  { %4225 = vmatmul.msk.f32.gmra.mxu1 %vm133_vm2, %v1807_v35 }
 0xddc   :  { %v1878_v9 = vsub.f32 1.0, %v1877_v61 }
 0xdde   :  { %v1879_v62 = vmul.f32 %v4369_v60, %v1878_v9 }
 0xe50   :  { %v1831_v36 = vpop.f32.mrf.mxu1 }
 0xe51   :  { %4226 = vmatmul.msk.f32.vlgmr.msra.gmra.mxu2 %vm1117_vm6, %v1831_v36 }
 0xe58   :  { %v1834_v37 = vpop.f32.mrf.mxu1 }
 0xe59   :  { %4227 = vmatmul.msk.f32.gmra.mxu2 %vm1117_vm6, %v1834_v37  ;;  %v1921_v37 = vperm.slane %v4813_v46, 7 }
 0xed4   :  { %v1860_v43 = vpop.f32.mrf.mxu2 }
 0xed5   :  { %v1866_v45 = vadd.f32 %v1860_v43, %v1656_v39 }
 0xed7   :  { %v1868_v48 = vadd.f32 %v1866_v45, %v4790_v38  ;;  %v1880_v38 = vadd.f32 %v4369_v60, %v1879_v62 }
 0xed9   :  { %v1870_v51 = vsel %vm163_vm5, %v1868_v48, 0.0  ;;  %v4957_v1 = vsel %vm1881_vm9, %v4369_v60, %v1880_v38  ;;  %v1941_v60 = vperm.slane %v4813_v46, 5 }
 0xeda   :  { %1871 = vadd.xlane.f32.xlu1 %v1870_v51 }
 0xedc   :  { %v1863_v55 = vpop.f32.mrf.mxu2 }
 0xedd   :  { %v1867_v57 = vadd.f32 %v1863_v55, %v1657_v54 }
 0xedf   :  { %v1869_v56 = vadd.f32 %v1867_v57, %v4798_v44 }
 0xee1   :  { %v1873_v7 = vsel %vm163_vm5, %v1869_v56, 0.0 }
 0xee2   :  { %1874 = vadd.xlane.f32.xlu2 %v1873_v7  ;;  %v1934_v7 = vld [vmem:[#allocation10 + $0x448] sm:$0xff] }
 0xf4d   :  { %v1872_v59 = vpop.xlane.xlu1 %1871 }
 0xf4e   :  { %v1883_v63 = vmul.f32 %v4957_v1, %v1872_v59 }
 0xf50   :  { %v1885_v50 = vsub.f32 %v1868_v48, %v1883_v63 }
 0xf52   :  { %v1887_v53 = vmul.f32 %v1885_v50, %v1885_v50 }
 0xf54   :  { %v1889_v44 = vsel %vm163_vm5, %v1887_v53, 0.0 }
 0xf55   :  { %1890 = vadd.xlane.f32.xlu0 %v1889_v44  ;;  %v1875_v58 = vpop.xlane.xlu2 %1874 }
 0xf56   :  { %v1884_v0 = vmul.f32 %v4957_v1, %v1875_v58 }
 0xf58   :  { %v1886_v3 = vsub.f32 %v1869_v56, %v1884_v0  ;;  %v1935_v56 = vld [vmem:[#allocation10 + $0x450] sm:$0xff] }
 0xf59   :  { %1994 = vmatpush.msrb.mxu3 %v1935_v56 }
 0xf5a   :  { %v1888_v52 = vmul.f32 %v1886_v3, %v1886_v3 }
 0xf5b   :  { %1995 = vmatpush.msrb.mxu3 %v1934_v7 }
 0xf5c   :  { %v1892_v4 = vsel %vm163_vm5, %v1888_v52, 0.0 }
 0xf5d   :  { %1893 = vadd.xlane.f32.xlu1 %v1892_v4  ;;  %1996 = vmatpush.msrb.mxu3 %v1933_v15 }
 0xfc8   :  { %v1891_v19 = vpop.xlane.xlu0 %1890 }
 0xfc9   :  { %v1895_v20 = vmul.f32 %v1891_v19, %v4957_v1 }
 0xfcb   :  { %v1897_v21 = vadd.f32 1e-05, %v1895_v20 }
 0xfcd   :  { %4370 = vrsqrt.f32 %v1897_v21  ;;  %vm1905_vm11 = vweird.f32 %v1897_v21 }
 0xfd0   :  { %v1894_v5 = vpop.xlane.xlu1 %1893 }
 0xfd1   :  { %v1896_v24 = vmul.f32 %v1894_v5, %v4957_v1  ;;  %v2064_v5 = vld [vmem:[#allocation10 + $0x498] sm:$0xff] }
 0xfd2   :  { %2096 = vmatpush.msra.mxu1 %v2064_v5 }
 0xfd3   :  { %v4371_v26 = vpop.eup %4370  ;;  %v1898_v27 = vadd.f32 1e-05, %v1896_v24  ;;  %v2069_v24 = vld [vmem:[#allocation10 + $0x598] sm:$0xff] }
 0xfd4   :  { %v1900_v29 = vmul.f32 %v4371_v26, %v1897_v21  ;;  %vm1906_vm10 = vweird.f32 %v4371_v26  ;;  %2122 = vmatpush.msrb.mxu2 %v2069_v24 }
 0xfd5   :  { %4372 = vrsqrt.f32 %v1898_v27  ;;  %vm1907_vm12 = vmor %vm1905_vm11, %vm1906_vm10  ;;  %vm1915_vm14 = vweird.f32 %v1898_v27 }
 0xfd6   :  { %v1901_v30 = vmul.f32 %v4371_v26, %v1900_v29  ;;  %v2062_v29 = vld [vmem:[#allocation10 + $0x488] sm:$0xff] }
 0xfd8   :  { %v1902_v31 = vmul.f32 0.5, %v1901_v30  ;;  %v2067_v30 = vld [vmem:[#allocation10 + $0x588] sm:$0xff] }
 0xfda   :  { %v1903_v32 = vsub.f32 1.5, %v1902_v31  ;;  %v2072_v31 = vld [vmem:[#allocation10 + $0x688] sm:$0xff] }
 0xfdb   :  { %v4373_v33 = vpop.eup %4372  ;;  %2148 = vmatpush.msra.mxu0 %v2072_v31  ;;  %v2283_v31 = vld [vmem:[#allocation10 + $0x5c0] sm:$0xff] }
 0xfdc   :  { %v1904_v35 = vmul.f32 %v4371_v26, %v1903_v32  ;;  %v1910_v36 = vmul.f32 %v4373_v33, %v1898_v27  ;;  %vm1916_vm13 = vweird.f32 %v4373_v33  ;;  %v2068_v27 = vld [vmem:[#allocation10 + $0x590] sm:$0xff]  ;;  %v2061_v32 = vld [vmem:[#allocation10 + $0x480] sm:$0xff] }
 0xfdd   :  { %vm1917_vm15 = vmor %vm1915_vm14, %vm1916_vm13  ;;  %2123 = vmatpush.msrb.mxu2 %v2068_v27  ;;  %v2285_v27 = vld [vmem:[#allocation10 + $0x5d0] sm:$0xff] }
 0xfde   :  { %v1908_v40 = vsel %vm1907_vm12, %v4371_v26, %v1904_v35  ;;  %v1911_v41 = vmul.f32 %v4373_v33, %v1910_v36  ;;  %v2063_v26 = vld [vmem:[#allocation10 + $0x490] sm:$0xff]  ;;  %v2071_v35 = vld [vmem:[#allocation10 + $0x680] sm:$0xff] }
 0xfdf   :  { %v1919_v39 = vmul.f32 %v1908_v40, %v1885_v50  ;;  %v1973_v50 = vperm.slane %v4813_v46, 6  ;;  %2097 = vmatpush.msra.mxu1 %v2063_v26  ;;  %2124 = vmatpush.msrb.mxu2 %v2067_v30 }
 0xfe0   :  { %v1912_v43 = vmul.f32 0.5, %v1911_v41  ;;  %2149 = vmatpush.msra.mxu0 %v2071_v35  ;;  %v2281_v41 = vld [vmem:[#allocation10 + $0x4d8] sm:$0xff] }
 0xfe1   :  { %v1922_v45 = vmul.f32 %v1921_v37, %v1919_v39  ;;  %2098 = vmatpush.msra.mxu1 %v2062_v29  ;;  %v2284_v29 = vld [vmem:[#allocation10 + $0x5c8] sm:$0xff] }
 0xfe2   :  { %v1913_v47 = vsub.f32 1.5, %v1912_v43  ;;  %v2279_v43 = vld [vmem:[#allocation10 + $0x4c8] sm:$0xff] }
 0xfe3   :  { %v1925_v48 = vadd.f32 %v1924_v42, %v1922_v45  ;;  %2099 = vmatpush.msra.mxu1 %v2061_v32 }
 0xfe4   :  { %v1914_v49 = vmul.f32 %v4373_v33, %v1913_v47  ;;  %v2278_v47 = vld [vmem:[#allocation10 + $0x4c0] sm:$0xff] }
 0xfe5   :  { %4228 = vmatmul.msk.f32.vlgmr.msrb.gmra.mxu0 %vm163_vm5, %v1925_v48 }
 0xfe6   :  { %v1918_v51 = vsel %vm1917_vm15, %v4373_v33, %v1914_v49  ;;  %v2066_v33 = vld [vmem:[#allocation10 + $0x580] sm:$0xff]  ;;  %2307 = vmatpush.msrb.mxu0 %v2281_v41 }
 0xfe7   :  { %v1920_v54 = vmul.f32 %v1918_v51, %v1886_v3  ;;  %2125 = vmatpush.msrb.mxu2 %v2066_v33  ;;  %v2076_v33 = vld [vmem:[#allocation10 + $0x780] sm:$0xff] }
 0xfe9   :  { %v1923_v55 = vmul.f32 %v1921_v37, %v1920_v54  ;;  %2266 = vmatpush.msra.mxu2 %v2076_v33 }
 0xfeb   :  { %v1926_v57 = vadd.f32 %v1924_v42, %v1923_v55  ;;  %v2280_v42 = vld [vmem:[#allocation10 + $0x4d0] sm:$0xff] }
 0xfec   :  { %2308 = vmatpush.msrb.mxu0 %v2280_v42 }
 0xfed   :  { %4229 = vmatmul.msk.f32.gmra.mxu0 %vm163_vm5, %v1926_v57 }
 0xfee   :  { %2309 = vmatpush.msrb.mxu0 %v2279_v43 }
 0xff0   :  { %2310 = vmatpush.msrb.mxu0 %v2278_v47 }
0x1062   :  { %v1965_v61 = vpop.f32.mrf.mxu0 }
0x1063   :  { %v1966_v9 = vadd.f32 %v1965_v61, %v1941_v60 }
0x1065   :  { %v1971_v62 = vmax.f32 %v1966_v9, 0.0 }
0x1067   :  { %4230 = vmatmul.msk.f32.vlgmr.msrb.gmra.mxu3 %vm1974_vm0, %v1971_v62  ;;  %v2053_v62 = vperm.slane %v4968_v34, 2 }
0x106a   :  { %v1968_v38 = vpop.f32.mrf.mxu0 }
0x106b   :  { %v1969_v59 = vadd.f32 %v1968_v38, %v1941_v60  ;;  %v2050_v60 = vperm.slane %v4968_v34, 1 }
0x106d   :  { %v1972_v63 = vmax.f32 %v1969_v59, 0.0 }
0x106f   :  { %4231 = vmatmul.msk.f32.gmra.mxu3 %vm1974_vm0, %v1972_v63 }
0x10ea   :  { %v1998_v53 = vpop.f32.mrf.mxu3 }
0x10eb   :  { %v1999_v44 = vadd.f32 %v1998_v53, %v1973_v50 }
0x10ed   :  { %v2004_v58 = vadd.f32 %v1999_v44, %v1925_v48 }
0x10ef   :  { %v2006_v0 = vsel %vm163_vm5, %v2004_v58, 0.0 }
0x10f0   :  { %2007 = vadd.xlane.f32.xlu2 %v2006_v0 }
0x10f2   :  { %v2001_v3 = vpop.f32.mrf.mxu3 }
0x10f3   :  { %v2002_v52 = vadd.f32 %v2001_v3, %v1973_v50 }
0x10f5   :  { %v2005_v4 = vadd.f32 %v2002_v52, %v1926_v57 }
0x10f7   :  { %v2009_v6 = vsel %vm163_vm5, %v2005_v4, 0.0 }
0x10f8   :  { %2010 = vadd.xlane.f32.xlu0 %v2009_v6 }
0x1163   :  { %v2008_v12 = vpop.xlane.xlu2 %2007 }
0x1164   :  { %v2012_v13 = vmul.f32 %v2008_v12, %v4957_v1 }
0x1166   :  { %v4981_v16 = vsub.f32 %v2004_v58, %v2012_v13 }
0x1168   :  { %v2016_v46 = vmul.f32 %v4981_v16, %v4981_v16 }
0x116a   :  { %v2018_v19 = vsel %vm163_vm5, %v2016_v46, 0.0  ;;  %v5027_v46 = vld [vmem:[%s5304_s5 + $0x18] sm:$0xff] }
0x116b   :  { %v2011_v20 = vpop.xlane.xlu0 %2010  ;;  %2019 = vadd.xlane.f32.xlu1 %v2018_v19  ;;  %v2320_v43 = vperm.slane %v5027_v46, 5 }
0x116c   :  { %v2013_v21 = vmul.f32 %v2011_v20, %v4957_v1 }
0x116e   :  { %v4987_v22 = vsub.f32 %v2005_v4, %v2013_v21  ;;  %v5021_v4 = vld [vmem:[%s5304_s5 + $0x20] sm:$0xff]  ;;  %v2109_v21 = vperm.slane %v5027_v46, 4 }
0x116f   :  { %v2133_v12 = vperm.slane %v5021_v4, 0 }
0x1170   :  { %v2017_v23 = vmul.f32 %v4987_v22, %v4987_v22 }
0x1172   :  { %v2021_v2 = vsel %vm163_vm5, %v2017_v23, 0.0 }
0x1173   :  { %2022 = vadd.xlane.f32.xlu2 %v2021_v2 }
0x11de   :  { %v2020_v36 = vpop.xlane.xlu1 %2019 }
0x11df   :  { %v2024_v37 = vmul.f32 %v2020_v36, %v4957_v1 }
0x11e1   :  { %v2026_v40 = vadd.f32 1e-05, %v2024_v37 }
0x11e3   :  { %4374 = vrsqrt.f32 %v2026_v40  ;;  %vm2034_vm3 = vweird.f32 %v2026_v40 }
0x11e6   :  { %v2023_v39 = vpop.xlane.xlu2 %2022 }
0x11e7   :  { %v2025_v45 = vmul.f32 %v2023_v39, %v4957_v1 }
0x11e9   :  { %v4375_v48 = vpop.eup %4374  ;;  %v2027_v49 = vadd.f32 1e-05, %v2025_v45 }
0x11ea   :  { %v2029_v51 = vmul.f32 %v4375_v48, %v2026_v40  ;;  %vm2035_vm1 = vweird.f32 %v4375_v48 }
0x11eb   :  { %4376 = vrsqrt.f32 %v2027_v49  ;;  %vm2036_vm4 = vmor %vm2034_vm3, %vm2035_vm1  ;;  %vm2044_vm10 = vweird.f32 %v2027_v49 }
0x11ec   :  { %v2030_v54 = vmul.f32 %v4375_v48, %v2029_v51 }
0x11ee   :  { %v2031_v55 = vmul.f32 0.5, %v2030_v54 }
0x11f0   :  { %v2032_v57 = vsub.f32 1.5, %v2031_v55 }
0x11f1   :  { %v4377_v56 = vpop.eup %4376 }
0x11f2   :  { %v2033_v7 = vmul.f32 %v4375_v48, %v2032_v57  ;;  %v2039_v15 = vmul.f32 %v4377_v56, %v2027_v49  ;;  %vm2045_vm9 = vweird.f32 %v4377_v56 }
0x11f3   :  { %vm2046_vm11 = vmor %vm2044_vm10, %vm2045_vm9 }
0x11f4   :  { %v2037_v61 = vsel %vm2036_vm4, %v4375_v48, %v2033_v7  ;;  %v2040_v9 = vmul.f32 %v4377_v56, %v2039_v15 }
0x11f5   :  { %v2048_v38 = vmul.f32 %v2037_v61, %v4981_v16 }
0x11f6   :  { %v2041_v59 = vmul.f32 0.5, %v2040_v9  ;;  %v2291_v9 = vld [vmem:[#allocation10 + $0x6d8] sm:$0xff] }
0x11f7   :  { %v2051_v63 = vmul.f32 %v2050_v60, %v2048_v38  ;;  %v2289_v38 = vld [vmem:[#allocation10 + $0x6c8] sm:$0xff] }
0x11f8   :  { %v2042_v50 = vsub.f32 1.5, %v2041_v59  ;;  %v2288_v59 = vld [vmem:[#allocation10 + $0x6c0] sm:$0xff] }
0x11f9   :  { %v4997_v53 = vadd.f32 %v2053_v62, %v2051_v63 }
0x11fa   :  { %v2043_v44 = vmul.f32 %v4377_v56, %v2042_v50 }
0x11fb   :  { %4235 = vmatmul.msk.f32.vlgmr.msra.gmra.mxu1 %vm163_vm5, %v4997_v53  ;;  %4237 = vmatmul.msk.f32.vlgmr.msrb.gmra.mxu2 %vm163_vm5, %v4997_v53 }
0x11fc   :  { %v2047_v58 = vsel %vm2046_vm11, %v4377_v56, %v2043_v44  ;;  %4239 = vmatmul.msk.f32.vlgmr.msra.gmra.mxu0 %vm163_vm5, %v4997_v53 }
0x11fd   :  { %v2049_v34 = vmul.f32 %v2047_v58, %v4987_v22  ;;  %v2077_v22 = vperm.slane %v5027_v46, 0 }
0x11ff   :  { %v2052_v0 = vmul.f32 %v2050_v60, %v2049_v34  ;;  %v2491_v34 = vld [vmem:[#allocation10 + $0x518] sm:$0xff] }
0x1201   :  { %v5006_v3 = vadd.f32 %v2053_v62, %v2052_v0  ;;  %v2290_v62 = vld [vmem:[#allocation10 + $0x6d0] sm:$0xff] }
0x1202   :  { %v2490_v0 = vld [vmem:[#allocation10 + $0x510] sm:$0xff] }
0x1203   :  { %4236 = vmatmul.msk.f32.gmra.mxu1 %vm163_vm5, %v5006_v3  ;;  %4238 = vmatmul.msk.f32.gmra.mxu2 %vm163_vm5, %v5006_v3 }
0x1204   :  { %4240 = vmatmul.msk.f32.gmra.mxu0 %vm163_vm5, %v5006_v3 }
0x120c   :  { %4249 = vmatmul.msk.f32.vlgmr.msrb.gmra.mxu0 %vm163_vm5, %v4997_v53 }
0x1214   :  { %4250 = vmatmul.msk.f32.gmra.mxu0 %vm163_vm5, %v5006_v3 }
0x1278   :  { %v2101_v20 = vpop.f32.mrf.mxu1 }
0x1279   :  { %v2151_v52 = vpop.f32.mrf.mxu0  ;;  %v2102_v5 = vadd.f32 %v2101_v20, %v2077_v22  ;;  %v2495_v20 = vld [vmem:[#allocation10 + $0x610] sm:$0xff] }
0x127a   :  { %v2152_v19 = vadd.f32 %v2151_v52, %v2133_v12  ;;  %v2489_v52 = vld [vmem:[#allocation10 + $0x508] sm:$0xff] }
0x127b   :  { %v2107_v26 = vmul.f32 0.35355338, %v2102_v5 }
0x127e   :  { %v2127_v6 = vpop.f32.mrf.mxu2 }
0x127f   :  { %v2128_v24 = vadd.f32 %v2127_v6, %v2109_v21  ;;  %v2488_v6 = vld [vmem:[#allocation10 + $0x500] sm:$0xff] }
0x1280   :  { %v2104_v28 = vpop.f32.mrf.mxu1 }
0x1281   :  { %v2154_v13 = vpop.f32.mrf.mxu0  ;;  %v2105_v30 = vadd.f32 %v2104_v28, %v2077_v22  ;;  %v2493_v22 = vld [vmem:[#allocation10 + $0x600] sm:$0xff] }
0x1282   :  { %v2155_v16 = vadd.f32 %v2154_v13, %v2133_v12 }
0x1283   :  { %v2108_v32 = vmul.f32 0.35355338, %v2105_v30  ;;  %v2344_v30 = vperm.slane %v5021_v4, 1 }
0x1284   :  { %2236 = vmatpush.msrb.mxu1 %v2155_v16  ;;  %v2496_v16 = vld [vmem:[#allocation10 + $0x618] sm:$0xff] }
0x1286   :  { %2237 = vmatpush.msrb.mxu1 %v2152_v19  ;;  %v2130_v23 = vpop.f32.mrf.mxu2 }
0x1287   :  { %v2131_v2 = vadd.f32 %v2130_v23, %v2109_v21  ;;  %v2494_v21 = vld [vmem:[#allocation10 + $0x608] sm:$0xff] }
0x1288   :  { %2357 = vmatpush.msra.mxu1 %v2291_v9 }
0x1289   :  { %4241 = vmatpush.xpose.msk.msra.mxu3 %vm1117_vm6, %v2131_v2  ;;  %v2312_v23 = vpop.f32.mrf.mxu0  ;;  %v2294_v2 = vperm.slane %v5027_v46, 1 }
0x128a   :  { %2358 = vmatpush.msra.mxu1 %v2290_v62 }
0x128c   :  { %2359 = vmatpush.msra.mxu1 %v2289_v38 }
0x128d   :  { %4242 = vmatpush.xpose.msk.msra.mxu3 %vm1117_vm6, %v2128_v24  ;;  %v2313_v24 = vadd.f32 %v2312_v23, %v2294_v2  ;;  %v2705_v23 = vld [vmem:[#allocation10 + $0x650] sm:$0xff] }
0x128e   :  { %2360 = vmatpush.msra.mxu1 %v2288_v59  ;;  %v2501_v59 = vld [vmem:[#allocation10 + $0x718] sm:$0xff] }
0x1290   :  { %4243 = vmatmul.msk.f32.vlgmr.msra.gmra.mxu3 %vm1117_vm6, %v2107_v26 }
0x1291   :  { %2333 = vmatpush.msrb.mxu3 %v2286_v25  ;;  %v2318_v25 = vmul.f32 0.35355338, %v2313_v24  ;;  %v2315_v26 = vpop.f32.mrf.mxu0 }
0x1292   :  { %v2316_v28 = vadd.f32 %v2315_v26, %v2294_v2  ;;  %v2704_v2 = vld [vmem:[#allocation10 + $0x648] sm:$0xff] }
0x1293   :  { %2334 = vmatpush.msrb.mxu3 %v2285_v27 }
0x1295   :  { %2335 = vmatpush.msrb.mxu3 %v2284_v29  ;;  %v2319_v29 = vmul.f32 0.35355338, %v2316_v28 }
0x1297   :  { %2336 = vmatpush.msrb.mxu3 %v2283_v31 }
0x1298   :  { %4244 = vmatmul.msk.f32.gmra.mxu3 %vm1117_vm6, %v2108_v32 }
0x12a0   :  { %4251 = vmatmul.msk.f32.vlgmr.msrb.gmra.mxu3 %vm163_vm5, %v4997_v53 }
0x12a8   :  { %4252 = vmatmul.msk.f32.gmra.mxu3 %vm163_vm5, %v5006_v3 }
0x1313   :  { %v2186_v35 = vpop.f32.mrf.mxu3 }
0x1314   :  { %v2192_v36 = vsel %vm4833_vm7, %v2186_v35, -1e+30 }
0x1315   :  { %v2194_v37 = vsel %vm133_vm2, %v2192_v36, -inf }
0x1316   :  { %2195 = vmax.xlane.f32.xlu0 %v2194_v37  ;;  %v2293_v37 = vld [vmem:[#allocation10 + $0x7c0] sm:$0xff] }
0x1317   :  { %2477 = vmatpush.msra.mxu3 %v2293_v37 }
0x131b   :  { %v2189_v40 = vpop.f32.mrf.mxu3 }
0x131c   :  { %v2193_v41 = vsel %vm4842_vm8, %v2189_v40, -1e+30 }
0x131d   :  { %v2197_v42 = vsel %vm133_vm2, %v2193_v41, -inf }
0x131e   :  { %2198 = vmax.xlane.f32.xlu1 %v2197_v42 }
0x1323   :  { %v2338_v39 = vpop.f32.mrf.mxu3 }
0x1324   :  { %v2339_v48 = vadd.f32 %v2338_v39, %v2320_v43 }
0x132b   :  { %v2341_v45 = vpop.f32.mrf.mxu3 }
0x132c   :  { %v2342_v47 = vadd.f32 %v2341_v45, %v2320_v43 }
0x132e   :  { %4255 = vmatpush.xpose.msk.msrb.mxu2 %vm1117_vm6, %v2342_v47 }
0x1332   :  { %4256 = vmatpush.xpose.msk.msrb.mxu2 %vm1117_vm6, %v2339_v48  ;;  %v2530_v48 = vperm.slane %v5027_v46, 6 }
0x1389   :  { %v2196_v49 = vpop.xlane.xlu0 %2195 }
0x138a   :  { %v2200_v51 = vsub.f32 %v2192_v36, %v2196_v49 }
0x138c   :  { %v2202_v54 = vmul.f32 1.442695, %v2200_v51 }
0x138e   :  { %4378 = vpow2.f32 %v2202_v54 }
0x1391   :  { %v2199_v55 = vpop.xlane.xlu1 %2198 }
0x1392   :  { %v2201_v57 = vsub.f32 %v2193_v41, %v2199_v55 }
0x1394   :  { %v4379_v56 = vpop.eup %4378  ;;  %v2204_v7 = vmul.f32 1.442695, %v2201_v57 }
0x1395   :  { %v2206_v15 = vsel %vm133_vm2, %v4379_v56, 0.0 }
0x1396   :  { %4380 = vpow2.f32 %v2204_v7  ;;  %2207 = vadd.xlane.f32.xlu2 %v2206_v15 }
0x139c   :  { %v4381_v60 = vpop.eup %4380 }
0x139d   :  { %v2209_v61 = vsel %vm133_vm2, %v4381_v60, 0.0 }
0x139e   :  { %2210 = vadd.xlane.f32.xlu0 %v2209_v61 }
0x1409   :  { %v2208_v63 = vpop.xlane.xlu2 %2207 }
0x140a   :  { %4382 = vrcp.f32 %v2208_v63  ;;  %v2500_v63 = vld [vmem:[#allocation10 + $0x710] sm:$0xff] }
0x1410   :  { %v4383_v50 = vpop.eup %4382 }
0x1411   :  { %v2214_v44 = vmul.f32 %v4383_v50, %v4379_v56  ;;  %v2211_v58 = vpop.xlane.xlu0 %2210  ;;  %v2499_v50 = vld [vmem:[#allocation10 + $0x708] sm:$0xff] }
0x1412   :  { %4384 = vrcp.f32 %v2211_v58 }
0x1413   :  { %4245 = vmatmul.msk.f32.vlgmr.msrb.gmra.mxu1 %vm133_vm2, %v2214_v44  ;;  %v2498_v44 = vld [vmem:[#allocation10 + $0x700] sm:$0xff] }
0x1414   :  { %2517 = vmatpush.msrb.mxu1 %v2491_v34 }
0x1416   :  { %2518 = vmatpush.msrb.mxu1 %v2490_v0 }
0x1418   :  { %v4385_v12 = vpop.eup %4384  ;;  %2519 = vmatpush.msrb.mxu1 %v2489_v52 }
0x1419   :  { %v2215_v13 = vmul.f32 %v4385_v12, %v4381_v60  ;;  %v2700_v12 = vld [vmem:[#allocation10 + $0x550] sm:$0xff] }
0x141a   :  { %2520 = vmatpush.msrb.mxu1 %v2488_v6  ;;  %v2701_v6 = vld [vmem:[#allocation10 + $0x558] sm:$0xff] }
0x141b   :  { %4246 = vmatmul.msk.f32.gmra.mxu1 %vm133_vm2, %v2215_v13  ;;  %v2699_v13 = vld [vmem:[#allocation10 + $0x548] sm:$0xff] }
0x1423   :  { %4253 = vmatmul.msk.f32.vlgmr.msra.gmra.mxu1 %vm163_vm5, %v4997_v53 }
0x142b   :  { %4254 = vmatmul.msk.f32.gmra.mxu1 %vm163_vm5, %v5006_v3 }
0x1433   :  { %4263 = vmatmul.msk.f32.vlgmr.msrb.gmra.mxu1 %vm163_vm5, %v4997_v53 }
0x143b   :  { %4264 = vmatmul.msk.f32.gmra.mxu1 %vm163_vm5, %v5006_v3 }
0x1490   :  { %v2239_v19 = vpop.f32.mrf.mxu1 }
0x1491   :  { %4247 = vmatmul.msk.f32.vlgmr.msra.gmra.mxu2 %vm1117_vm6, %v2239_v19 }
0x1492   :  { %2543 = vmatpush.msra.mxu2 %v2496_v16  ;;  %v2698_v16 = vld [vmem:[#allocation10 + $0x540] sm:$0xff] }
0x1494   :  { %2544 = vmatpush.msra.mxu2 %v2495_v20 }
0x1496   :  { %2545 = vmatpush.msra.mxu2 %v2494_v21  ;;  %v2706_v21 = vld [vmem:[#allocation10 + $0x658] sm:$0xff] }
0x1498   :  { %v2242_v5 = vpop.f32.mrf.mxu1  ;;  %2546 = vmatpush.msra.mxu2 %v2493_v22 }
0x1499   :  { %4248 = vmatmul.msk.f32.gmra.mxu2 %vm1117_vm6, %v2242_v5  ;;  %v2703_v5 = vld [vmem:[#allocation10 + $0x640] sm:$0xff] }
0x14a0   :  { %v2362_v27 = vpop.f32.mrf.mxu1 }
0x14a1   :  { %4257 = vmatmul.msk.f32.vlgmr.msrb.gmra.mxu2 %vm1117_vm6, %v2318_v25  ;;  %v2363_v33 = vadd.f32 %v2362_v27, %v2344_v30  ;;  %v2504_v25 = vperm.slane %v5027_v46, 2 }
0x14a8   :  { %v2365_v31 = vpop.f32.mrf.mxu1 }
0x14a9   :  { %v2366_v32 = vadd.f32 %v2365_v31, %v2344_v30  ;;  %4258 = vmatmul.msk.f32.gmra.mxu2 %vm1117_vm6, %v2319_v29 }
0x14ab   :  { %2447 = vmatpush.msra.mxu0 %v2366_v32 }
0x14ad   :  { %2448 = vmatpush.msra.mxu0 %v2363_v33  ;;  %v2554_v33 = vperm.slane %v5021_v4, 2 }
0x14af   :  { %2567 = vmatpush.msrb.mxu0 %v2501_v59 }
0x14b0   :  { %v2522_v24 = vpop.f32.mrf.mxu1 }
0x14b1   :  { %4265 = vmatmul.msk.f32.vlgmr.msra.gmra.mxu2 %vm163_vm5, %v4997_v53  ;;  %2568 = vmatpush.msrb.mxu0 %v2500_v63  ;;  %v2523_v27 = vadd.f32 %v2522_v24, %v2504_v25 }
0x14b3   :  { %2569 = vmatpush.msrb.mxu0 %v2499_v50  ;;  %v2528_v28 = vmul.f32 0.35355338, %v2523_v27 }
0x14b5   :  { %2570 = vmatpush.msrb.mxu0 %v2498_v44 }
0x14b8   :  { %v2525_v29 = vpop.f32.mrf.mxu1 }
0x14b9   :  { %4266 = vmatmul.msk.f32.gmra.mxu2 %vm163_vm5, %v5006_v3  ;;  %v2526_v31 = vadd.f32 %v2525_v29, %v2504_v25  ;;  %v2714_v25 = vperm.slane %v5027_v46, 3 }
0x14bb   :  { %v2529_v32 = vmul.f32 0.35355338, %v2526_v31 }
0x1514   :  { %v5070_v35 = vpop.f32.mrf.mxu2 }
0x151c   :  { %v5072_v36 = vpop.f32.mrf.mxu2 }
0x1524   :  { %v2397_v40 = vpop.f32.mrf.mxu2 }
0x1525   :  { %v2403_v41 = vsel %vm4833_vm7, %v2397_v40, -1e+30 }
0x1526   :  { %v2405_v42 = vsel %vm133_vm2, %v2403_v41, -inf }
0x1527   :  { %2406 = vmax.xlane.f32.xlu1 %v2405_v42  ;;  %v2274_v42 = vperm.slane %v5021_v4, 4 }
0x152c   :  { %v2400_v39 = vpop.f32.mrf.mxu2 }
0x152d   :  { %v2404_v43 = vsel %vm4842_vm8, %v2400_v39, -1e+30  ;;  %v2275_v39 = vadd.f32 %v2274_v42, %v5070_v35 }
0x152e   :  { %v2408_v45 = vsel %vm133_vm2, %v2404_v43, -inf }
0x152f   :  { %2409 = vmax.xlane.f32.xlu2 %v2408_v45 }
0x1534   :  { %v2548_v47 = vpop.f32.mrf.mxu2 }
0x1535   :  { %v2549_v54 = vadd.f32 %v2548_v47, %v2530_v48  ;;  %v2276_v47 = vadd.f32 %v2274_v42, %v5072_v36 }
0x153c   :  { %v2551_v49 = vpop.f32.mrf.mxu2 }
0x153d   :  { %v2552_v51 = vadd.f32 %v2551_v49, %v2530_v48 }
0x153f   :  { %4269 = vmatpush.xpose.msk.msrb.mxu3 %vm1117_vm6, %v2552_v51  ;;  %v2503_v51 = vld [vmem:[#allocation10 + $0x800] sm:$0xff] }
0x1540   :  { %2687 = vmatpush.msrb.mxu2 %v2503_v51 }
0x1543   :  { %4270 = vmatpush.xpose.msk.msrb.mxu3 %vm1117_vm6, %v2549_v54 }
0x159a   :  { %v2407_v55 = vpop.xlane.xlu1 %2406 }
0x159b   :  { %v2411_v57 = vsub.f32 %v2403_v41, %v2407_v55 }
0x159d   :  { %v2413_v56 = vmul.f32 1.442695, %v2411_v57 }
0x159f   :  { %4386 = vpow2.f32 %v2413_v56 }
0x15a2   :  { %v2410_v7 = vpop.xlane.xlu2 %2409 }
0x15a3   :  { %v2412_v15 = vsub.f32 %v2404_v43, %v2410_v7 }
0x15a5   :  { %v4387_v60 = vpop.eup %4386  ;;  %v2415_v61 = vmul.f32 1.442695, %v2412_v15  ;;  %v2740_v15 = vperm.slane %v5027_v46, 7 }
0x15a6   :  { %v2417_v9 = vsel %vm133_vm2, %v4387_v60, 0.0 }
0x15a7   :  { %4388 = vpow2.f32 %v2415_v61  ;;  %2418 = vadd.xlane.f32.xlu0 %v2417_v9 }
0x15ad   :  { %v4389_v62 = vpop.eup %4388 }
0x15ae   :  { %v2420_v38 = vsel %vm133_vm2, %v4389_v62, 0.0 }
0x15af   :  { %2421 = vadd.xlane.f32.xlu1 %v2420_v38 }
0x161a   :  { %v2419_v58 = vpop.xlane.xlu0 %2418 }
0x161b   :  { %4390 = vrcp.f32 %v2419_v58 }
0x1621   :  { %v4391_v34 = vpop.eup %4390 }
0x1622   :  { %v2425_v0 = vmul.f32 %v4391_v34, %v4387_v60  ;;  %v2422_v52 = vpop.xlane.xlu1 %2421 }
0x1623   :  { %4392 = vrcp.f32 %v2422_v52 }
0x1624   :  { %4259 = vmatmul.msk.f32.vlgmr.msra.gmra.mxu0 %vm133_vm2, %v2425_v0 }
0x1625   :  { %2727 = vmatpush.msra.mxu0 %v2701_v6  ;;  %v2711_v6 = vld [vmem:[#allocation10 + $0x758] sm:$0xff] }
0x1627   :  { %2728 = vmatpush.msra.mxu0 %v2700_v12  ;;  %v2710_v12 = vld [vmem:[#allocation10 + $0x750] sm:$0xff] }
0x1629   :  { %v4393_v19 = vpop.eup %4392  ;;  %2729 = vmatpush.msra.mxu0 %v2699_v13  ;;  %v2709_v13 = vld [vmem:[#allocation10 + $0x748] sm:$0xff] }
0x162a   :  { %v2426_v20 = vmul.f32 %v4393_v19, %v4389_v62 }
0x162b   :  { %2730 = vmatpush.msra.mxu0 %v2698_v16  ;;  %v2708_v16 = vld [vmem:[#allocation10 + $0x740] sm:$0xff] }
0x162c   :  { %4260 = vmatmul.msk.f32.gmra.mxu0 %vm133_vm2, %v2426_v20 }
0x1634   :  { %4267 = vmatmul.msk.f32.vlgmr.msrb.gmra.mxu0 %vm163_vm5, %v4997_v53 }
0x163c   :  { %4268 = vmatmul.msk.f32.gmra.mxu0 %vm163_vm5, %v5006_v3 }
0x1644   :  { %4277 = vmatmul.msk.f32.vlgmr.msra.gmra.mxu0 %vm163_vm5, %v4997_v53 }
0x164c   :  { %4278 = vmatmul.msk.f32.gmra.mxu0 %vm163_vm5, %v5006_v3 }
0x16a1   :  { %v2450_v22 = vpop.f32.mrf.mxu0 }
0x16a2   :  { %4261 = vmatmul.msk.f32.vlgmr.msra.gmra.mxu3 %vm1117_vm6, %v2450_v22 }
0x16a3   :  { %2753 = vmatpush.msra.mxu3 %v2706_v21 }
0x16a5   :  { %2754 = vmatpush.msra.mxu3 %v2705_v23 }
0x16a7   :  { %2755 = vmatpush.msra.mxu3 %v2704_v2 }
0x16a9   :  { %v2453_v26 = vpop.f32.mrf.mxu0  ;;  %2756 = vmatpush.msra.mxu3 %v2703_v5 }
0x16aa   :  { %4262 = vmatmul.msk.f32.gmra.mxu3 %vm1117_vm6, %v2453_v26 }
0x16b1   :  { %v2572_v30 = vpop.f32.mrf.mxu0 }
0x16b2   :  { %4271 = vmatmul.msk.f32.vlgmr.msrb.gmra.mxu3 %vm1117_vm6, %v2528_v28  ;;  %v2573_v41 = vadd.f32 %v2572_v30, %v2554_v33 }
0x16b3   :  { %2897 = vmatpush.msrb.mxu3 %v2713_v14 }
0x16b9   :  { %v2575_v37 = vpop.f32.mrf.mxu0 }
0x16ba   :  { %v2576_v40 = vadd.f32 %v2575_v37, %v2554_v33  ;;  %4272 = vmatmul.msk.f32.gmra.mxu3 %vm1117_vm6, %v2529_v32  ;;  %v2764_v33 = vperm.slane %v5021_v4, 3 }
0x16bc   :  { %2657 = vmatpush.msra.mxu1 %v2576_v40 }
0x16be   :  { %2658 = vmatpush.msra.mxu1 %v2573_v41 }
0x16c0   :  { %2777 = vmatpush.msrb.mxu1 %v2711_v6 }
0x16c1   :  { %v2732_v24 = vpop.f32.mrf.mxu0 }
0x16c2   :  { %4279 = vmatmul.msk.f32.vlgmr.msra.gmra.mxu3 %vm163_vm5, %v4997_v53  ;;  %2778 = vmatpush.msrb.mxu1 %v2710_v12  ;;  %v2733_v27 = vadd.f32 %v2732_v24, %v2714_v25 }
0x16c4   :  { %2779 = vmatpush.msrb.mxu1 %v2709_v13  ;;  %v2738_v28 = vmul.f32 0.35355338, %v2733_v27  ;;  %v2962_v27 = vld [vmem:[#allocation10 + $0x890] sm:$0xff] }
0x16c6   :  { %2780 = vmatpush.msrb.mxu1 %v2708_v16 }
0x16c9   :  { %v2735_v29 = vpop.f32.mrf.mxu0 }
0x16ca   :  { %4280 = vmatmul.msk.f32.gmra.mxu3 %vm163_vm5, %v5006_v3  ;;  %v2736_v31 = vadd.f32 %v2735_v29, %v2714_v25  ;;  %v2960_v29 = vld [vmem:[#allocation10 + $0x880] sm:$0xff] }
0x16cc   :  { %v2739_v32 = vmul.f32 0.35355338, %v2736_v31 }
0x1725   :  { %v2479_v43 = vpop.f32.mrf.mxu3 }
0x1726   :  { %v5107_v45 = vadd.f32 %v2479_v43, %v2275_v39 }
0x172d   :  { %v2482_v48 = vpop.f32.mrf.mxu3 }
0x172e   :  { %v5110_v49 = vadd.f32 %v2482_v48, %v2276_v47 }
0x1735   :  { %v2607_v54 = vpop.f32.mrf.mxu3 }
0x1736   :  { %v2613_v55 = vsel %vm4833_vm7, %v2607_v54, -1e+30 }
0x1737   :  { %v2615_v57 = vsel %vm133_vm2, %v2613_v55, -inf }
0x1738   :  { %2616 = vmax.xlane.f32.xlu2 %v2615_v57 }
0x173d   :  { %v2610_v56 = vpop.f32.mrf.mxu3 }
0x173e   :  { %v2614_v35 = vsel %vm4842_vm8, %v2610_v56, -1e+30 }
0x173f   :  { %v2618_v7 = vsel %vm133_vm2, %v2614_v35, -inf }
0x1740   :  { %2619 = vmax.xlane.f32.xlu0 %v2618_v7 }
0x1745   :  { %v2758_v36 = vpop.f32.mrf.mxu3 }
0x1746   :  { %v2759_v9 = vadd.f32 %v2758_v36, %v2740_v15 }
0x174d   :  { %v2761_v60 = vpop.f32.mrf.mxu3 }
0x174e   :  { %v2762_v61 = vadd.f32 %v2761_v60, %v2740_v15 }
0x1750   :  { %4283 = vmatpush.xpose.msk.msra.mxu2 %vm1117_vm6, %v2762_v61 }
0x1754   :  { %4284 = vmatpush.xpose.msk.msra.mxu2 %vm1117_vm6, %v2759_v9 }
0x17ab   :  { %v2617_v62 = vpop.xlane.xlu2 %2616 }
0x17ac   :  { %v2621_v38 = vsub.f32 %v2613_v55, %v2617_v62 }
0x17ae   :  { %v2623_v59 = vmul.f32 1.442695, %v2621_v38 }
0x17b0   :  { %4394 = vpow2.f32 %v2623_v59 }
0x17b3   :  { %v2620_v63 = vpop.xlane.xlu0 %2619 }
0x17b4   :  { %v2622_v50 = vsub.f32 %v2614_v35, %v2620_v63 }
0x17b6   :  { %v4395_v44 = vpop.eup %4394  ;;  %v2625_v58 = vmul.f32 1.442695, %v2622_v50 }
0x17b7   :  { %v2627_v34 = vsel %vm133_vm2, %v4395_v44, 0.0 }
0x17b8   :  { %4396 = vpow2.f32 %v2625_v58  ;;  %2628 = vadd.xlane.f32.xlu1 %v2627_v34 }
0x17be   :  { %v4397_v0 = vpop.eup %4396 }
0x17bf   :  { %v2630_v52 = vsel %vm133_vm2, %v4397_v0, 0.0 }
0x17c0   :  { %2631 = vadd.xlane.f32.xlu2 %v2630_v52 }
0x182b   :  { %v2629_v19 = vpop.xlane.xlu1 %2628 }
0x182c   :  { %4398 = vrcp.f32 %v2629_v19 }
0x1832   :  { %v4399_v20 = vpop.eup %4398 }
0x1833   :  { %v2635_v21 = vmul.f32 %v4399_v20, %v4395_v44  ;;  %v2632_v22 = vpop.xlane.xlu2 %2631 }
0x1834   :  { %4400 = vrcp.f32 %v2632_v22 }
0x1835   :  { %4273 = vmatmul.msk.f32.vlgmr.msra.gmra.mxu1 %vm133_vm2, %v2635_v21 }
0x183a   :  { %v4401_v23 = vpop.eup %4400 }
0x183b   :  { %v2636_v2 = vmul.f32 %v4401_v23, %v4397_v0 }
0x183d   :  { %4274 = vmatmul.msk.f32.gmra.mxu1 %vm133_vm2, %v2636_v2 }
0x1845   :  { %4281 = vmatmul.msk.f32.vlgmr.msrb.gmra.mxu1 %vm163_vm5, %v4997_v53 }
0x184d   :  { %4282 = vmatmul.msk.f32.gmra.mxu1 %vm163_vm5, %v5006_v3 }
0x18b2   :  { %v2660_v5 = vpop.f32.mrf.mxu1 }
0x18b3   :  { %4275 = vmatmul.msk.f32.vlgmr.msrb.gmra.mxu2 %vm1117_vm6, %v2660_v5 }
0x18ba   :  { %v2663_v26 = vpop.f32.mrf.mxu1 }
0x18bb   :  { %4276 = vmatmul.msk.f32.gmra.mxu2 %vm1117_vm6, %v2663_v26 }
0x18c2   :  { %v2782_v30 = vpop.f32.mrf.mxu1 }
0x18c3   :  { %4285 = vmatmul.msk.f32.vlgmr.msra.gmra.mxu2 %vm1117_vm6, %v2738_v28  ;;  %v2783_v41 = vadd.f32 %v2782_v30, %v2764_v33  ;;  %v2961_v28 = vld [vmem:[#allocation10 + $0x888] sm:$0xff] }
0x18ca   :  { %v2785_v37 = vpop.f32.mrf.mxu1 }
0x18cb   :  { %v2786_v40 = vadd.f32 %v2785_v37, %v2764_v33  ;;  %4286 = vmatmul.msk.f32.gmra.mxu2 %vm1117_vm6, %v2739_v32  ;;  %v2972_v33 = vld [vmem:[#allocation10 + $0x8f8] sm:$0xff]  ;;  %v2971_v37 = vld [vmem:[#allocation10 + $0x8f0] sm:$0xff] }
0x18cc   :  { %3020 = vmatpush.msrb.mxu2 %v2972_v33 }
0x18cd   :  { %2867 = vmatpush.msrb.mxu0 %v2786_v40  ;;  %v2970_v40 = vld [vmem:[#allocation10 + $0x8e8] sm:$0xff] }
0x18ce   :  { %3021 = vmatpush.msrb.mxu2 %v2971_v37  ;;  %v3169_v37 = vld [vmem:[#allocation7 + $0x98] sm:$0xff] }
0x18cf   :  { %2868 = vmatpush.msrb.mxu0 %v2783_v41 }
0x18d0   :  { %3022 = vmatpush.msrb.mxu2 %v2970_v40  ;;  %v3168_v40 = vld [vmem:[#allocation7 + $0x90] sm:$0xff] }
0x1936   :  { %v2689_v46 = vpop.f32.mrf.mxu2 }
0x1937   :  { %v2695_v42 = vadd.f32 %v2689_v46, %v5107_v45 }
0x193e   :  { %v2692_v39 = vpop.f32.mrf.mxu2 }
0x193f   :  { %v2696_v43 = vadd.f32 %v2692_v39, %v5110_v49 }
0x1946   :  { %v2817_v47 = vpop.f32.mrf.mxu2 }
0x1947   :  { %v2823_v48 = vsel %vm4833_vm7, %v2817_v47, -1e+30  ;;  %v2968_v47 = vld [vmem:[#allocation10 + $0x8d8] sm:$0xff] }
0x1948   :  { %v2825_v51 = vsel %vm133_vm2, %v2823_v48, -inf }
0x1949   :  { %2826 = vmax.xlane.f32.xlu0 %v2825_v51 }
0x194e   :  { %v2820_v54 = vpop.f32.mrf.mxu2 }
0x194f   :  { %v2824_v55 = vsel %vm4842_vm8, %v2820_v54, -1e+30 }
0x1950   :  { %v2828_v57 = vsel %vm133_vm2, %v2824_v55, -inf }
0x1951   :  { %2829 = vmax.xlane.f32.xlu1 %v2828_v57 }
0x19bc   :  { %v2827_v56 = vpop.xlane.xlu0 %2826 }
0x19bd   :  { %v2831_v35 = vsub.f32 %v2823_v48, %v2827_v56  ;;  %v5162_v56 = vld [vmem:[%s5304_s5 + $0x28] sm:$0x7]  ;;  %s4583_s5 = smov [#allocation11]  }
0x19be   :  { %s4095_s9 = sshll.u32 %s4583_s5, 4  ;;  %s4096_s9 = int_to_ptr.vmem [resolvable:$true] %s4095_s9 }
0x19bf   :  { %v2833_v45 = vmul.f32 1.442695, %v2831_v35 }
0x19c1   :  { %4402 = vpow2.f32 %v2833_v45 }
0x19c4   :  { %v2830_v7 = vpop.xlane.xlu1 %2829 }
0x19c5   :  { %v2832_v49 = vsub.f32 %v2824_v55, %v2830_v7  ;;  %v2953_v7 = vperm.slane %v5021_v4, 7 }
0x19c7   :  { %v4403_v36 = vpop.eup %4402  ;;  %v2835_v15 = vmul.f32 1.442695, %v2832_v49 }
0x19c8   :  { %v2837_v8 = vsel %vm133_vm2, %v4403_v36, 0.0 }
0x19c9   :  { %4404 = vpow2.f32 %v2835_v15  ;;  %2838 = vadd.xlane.f32.xlu2 %v2837_v8  ;;  %v2956_v15 = vperm.slane %v5162_v56, 0 }
0x19cf   :  { %v4405_v60 = vpop.eup %4404 }
0x19d0   :  { %v2840_v61 = vsel %vm133_vm2, %v4405_v60, 0.0 }
0x19d1   :  { %2841 = vadd.xlane.f32.xlu0 %v2840_v61 }
0x1a3c   :  { %v2839_v9 = vpop.xlane.xlu2 %2838 }
0x1a3d   :  { %4406 = vrcp.f32 %v2839_v9 }
0x1a43   :  { %v4407_v62 = vpop.eup %4406 }
0x1a44   :  { %v2845_v38 = vmul.f32 %v4407_v62, %v4403_v36  ;;  %v2842_v59 = vpop.xlane.xlu0 %2841 }
0x1a45   :  { %4408 = vrcp.f32 %v2842_v59 }
0x1a46   :  { %4287 = vmatmul.msk.f32.vlgmr.msrb.gmra.mxu0 %vm133_vm2, %v2845_v38 }
0x1a4b   :  { %v4409_v63 = vpop.eup %4408 }
0x1a4c   :  { %v2846_v50 = vmul.f32 %v4409_v63, %v4405_v60 }
0x1a4e   :  { %4288 = vmatmul.msk.f32.gmra.mxu0 %vm133_vm2, %v2846_v50 }
0x1ac3   :  { %v2870_v44 = vpop.f32.mrf.mxu0 }
0x1ac4   :  { %4289 = vmatmul.msk.f32.vlgmr.msrb.gmra.mxu3 %vm1117_vm6, %v2870_v44  ;;  %v2967_v44 = vld [vmem:[#allocation10 + $0x8d0] sm:$0xff] }
0x1acb   :  { %v2873_v58 = vpop.f32.mrf.mxu0 }
0x1acc   :  { %4290 = vmatmul.msk.f32.gmra.mxu3 %vm1117_vm6, %v2873_v58  ;;  %v2966_v58 = vld [vmem:[#allocation10 + $0x8c8] sm:$0xff] }
0x1b47   :  { %v2899_v34 = vpop.f32.mrf.mxu3 }
0x1b48   :  { %v2905_v0 = vadd.f32 %v2899_v34, %v2695_v42  ;;  %v2969_v42 = vld [vmem:[#allocation10 + $0x8e0] sm:$0xff] }
0x1b49   :  { %3023 = vmatpush.msrb.mxu2 %v2969_v42  ;;  %v2965_v34 = vld [vmem:[#allocation10 + $0x8c0] sm:$0xff]  ;;  %v3167_v42 = vld [vmem:[#allocation7 + $0x88] sm:$0xff] }
0x1b4a   :  { %v2907_v52 = vadd.f32 %v2905_v0, %v4997_v53  ;;  %v2973_v0 = vperm.slane %v5021_v4, 5 }
0x1b4b   :  { %3024 = vmatpush.msrb.mxu2 %v2968_v47 }
0x1b4c   :  { %v2909_v6 = vsel %vm163_vm5, %v2907_v52, 0.0 }
0x1b4d   :  { %2910 = vadd.xlane.f32.xlu1 %v2909_v6  ;;  %3025 = vmatpush.msrb.mxu2 %v2967_v44 }
0x1b4f   :  { %v2902_v12 = vpop.f32.mrf.mxu3  ;;  %3026 = vmatpush.msrb.mxu2 %v2966_v58 }
0x1b50   :  { %v2906_v13 = vadd.f32 %v2902_v12, %v2696_v43 }
0x1b51   :  { %3027 = vmatpush.msrb.mxu2 %v2965_v34 }
0x1b52   :  { %v2908_v16 = vadd.f32 %v2906_v13, %v5006_v3  ;;  %v2963_v3 = vld [vmem:[#allocation10 + $0x898] sm:$0xff] }
0x1b53   :  { %2992 = vmatpush.msra.mxu1 %v2963_v3 }
0x1b54   :  { %v2912_v19 = vsel %vm163_vm5, %v2908_v16, 0.0 }
0x1b55   :  { %2913 = vadd.xlane.f32.xlu2 %v2912_v19  ;;  %2993 = vmatpush.msra.mxu1 %v2962_v27 }
0x1b57   :  { %2994 = vmatpush.msra.mxu1 %v2961_v28 }
0x1b59   :  { %2995 = vmatpush.msra.mxu1 %v2960_v29 }
0x1b5b   :  { %3188 = vmatpush.msrb.mxu1 %v3169_v37  ;;  %v3343_v37 = vld [vmem:[#allocation7 + $0x270] sm:$0xff] }
0x1b5d   :  { %3189 = vmatpush.msrb.mxu1 %v3168_v40  ;;  %v3342_v40 = vld [vmem:[#allocation7 + $0x268] sm:$0xff] }
0x1b5f   :  { %3190 = vmatpush.msrb.mxu1 %v3167_v42  ;;  %v3339_v42 = vld [vmem:[#allocation7 + $0x250] sm:$0xff] }
0x1bc0   :  { %v2911_v20 = vpop.xlane.xlu1 %2910 }
0x1bc1   :  { %v2915_v21 = vmul.f32 %v2911_v20, %v4957_v1  ;;  %v3005_v20 = vperm.slane %v5021_v4, 6 }
0x1bc3   :  { %v2917_v22 = vsub.f32 %v2907_v52, %v2915_v21 }
0x1bc5   :  { %v2919_v23 = vmul.f32 %v2917_v22, %v2917_v22 }
0x1bc7   :  { %v2921_v2 = vsel %vm163_vm5, %v2919_v23, 0.0 }
0x1bc8   :  { %2922 = vadd.xlane.f32.xlu0 %v2921_v2  ;;  %v2914_v5 = vpop.xlane.xlu2 %2913 }
0x1bc9   :  { %v2916_v53 = vmul.f32 %v2914_v5, %v4957_v1 }
0x1bcb   :  { %v2918_v24 = vsub.f32 %v2908_v16, %v2916_v53 }
0x1bcd   :  { %v2920_v25 = vmul.f32 %v2918_v24, %v2918_v24 }
0x1bcf   :  { %v2924_v26 = vsel %vm163_vm5, %v2920_v25, 0.0 }
0x1bd0   :  { %2925 = vadd.xlane.f32.xlu1 %v2924_v26 }
0x1c3b   :  { %v2923_v30 = vpop.xlane.xlu0 %2922 }
0x1c3c   :  { %v2927_v31 = vmul.f32 %v2923_v30, %v4957_v1 }
0x1c3e   :  { %v2929_v32 = vadd.f32 1e-05, %v2927_v31 }
0x1c40   :  { %4410 = vrsqrt.f32 %v2929_v32  ;;  %vm2937_vm7 = vweird.f32 %v2929_v32 }
0x1c43   :  { %v2926_v41 = vpop.xlane.xlu1 %2925 }
0x1c44   :  { %v2928_v46 = vmul.f32 %v2926_v41, %v4957_v1 }
0x1c46   :  { %v4411_v39 = vpop.eup %4410  ;;  %v2930_v43 = vadd.f32 1e-05, %v2928_v46 }
0x1c47   :  { %v2932_v48 = vmul.f32 %v4411_v39, %v2929_v32  ;;  %vm2938_vm6 = vweird.f32 %v4411_v39 }
0x1c48   :  { %4412 = vrsqrt.f32 %v2930_v43  ;;  %vm2939_vm8 = vmor %vm2937_vm7, %vm2938_vm6  ;;  %vm2947_vm13 = vweird.f32 %v2930_v43 }
0x1c49   :  { %v2933_v51 = vmul.f32 %v4411_v39, %v2932_v48 }
0x1c4b   :  { %v2934_v54 = vmul.f32 0.5, %v2933_v51 }
0x1c4d   :  { %v2935_v55 = vsub.f32 1.5, %v2934_v54 }
0x1c4e   :  { %v4413_v57 = vpop.eup %4412 }
0x1c4f   :  { %v2936_v35 = vmul.f32 %v4411_v39, %v2935_v55  ;;  %v2942_v45 = vmul.f32 %v4413_v57, %v2930_v43  ;;  %vm2948_vm12 = vweird.f32 %v4413_v57  ;;  %v3166_v43 = vld [vmem:[#allocation7 + $0x80] sm:$0xff] }
0x1c50   :  { %vm2949_vm14 = vmor %vm2947_vm13, %vm2948_vm12  ;;  %3191 = vmatpush.msrb.mxu1 %v3166_v43  ;;  %v3337_v43 = vld [vmem:[#allocation7 + $0x240] sm:$0xff] }
0x1c51   :  { %v2940_v49 = vsel %vm2939_vm8, %v4411_v39, %v2936_v35  ;;  %v2943_v36 = vmul.f32 %v4413_v57, %v2942_v45 }
0x1c52   :  { %v2951_v8 = vmul.f32 %v2940_v49, %v2917_v22 }
0x1c53   :  { %v2944_v60 = vmul.f32 0.5, %v2943_v36 }
0x1c54   :  { %v2954_v61 = vmul.f32 %v2953_v7, %v2951_v8 }
0x1c55   :  { %v2945_v14 = vsub.f32 1.5, %v2944_v60 }
0x1c56   :  { %v2957_v9 = vadd.f32 %v2956_v15, %v2954_v61  ;;  %v4582_v61 = vmov 16.0  }
0x1c57   :  { %v2946_v62 = vmul.f32 %v4413_v57, %v2945_v14 }
0x1c58   :  { %4291 = vmatmul.msk.f32.vlgmr.msra.gmra.mxu1 %vm163_vm5, %v2957_v9 }
0x1c59   :  { %v2950_v38 = vsel %vm2949_vm14, %v4413_v57, %v2946_v62 }
0x1c5a   :  { %v2952_v59 = vmul.f32 %v2950_v38, %v2918_v24 }
0x1c5c   :  { %v2955_v63 = vmul.f32 %v2953_v7, %v2952_v59  ;;  %v3084_v59 = vperm.slane %v5162_v56, 2 }
0x1c5e   :  { %v2958_v50 = vadd.f32 %v2956_v15, %v2955_v63 }
0x1c60   :  { %4292 = vmatmul.msk.f32.gmra.mxu1 %vm163_vm5, %v2958_v50 }
0x1cd5   :  { %v2997_v52 = vpop.f32.mrf.mxu1 }
0x1cd6   :  { %v2998_v6 = vadd.f32 %v2997_v52, %v2973_v0 }
0x1cd8   :  { %v3003_v12 = vmax.f32 %v2998_v6, 0.0  ;;  %v3109_v6 = vld [vmem:[#allocation7 + $0x18] sm:$0xff] }
0x1cd9   :  { %3151 = vmatpush.msra.mxu3 %v3109_v6 }
0x1cda   :  { %4293 = vmatmul.msk.f32.vlgmr.msrb.gmra.mxu2 %vm1974_vm0, %v3003_v12  ;;  %v3108_v12 = vld [vmem:[#allocation7 + $0x10] sm:$0xff] }
0x1cdb   :  { %3152 = vmatpush.msra.mxu3 %v3108_v12 }
0x1cdd   :  { %v3000_v13 = vpop.f32.mrf.mxu1 }
0x1cde   :  { %v3001_v16 = vadd.f32 %v3000_v13, %v2973_v0 }
0x1ce0   :  { %v3004_v19 = vmax.f32 %v3001_v16, 0.0 }
0x1ce2   :  { %4294 = vmatmul.msk.f32.gmra.mxu2 %vm1974_vm0, %v3004_v19 }
0x1d5d   :  { %v3029_v21 = vpop.f32.mrf.mxu2 }
0x1d5e   :  { %v3030_v22 = vadd.f32 %v3029_v21, %v3005_v20 }
0x1d60   :  { %v3035_v23 = vadd.f32 %v3030_v22, %v2957_v9 }
0x1d62   :  { %v3037_v2 = vsel %vm163_vm5, %v3035_v23, 0.0 }
0x1d63   :  { %3038 = vadd.xlane.f32.xlu2 %v3037_v2 }
0x1d65   :  { %v3032_v5 = vpop.f32.mrf.mxu2 }
0x1d66   :  { %v3033_v53 = vadd.f32 %v3032_v5, %v3005_v20 }
0x1d68   :  { %v3036_v24 = vadd.f32 %v3033_v53, %v2958_v50 }
0x1d6a   :  { %v3040_v25 = vsel %vm163_vm5, %v3036_v24, 0.0 }
0x1d6b   :  { %3041 = vadd.xlane.f32.xlu0 %v3040_v25 }
0x1dd6   :  { %v3039_v26 = vpop.xlane.xlu2 %3038 }
0x1dd7   :  { %v3043_v3 = vmul.f32 %v3039_v26, %v4957_v1 }
0x1dd9   :  { %v3045_v27 = vsub.f32 %v3035_v23, %v3043_v3 }
0x1ddb   :  { %v3047_v28 = vmul.f32 %v3045_v27, %v3045_v27 }
0x1ddd   :  { %v3049_v29 = vsel %vm163_vm5, %v3047_v28, 0.0  ;;  %v3107_v28 = vld [vmem:[#allocation7 + $0x8] sm:$0xff] }
0x1dde   :  { %v3042_v4 = vpop.xlane.xlu0 %3041  ;;  %3050 = vadd.xlane.f32.xlu1 %v3049_v29  ;;  %3153 = vmatpush.msra.mxu3 %v3107_v28  ;;  %v3106_v29 = vld [vmem:[#allocation7] sm:$0xff]  ;;  %v3378_v28 = vld [vmem:[#allocation7 + $0x2b8] sm:$0xff] }
0x1ddf   :  { %v3044_v30 = vmul.f32 %v3042_v4, %v4957_v1  ;;  %v3205_v4 = vld [vmem:[#allocation7 + $0x118] sm:$0xff] }
0x1de0   :  { %3154 = vmatpush.msra.mxu3 %v3106_v29  ;;  %v3377_v29 = vld [vmem:[#allocation7 + $0x2b0] sm:$0xff] }
0x1de1   :  { %v3046_v31 = vsub.f32 %v3036_v24, %v3044_v30  ;;  %v3204_v30 = vld [vmem:[#allocation7 + $0x110] sm:$0xff] }
0x1de3   :  { %v3048_v32 = vmul.f32 %v3046_v31, %v3046_v31 }
0x1de5   :  { %v3052_v33 = vsel %vm163_vm5, %v3048_v32, 0.0  ;;  %v3202_v32 = vld [vmem:[#allocation7 + $0x100] sm:$0xff] }
0x1de6   :  { %3053 = vadd.xlane.f32.xlu2 %v3052_v33  ;;  %v3344_v33 = vld [vmem:[#allocation7 + $0x278] sm:$0xff] }
0x1e51   :  { %v3051_v41 = vpop.xlane.xlu1 %3050 }
0x1e52   :  { %v3055_v46 = vmul.f32 %v3051_v41, %v4957_v1  ;;  %v3341_v41 = vld [vmem:[#allocation7 + $0x260] sm:$0xff] }
0x1e54   :  { %v3057_v39 = vadd.f32 1e-05, %v3055_v46  ;;  %v3340_v46 = vld [vmem:[#allocation7 + $0x258] sm:$0xff] }
0x1e56   :  { %4414 = vrsqrt.f32 %v3057_v39  ;;  %vm3065_vm0 = vweird.f32 %v3057_v39 }
0x1e59   :  { %v3054_v47 = vpop.xlane.xlu2 %3053 }
0x1e5a   :  { %v3056_v48 = vmul.f32 %v3054_v47, %v4957_v1  ;;  %v3081_v1 = vperm.slane %v5162_v56, 1  ;;  %v3336_v47 = vld [vmem:[#allocation7 + $0x238] sm:$0xff] }
0x1e5c   :  { %v4415_v51 = vpop.eup %4414  ;;  %v3058_v54 = vadd.f32 1e-05, %v3056_v48 }
0x1e5d   :  { %v3060_v55 = vmul.f32 %v4415_v51, %v3057_v39  ;;  %vm3066_vm15 = vweird.f32 %v4415_v51  ;;  %v3338_v39 = vld [vmem:[#allocation7 + $0x248] sm:$0xff] }
0x1e5e   :  { %4416 = vrsqrt.f32 %v3058_v54  ;;  %vm3067_vm1 = vmor %vm3065_vm0, %vm3066_vm15  ;;  %vm3075_vm4 = vweird.f32 %v3058_v54 }
0x1e5f   :  { %v3061_v57 = vmul.f32 %v4415_v51, %v3060_v55  ;;  %4418 = vrcp.f32 %v4582_v61  ;;  %v3278_v61 = vld [vmem:[#allocation7 + $0x1f8] sm:$0xff] }
0x1e60   :  { %3302 = vmatpush.msra.mxu1 %v3278_v61  ;;  %v3507_v61 = vld [vmem:[#allocation7 + $0x398] sm:$0xff] }
0x1e61   :  { %v3062_v35 = vmul.f32 0.5, %v3061_v57 }
0x1e63   :  { %v3063_v45 = vsub.f32 1.5, %v3062_v35 }
0x1e64   :  { %v4417_v7 = vpop.eup %4416 }
0x1e65   :  { %v3064_v49 = vmul.f32 %v4415_v51, %v3063_v45  ;;  %v3070_v36 = vmul.f32 %v4417_v7, %v3058_v54  ;;  %vm3076_vm3 = vweird.f32 %v4417_v7  ;;  %v4419_v63 = vpop.eup %4418  ;;  %v3334_v54 = vld [vmem:[#allocation7 + $0x228] sm:$0xff]  ;;  %v3333_v45 = vld [vmem:[#allocation7 + $0x220] sm:$0xff] }
0x1e66   :  { %vm3077_vm9 = vmor %vm3075_vm4, %vm3076_vm3  ;;  %v3097_v0 = vmul.f32 16.0, %v4419_v63  ;;  %vm3101_vm10 = vweird.f32 %v4419_v63 }
0x1e67   :  { %v3068_v15 = vsel %vm3067_vm1, %v4415_v51, %v3064_v49  ;;  %v3071_v8 = vmul.f32 %v4417_v7, %v3070_v36  ;;  %v3335_v51 = vld [vmem:[#allocation7 + $0x230] sm:$0xff]  ;;  %v3330_v36 = vld [vmem:[#allocation7 + $0x208] sm:$0xff] }
0x1e68   :  { %v3079_v14 = vmul.f32 %v3068_v15, %v3045_v27  ;;  %v3098_v19 = vsub.f32 1.0, %v3097_v0  ;;  %v3331_v49 = vld [vmem:[#allocation7 + $0x210] sm:$0xff]  ;;  %v3329_v15 = vld [vmem:[#allocation7 + $0x200] sm:$0xff] }
0x1e69   :  { %v3072_v60 = vmul.f32 0.5, %v3071_v8  ;;  %v5198_v8 = vld [vmem:[#allocation8] sm:$0xff] }
0x1e6a   :  { %v3082_v38 = vmul.f32 %v3081_v1, %v3079_v14  ;;  %v3099_v22 = vmul.f32 %v4419_v63, %v3098_v19  ;;  %v3276_v14 = vld [vmem:[#allocation7 + $0x1e8] sm:$0xff] }
0x1e6b   :  { %v3073_v9 = vsub.f32 1.5, %v3072_v60  ;;  %v3162_v60 = vperm.slane %v5198_v8, 6 }
0x1e6c   :  { %v3085_v34 = vadd.f32 %v3084_v59, %v3082_v38  ;;  %v3100_v2 = vadd.f32 %v4419_v63, %v3099_v22 }
0x1e6d   :  { %v3074_v62 = vmul.f32 %v4417_v7, %v3073_v9 }
0x1e6e   :  { %v3087_v13 = vsel %vm163_vm5, %v3085_v34, 0.0  ;;  %v3102_v24 = vsel %vm3101_vm10, %v4419_v63, %v3100_v2  ;;  %v3275_v63 = vld [vmem:[#allocation7 + $0x1e0] sm:$0xff]  ;;  %v3386_v2 = vld [vmem:[#allocation7 + $0x2f8] sm:$0xff] }
0x1e6f   :  { %v3078_v50 = vsel %vm3077_vm9, %v4417_v7, %v3074_v62  ;;  %v3332_v7 = vld [vmem:[#allocation7 + $0x218] sm:$0xff] }
0x1e70   :  { %v3080_v44 = vmul.f32 %v3078_v50, %v3046_v31  ;;  %v3203_v31 = vld [vmem:[#allocation7 + $0x108] sm:$0xff] }
0x1e72   :  { %v3083_v58 = vmul.f32 %v3081_v1, %v3080_v44  ;;  %v3277_v1 = vld [vmem:[#allocation7 + $0x1f0] sm:$0xff]  ;;  %v3274_v44 = vld [vmem:[#allocation7 + $0x1d8] sm:$0xff] }
0x1e73   :  { %3303 = vmatpush.msra.mxu1 %v3277_v1 }
0x1e74   :  { %v3086_v52 = vadd.f32 %v3084_v59, %v3083_v58 }
0x1e75   :  { %3304 = vmatpush.msra.mxu1 %v3276_v14  ;;  %v3506_v14 = vld [vmem:[#allocation7 + $0x390] sm:$0xff] }
0x1e76   :  { %v3088_v16 = vsel %vm163_vm5, %v3086_v52, 0.0 }
0x1e77   :  { %v3089_v20 = vadd.f32 %v3088_v16, %v3087_v13  ;;  %3305 = vmatpush.msra.mxu1 %v3275_v63  ;;  %v3271_v13 = vld [vmem:[#allocation7 + $0x1c0] sm:$0xff] }
0x1e79   :  { %v3090_v21 = vrot.slane %v3089_v20, 4  ;;  %3306 = vmatpush.msra.mxu1 %v3274_v44  ;;  %v3711_v44 = vld [vmem:[#allocation7 + $0x5e8] sm:$0xff] }
0x1e7b   :  { %v3091_v56 = vadd.f32 %v3090_v21, %v3089_v20  ;;  %v3270_v21 = vld [vmem:[#allocation7 + $0x1b8] sm:$0xff] }
0x1e7d   :  { %v3092_v23 = vrot.slane %v3091_v56, 2 }
0x1e7f   :  { %v3093_v5 = vadd.f32 %v3092_v23, %v3091_v56  ;;  %v3269_v56 = vld [vmem:[#allocation7 + $0x1b0] sm:$0xff] }
0x1e81   :  { %v3094_v53 = vrot.slane %v3093_v5, 1 }
0x1e83   :  { %v3095_v25 = vadd.f32 %v3094_v53, %v3093_v5  ;;  %v3385_v5 = vld [vmem:[#allocation7 + $0x2f0] sm:$0xff]  ;;  %v3384_v53 = vld [vmem:[#allocation7 + $0x2e8] sm:$0xff] }
0x1e85   :  { %v3103_v26 = vmul.f32 %v3102_v24, %v3095_v25  ;;  %v3383_v24 = vld [vmem:[#allocation7 + $0x2e0] sm:$0xff]  ;;  %v3382_v25 = vld [vmem:[#allocation7 + $0x2d8] sm:$0xff] }
0x1e87   :  { %v3104_v3 = vsub.f32 %v3085_v34, %v3103_v26  ;;  %v3105_v27 = vsub.f32 %v3086_v52, %v3103_v26  ;;  %v3273_v34 = vld [vmem:[#allocation7 + $0x1d0] sm:$0xff]  ;;  %v3272_v52 = vld [vmem:[#allocation7 + $0x1c8] sm:$0xff] }
0x1e88   :  { %3307 = vmatpush.msra.mxu1 %v3273_v34  ;;  %v3381_v26 = vld [vmem:[#allocation7 + $0x2d0] sm:$0xff]  ;;  %v3709_v34 = vld [vmem:[#allocation7 + $0x5d8] sm:$0xff] }
0x1e89   :  { %3124 = vmatpush.msra.mxu0 %v3105_v27  ;;  %4299 = vmatmul.msk.f32.vlgmr.msrb.gmra.mxu1 %vm163_vm5, %v3104_v3 }
0x1e8a   :  { %3220 = vmatpush.msra.mxu2 %v3105_v27  ;;  %3308 = vmatpush.msra.mxu1 %v3272_v52  ;;  %v3708_v52 = vld [vmem:[#allocation7 + $0x5d0] sm:$0xff] }
0x1e8b   :  { %3125 = vmatpush.msra.mxu0 %v3104_v3 }
0x1e8c   :  { %3221 = vmatpush.msra.mxu2 %v3104_v3  ;;  %4295 = vmatmul.msk.f32.vlgmr.msra.gmra.mxu0 %vm133_vm2, %v4660_v10  ;;  %v3380_v3 = vld [vmem:[#allocation7 + $0x2c8] sm:$0xff] }
0x1e8d   :  { %4301 = vmatmul.msk.f32.vlgmr.msra.gmra.mxu2 %vm133_vm2, %v4662_v11  ;;  %3247 = vmatpush.msrb.mxu0 %v3205_v4  ;;  %v3376_v4 = vld [vmem:[#allocation7 + $0x2a8] sm:$0xff] }
0x1e8e   :  { %3345 = vmatpush.msrb.mxu2 %v3344_v33  ;;  %3309 = vmatpush.msra.mxu1 %v3271_v13  ;;  %v3374_v33 = vld [vmem:[#allocation7 + $0x298] sm:$0xff] }
0x1e8f   :  { %3248 = vmatpush.msrb.mxu0 %v3204_v30  ;;  %v3268_v30 = vld [vmem:[#allocation7 + $0x1a8] sm:$0xff]  ;;  %v3705_v13 = vld [vmem:[#allocation7 + $0x5b8] sm:$0xff] }
0x1e90   :  { %3346 = vmatpush.msrb.mxu2 %v3343_v37  ;;  %3310 = vmatpush.msra.mxu1 %v3270_v21  ;;  %v3266_v37 = vld [vmem:[#allocation7 + $0x198] sm:$0xff] }
0x1e91   :  { %4300 = vmatmul.msk.f32.gmra.mxu1 %vm163_vm5, %v3105_v27  ;;  %3249 = vmatpush.msrb.mxu0 %v3203_v31  ;;  %v3379_v27 = vld [vmem:[#allocation7 + $0x2c0] sm:$0xff]  ;;  %v3701_v21 = vld [vmem:[#allocation7 + $0x598] sm:$0xff] }
0x1e92   :  { %3347 = vmatpush.msrb.mxu2 %v3342_v40  ;;  %3311 = vmatpush.msra.mxu1 %v3269_v56  ;;  %v3375_v31 = vld [vmem:[#allocation7 + $0x2a0] sm:$0xff]  ;;  %v3373_v40 = vld [vmem:[#allocation7 + $0x290] sm:$0xff]  ;;  %v3699_v56 = vld [vmem:[#allocation7 + $0x588] sm:$0xff] }
0x1e93   :  { %3250 = vmatpush.msrb.mxu0 %v3202_v32  ;;  %v3267_v32 = vld [vmem:[#allocation7 + $0x1a0] sm:$0xff] }
0x1e94   :  { %4296 = vmatmul.msk.f32.gmra.mxu0 %vm133_vm2, %v4672_v17  ;;  %3348 = vmatpush.msrb.mxu2 %v3341_v41  ;;  %v3265_v41 = vld [vmem:[#allocation7 + $0x190] sm:$0xff] }
0x1e95   :  { %4302 = vmatmul.msk.f32.gmra.mxu2 %vm133_vm2, %v4674_v18  ;;  %3312 = vmatpush.msra.mxu1 %v3268_v30 }
0x1e96   :  { %3349 = vmatpush.msrb.mxu2 %v3340_v46  ;;  %v3372_v46 = vld [vmem:[#allocation7 + $0x288] sm:$0xff] }
0x1e97   :  { %3313 = vmatpush.msra.mxu1 %v3267_v32 }
0x1e98   :  { %3350 = vmatpush.msrb.mxu2 %v3339_v42  ;;  %v3264_v42 = vld [vmem:[#allocation7 + $0x188] sm:$0xff] }
0x1e99   :  { %3314 = vmatpush.msra.mxu1 %v3266_v37 }
0x1e9a   :  { %3351 = vmatpush.msrb.mxu2 %v3338_v39  ;;  %v3371_v39 = vld [vmem:[#allocation7 + $0x280] sm:$0xff] }
0x1e9b   :  { %3315 = vmatpush.msra.mxu1 %v3265_v41  ;;  %v3626_v41 = vld [vmem:[#allocation7 + $0x4e8] sm:$0xff] }
0x1e9c   :  { %3352 = vmatpush.msrb.mxu2 %v3337_v43  ;;  %v3263_v43 = vld [vmem:[#allocation7 + $0x180] sm:$0xff] }
0x1e9d   :  { %3316 = vmatpush.msra.mxu1 %v3264_v42  ;;  %v3624_v42 = vld [vmem:[#allocation7 + $0x4d8] sm:$0xff] }
0x1e9e   :  { %3353 = vmatpush.msrb.mxu2 %v3336_v47  ;;  %v3519_v47 = vld [vmem:[#allocation7 + $0x3f8] sm:$0xff] }
0x1e9f   :  { %3317 = vmatpush.msra.mxu1 %v3263_v43  ;;  %v3453_v43 = vld [vmem:[#allocation7 + $0x378] sm:$0xff] }
0x1ea0   :  { %3354 = vmatpush.msrb.mxu2 %v3335_v51  ;;  %v3517_v51 = vld [vmem:[#allocation7 + $0x3e8] sm:$0xff] }
0x1ea1   :  { %3477 = vmatpush.msrb.mxu1 %v3453_v43 }
0x1ea2   :  { %3355 = vmatpush.msrb.mxu2 %v3334_v54  ;;  %v3516_v54 = vld [vmem:[#allocation7 + $0x3e0] sm:$0xff] }
0x1ea4   :  { %3356 = vmatpush.msrb.mxu2 %v3333_v45  ;;  %v3512_v45 = vld [vmem:[#allocation7 + $0x3c0] sm:$0xff] }
0x1ea6   :  { %3357 = vmatpush.msrb.mxu2 %v3332_v7  ;;  %v3511_v7 = vld [vmem:[#allocation7 + $0x3b8] sm:$0xff] }
0x1ea8   :  { %3358 = vmatpush.msrb.mxu2 %v3331_v49  ;;  %v3510_v49 = vld [vmem:[#allocation7 + $0x3b0] sm:$0xff] }
0x1eaa   :  { %3359 = vmatpush.msrb.mxu2 %v3330_v36 }
0x1eac   :  { %3360 = vmatpush.msrb.mxu2 %v3329_v15  ;;  %v3509_v15 = vld [vmem:[#allocation7 + $0x3a8] sm:$0xff] }
0x1eae   :  { %3520 = vmatpush.msra.mxu2 %v3519_v47  ;;  %v3452_v47 = vld [vmem:[#allocation7 + $0x370] sm:$0xff] }
0x1eaf   :  { %3478 = vmatpush.msrb.mxu1 %v3452_v47 }
0x1f06   :  { %v3193_v9 = vpop.f32.mrf.mxu1 }
0x1f09   :  { %v3127_v48 = vpop.f32.mrf.mxu0 }
0x1f0a   :  { %4297 = vmatmul.msk.f32.vlgmr.msra.gmra.mxu3 %vm163_vm5, %v3127_v48  ;;  %v3518_v48 = vld [vmem:[#allocation7 + $0x3f0] sm:$0xff] }
0x1f0b   :  { %3521 = vmatpush.msra.mxu2 %v3518_v48  ;;  %v3622_v48 = vld [vmem:[#allocation7 + $0x4c8] sm:$0xff] }
0x1f0d   :  { %3522 = vmatpush.msra.mxu2 %v3517_v51  ;;  %v3451_v51 = vld [vmem:[#allocation7 + $0x368] sm:$0xff] }
0x1f0e   :  { %v3196_v16 = vpop.f32.mrf.mxu1  ;;  %3479 = vmatpush.msrb.mxu1 %v3451_v51 }
0x1f0f   :  { %3523 = vmatpush.msra.mxu2 %v3516_v54  ;;  %v3621_v54 = vld [vmem:[#allocation7 + $0x4c0] sm:$0xff] }
0x1f10   :  { %v3223_v55 = vpop.f32.mrf.mxu2 }
0x1f11   :  { %v3130_v57 = vpop.f32.mrf.mxu0  ;;  %4303 = vmatmul.msk.f32.vlgmr.msrb.gmra.mxu0 %vm163_vm5, %v3223_v55  ;;  %v3515_v55 = vld [vmem:[#allocation7 + $0x3d8] sm:$0xff] }
0x1f12   :  { %4298 = vmatmul.msk.f32.gmra.mxu3 %vm163_vm5, %v3130_v57  ;;  %v3514_v57 = vld [vmem:[#allocation7 + $0x3d0] sm:$0xff]  ;;  %3524 = vmatpush.msra.mxu2 %v3515_v55  ;;  %v3450_v55 = vld [vmem:[#allocation7 + $0x360] sm:$0xff] }
0x1f13   :  { %3480 = vmatpush.msrb.mxu1 %v3450_v55 }
0x1f14   :  { %3525 = vmatpush.msra.mxu2 %v3514_v57  ;;  %v3561_v57 = vld [vmem:[#allocation7 + $0x478] sm:$0xff] }
0x1f18   :  { %v3226_v35 = vpop.f32.mrf.mxu2 }
0x1f19   :  { %4304 = vmatmul.msk.f32.gmra.mxu0 %vm163_vm5, %v3226_v35  ;;  %v3513_v35 = vld [vmem:[#allocation7 + $0x3c8] sm:$0xff] }
0x1f1a   :  { %3526 = vmatpush.msra.mxu2 %v3513_v35  ;;  %v3620_v35 = vld [vmem:[#allocation7 + $0x4b8] sm:$0xff] }
0x1f1c   :  { %3527 = vmatpush.msra.mxu2 %v3512_v45  ;;  %v3449_v45 = vld [vmem:[#allocation7 + $0x358] sm:$0xff] }
0x1f1d   :  { %3481 = vmatpush.msrb.mxu1 %v3449_v45 }
0x1f1e   :  { %3528 = vmatpush.msra.mxu2 %v3511_v7  ;;  %v3560_v7 = vld [vmem:[#allocation7 + $0x470] sm:$0xff] }
0x1f20   :  { %3529 = vmatpush.msra.mxu2 %v3510_v49  ;;  %v3559_v49 = vld [vmem:[#allocation7 + $0x468] sm:$0xff] }
0x1f22   :  { %3530 = vmatpush.msra.mxu2 %v3509_v15  ;;  %v3448_v15 = vld [vmem:[#allocation7 + $0x350] sm:$0xff] }
0x1f23   :  { %3482 = vmatpush.msrb.mxu1 %v3448_v15 }
0x1f8d   :  { %v3156_v62 = vpop.f32.mrf.mxu3 }
0x1f8e   :  { %v3163_v38 = vadd.f32 %v3162_v60, %v3156_v62  ;;  %v3252_v59 = vpop.f32.mrf.mxu0  ;;  %v3505_v62 = vld [vmem:[#allocation7 + $0x388] sm:$0xff] }
0x1f90   :  { %v3199_v50 = vadd.f32 %v3193_v9, %v3163_v38  ;;  %v3504_v38 = vld [vmem:[#allocation7 + $0x380] sm:$0xff] }
0x1f92   :  { %v3258_v58 = vadd.f32 %v3252_v59, %v3199_v50  ;;  %v3713_v59 = vld [vmem:[#allocation7 + $0x5f8] sm:$0xff]  ;;  %v3712_v50 = vld [vmem:[#allocation7 + $0x5f0] sm:$0xff] }
0x1f94   :  { %v5201_v0 = vmax.f32 %v3258_v58, 0.0  ;;  %v3710_v58 = vld [vmem:[#allocation7 + $0x5e0] sm:$0xff] }
0x1f95   :  { %v3159_v6 = vpop.f32.mrf.mxu3 }
0x1f96   :  { %v3164_v12 = vadd.f32 %v3162_v60, %v3159_v6  ;;  %3361 = vmatmul.f32.vlgmr.msrb.gmra.mxu2 %v5201_v0  ;;  %v3255_v19 = vpop.f32.mrf.mxu0  ;;  %v3508_v60 = vld [vmem:[#allocation7 + $0x3a0] sm:$0xff]  ;;  %v3707_v6 = vld [vmem:[#allocation7 + $0x5c8] sm:$0xff] }
0x1f97   :  { %3531 = vmatpush.msra.mxu2 %v3508_v60  ;;  %v3558_v60 = vld [vmem:[#allocation7 + $0x460] sm:$0xff] }
0x1f98   :  { %v3200_v20 = vadd.f32 %v3196_v16, %v3164_v12  ;;  %v3706_v12 = vld [vmem:[#allocation7 + $0x5c0] sm:$0xff]  ;;  %v3704_v16 = vld [vmem:[#allocation7 + $0x5b0] sm:$0xff] }
0x1f99   :  { %3532 = vmatpush.msra.mxu2 %v3507_v61  ;;  %v3618_v61 = vld [vmem:[#allocation7 + $0x4a8] sm:$0xff] }
0x1f9a   :  { %v3259_v22 = vadd.f32 %v3255_v19, %v3200_v20  ;;  %v3703_v19 = vld [vmem:[#allocation7 + $0x5a8] sm:$0xff]  ;;  %v3702_v20 = vld [vmem:[#allocation7 + $0x5a0] sm:$0xff] }
0x1f9b   :  { %3533 = vmatpush.msra.mxu2 %v3506_v14  ;;  %v3447_v14 = vld [vmem:[#allocation7 + $0x348] sm:$0xff] }
0x1f9c   :  { %v5204_v23 = vmax.f32 %v3259_v22, 0.0  ;;  %v3700_v22 = vld [vmem:[#allocation7 + $0x590] sm:$0xff]  ;;  %3483 = vmatpush.msrb.mxu1 %v3447_v14 }
0x1f9d   :  { %3534 = vmatpush.msra.mxu2 %v3505_v62  ;;  %v3617_v62 = vld [vmem:[#allocation7 + $0x4a0] sm:$0xff] }
0x1f9e   :  { %3293 = vmatpush.msrb.mxu3 %v5204_v23  ;;  %3364 = vmatmul.f32.gmra.mxu2 %v5204_v23 }
0x1f9f   :  { %3401 = vmatpush.msra.mxu0 %v5204_v23  ;;  %3535 = vmatpush.msra.mxu2 %v3504_v38  ;;  %v3446_v38 = vld [vmem:[#allocation7 + $0x340] sm:$0xff] }
0x1fa0   :  { %3294 = vmatpush.msrb.mxu3 %v5201_v0  ;;  %3484 = vmatpush.msrb.mxu1 %v3446_v38 }
0x1fa1   :  { %3402 = vmatpush.msra.mxu0 %v5201_v0  ;;  %4305 = vmatmul.msk.f32.vlgmr.msrb.gmra.mxu3 %vm133_vm2, %v4660_v10 }
0x1fa2   :  { %4307 = vmatmul.msk.f32.vlgmr.msra.gmra.mxu0 %vm133_vm2, %v4662_v11  ;;  %3410 = vmatpush.msra.mxu3 %v3386_v2  ;;  %v3698_v2 = vld [vmem:[#allocation7 + $0x580] sm:$0xff] }
0x1fa3   :  { %3714 = vmatpush.msrb.mxu2 %v3713_v59  ;;  %v3616_v59 = vld [vmem:[#allocation7 + $0x498] sm:$0xff] }
0x1fa4   :  { %3411 = vmatpush.msra.mxu3 %v3385_v5  ;;  %v3325_v5 = vperm.slane %v5198_v8, 7  ;;  %v3628_v8 = vld [vmem:[#allocation7 + $0x4f8] sm:$0xff] }
0x1fa5   :  { %3715 = vmatpush.msrb.mxu2 %v3712_v50  ;;  %v3445_v50 = vld [vmem:[#allocation7 + $0x338] sm:$0xff] }
0x1fa6   :  { %3412 = vmatpush.msra.mxu3 %v3384_v53  ;;  %3485 = vmatpush.msrb.mxu1 %v3445_v50 }
0x1fa7   :  { %3716 = vmatpush.msrb.mxu2 %v3711_v44  ;;  %v3615_v44 = vld [vmem:[#allocation7 + $0x490] sm:$0xff] }
0x1fa8   :  { %3413 = vmatpush.msra.mxu3 %v3383_v24 }
0x1fa9   :  { %4306 = vmatmul.msk.f32.gmra.mxu3 %vm133_vm2, %v4672_v17  ;;  %3717 = vmatpush.msrb.mxu2 %v3710_v58  ;;  %v3444_v58 = vld [vmem:[#allocation7 + $0x330] sm:$0xff] }
0x1faa   :  { %4308 = vmatmul.msk.f32.gmra.mxu0 %vm133_vm2, %v4674_v18  ;;  %3414 = vmatpush.msra.mxu3 %v3382_v25 }
0x1fab   :  { %3718 = vmatpush.msrb.mxu2 %v3709_v34  ;;  %v3614_v34 = vld [vmem:[#allocation7 + $0x488] sm:$0xff]  ;;  %3486 = vmatpush.msrb.mxu1 %v3444_v58 }
0x1fac   :  { %3415 = vmatpush.msra.mxu3 %v3381_v26 }
0x1fad   :  { %3719 = vmatpush.msrb.mxu2 %v3708_v52  ;;  %v3443_v52 = vld [vmem:[#allocation7 + $0x328] sm:$0xff] }
0x1fae   :  { %3416 = vmatpush.msra.mxu3 %v3380_v3  ;;  %3487 = vmatpush.msrb.mxu1 %v3443_v52 }
0x1faf   :  { %3720 = vmatpush.msrb.mxu2 %v3707_v6  ;;  %v3613_v6 = vld [vmem:[#allocation7 + $0x480] sm:$0xff] }
0x1fb0   :  { %3417 = vmatpush.msra.mxu3 %v3379_v27 }
0x1fb1   :  { %3721 = vmatpush.msrb.mxu2 %v3706_v12  ;;  %v3442_v12 = vld [vmem:[#allocation7 + $0x320] sm:$0xff] }
0x1fb2   :  { %3418 = vmatpush.msra.mxu3 %v3378_v28  ;;  %3488 = vmatpush.msrb.mxu1 %v3442_v12 }
0x1fb3   :  { %3722 = vmatpush.msrb.mxu2 %v3705_v13  ;;  %v3441_v13 = vld [vmem:[#allocation7 + $0x318] sm:$0xff] }
0x1fb4   :  { %3419 = vmatpush.msra.mxu3 %v3377_v29  ;;  %3489 = vmatpush.msrb.mxu1 %v3441_v13 }
0x1fb5   :  { %3723 = vmatpush.msrb.mxu2 %v3704_v16  ;;  %v3440_v16 = vld [vmem:[#allocation7 + $0x310] sm:$0xff] }
0x1fb6   :  { %3420 = vmatpush.msra.mxu3 %v3376_v4  ;;  %3490 = vmatpush.msrb.mxu1 %v3440_v16 }
0x1fb7   :  { %3724 = vmatpush.msrb.mxu2 %v3703_v19  ;;  %v3439_v19 = vld [vmem:[#allocation7 + $0x308] sm:$0xff] }
0x1fb8   :  { %3421 = vmatpush.msra.mxu3 %v3375_v31  ;;  %3491 = vmatpush.msrb.mxu1 %v3439_v19  ;;  %v3823_v19 = vld [vmem:[#allocation7 + $0x6f8] sm:$0xff] }
0x1fb9   :  { %3725 = vmatpush.msrb.mxu2 %v3702_v20  ;;  %v3438_v20 = vld [vmem:[#allocation7 + $0x300] sm:$0xff] }
0x1fba   :  { %3422 = vmatpush.msra.mxu3 %v3374_v33  ;;  %3492 = vmatpush.msrb.mxu1 %v3438_v20  ;;  %v3822_v20 = vld [vmem:[#allocation7 + $0x6f0] sm:$0xff] }
0x1fbb   :  { %3726 = vmatpush.msrb.mxu2 %v3701_v21  ;;  %v3671_v21 = vld [vmem:[#allocation7 + $0x578] sm:$0xff] }
0x1fbc   :  { %3423 = vmatpush.msra.mxu3 %v3373_v40  ;;  %v3627_v40 = vld [vmem:[#allocation7 + $0x4f0] sm:$0xff] }
0x1fbd   :  { %3727 = vmatpush.msrb.mxu2 %v3700_v22  ;;  %v3670_v22 = vld [vmem:[#allocation7 + $0x570] sm:$0xff] }
0x1fbe   :  { %3424 = vmatpush.msra.mxu3 %v3372_v46  ;;  %v3625_v46 = vld [vmem:[#allocation7 + $0x4e0] sm:$0xff] }
0x1fbf   :  { %3728 = vmatpush.msrb.mxu2 %v3699_v56  ;;  %v3669_v56 = vld [vmem:[#allocation7 + $0x568] sm:$0xff] }
0x1fc0   :  { %3425 = vmatpush.msra.mxu3 %v3371_v39  ;;  %v3623_v39 = vld [vmem:[#allocation7 + $0x4d0] sm:$0xff] }
0x1fc1   :  { %3729 = vmatpush.msrb.mxu2 %v3698_v2  ;;  %v3668_v2 = vld [vmem:[#allocation7 + $0x560] sm:$0xff] }
0x1fc2   :  { %3585 = vmatpush.msrb.mxu3 %v3561_v57 }
0x1fc4   :  { %3586 = vmatpush.msrb.mxu3 %v3560_v7  ;;  %v5250_v7 = vld [vmem:[#allocation8 + $0x8] sm:$0xf] }
0x1fc6   :  { %3587 = vmatpush.msrb.mxu3 %v3559_v49  ;;  %v3500_v49 = vperm.slane %v5250_v7, 0 }
0x1fc8   :  { %3588 = vmatpush.msrb.mxu3 %v3558_v60  ;;  %v3652_v60 = vperm.slane %v5250_v7, 1 }
0x2019   :  { %v3362_v53 = vpop.f32.mrf.mxu2 }
0x201f   :  { %v5219_v36 = vpop.f32.mrf.mxu0 }
0x2020   :  { %3426 = vmatmul.f32.vlgmr.msra.gmra.mxu3 %v5219_v36 }
0x2021   :  { %v3365_v30 = vpop.f32.mrf.mxu2 }
0x2024   :  { %v5222_v1 = vpop.f32.mrf.mxu3 }
0x2025   :  { %3318 = vmatmul.f32.vlgmr.msra.gmra.mxu1 %v5222_v1 }
0x2026   :  { %3672 = vmatpush.msra.mxu1 %v3671_v21  ;;  %v3821_v21 = vld [vmem:[#allocation7 + $0x6e8] sm:$0xff] }
0x2027   :  { %v5225_v9 = vpop.f32.mrf.mxu0 }
0x2028   :  { %3429 = vmatmul.f32.gmra.mxu3 %v5225_v9  ;;  %3673 = vmatpush.msra.mxu1 %v3670_v22  ;;  %v3820_v22 = vld [vmem:[#allocation7 + $0x6e0] sm:$0xff] }
0x202a   :  { %3674 = vmatpush.msra.mxu1 %v3669_v56  ;;  %v3819_v56 = vld [vmem:[#allocation7 + $0x6d8] sm:$0xff] }
0x202c   :  { %v5228_v63 = vpop.f32.mrf.mxu3  ;;  %3675 = vmatpush.msra.mxu1 %v3668_v2  ;;  %v3818_v2 = vld [vmem:[#allocation7 + $0x6d0] sm:$0xff] }
0x202d   :  { %3321 = vmatmul.f32.gmra.mxu1 %v5228_v63 }
0x20a2   :  { %v3319_v24 = vpop.f32.mrf.mxu1 }
0x20a3   :  { %v3326_v25 = vadd.f32 %v3325_v5, %v3319_v24  ;;  %v3427_v26 = vpop.f32.mrf.mxu3  ;;  %v3555_v24 = vld [vmem:[#allocation7 + $0x448] sm:$0xff] }
0x20a5   :  { %v3368_v3 = vadd.f32 %v3362_v53, %v3326_v25  ;;  %v3666_v53 = vld [vmem:[#allocation7 + $0x550] sm:$0xff]  ;;  %v3665_v25 = vld [vmem:[#allocation7 + $0x548] sm:$0xff] }
0x20a7   :  { %v3433_v27 = vadd.f32 %v3427_v26, %v3368_v3  ;;  %v3554_v26 = vld [vmem:[#allocation7 + $0x440] sm:$0xff] }
0x20a8   :  { %v3664_v3 = vld [vmem:[#allocation7 + $0x540] sm:$0xff] }
0x20a9   :  { %v3435_v28 = vmax.f32 %v3433_v27, 0.0  ;;  %v3663_v27 = vld [vmem:[#allocation7 + $0x538] sm:$0xff] }
0x20aa   :  { %v3322_v29 = vpop.f32.mrf.mxu1 }
0x20ab   :  { %v3327_v4 = vadd.f32 %v3325_v5, %v3322_v29  ;;  %3536 = vmatmul.f32.vlgmr.msra.gmra.mxu2 %v3435_v28  ;;  %v3430_v31 = vpop.f32.mrf.mxu3  ;;  %v3667_v5 = vld [vmem:[#allocation7 + $0x558] sm:$0xff]  ;;  %v3662_v29 = vld [vmem:[#allocation7 + $0x530] sm:$0xff] }
0x20ac   :  { %3676 = vmatpush.msra.mxu1 %v3667_v5  ;;  %v3865_v5 = vld [vmem:[#allocation7 + $0x778] sm:$0xff] }
0x20ad   :  { %v3369_v32 = vadd.f32 %v3365_v30, %v3327_v4  ;;  %v3551_v4 = vld [vmem:[#allocation7 + $0x428] sm:$0xff]  ;;  %3889 = vmatpush.msra.mxu2 %v3865_v5 }
0x20ae   :  { %3677 = vmatpush.msra.mxu1 %v3666_v53  ;;  %v3661_v30 = vld [vmem:[#allocation7 + $0x528] sm:$0xff]  ;;  %v3864_v53 = vld [vmem:[#allocation7 + $0x770] sm:$0xff] }
0x20af   :  { %v3434_v33 = vadd.f32 %v3430_v31, %v3369_v32  ;;  %v3550_v31 = vld [vmem:[#allocation7 + $0x420] sm:$0xff]  ;;  %3890 = vmatpush.msra.mxu2 %v3864_v53  ;;  %v3992_v5 = vld [vmem:[#allocation7 + $0x848] sm:$0xff]  ;;  %v3990_v53 = vld [vmem:[#allocation7 + $0x838] sm:$0xff] }
0x20b0   :  { %3678 = vmatpush.msra.mxu1 %v3665_v25  ;;  %v3660_v32 = vld [vmem:[#allocation7 + $0x520] sm:$0xff]  ;;  %v3817_v25 = vld [vmem:[#allocation7 + $0x6c8] sm:$0xff] }
0x20b1   :  { %v3436_v37 = vmax.f32 %v3434_v33, 0.0  ;;  %v3549_v33 = vld [vmem:[#allocation7 + $0x418] sm:$0xff] }
0x20b2   :  { %3679 = vmatpush.msra.mxu1 %v3664_v3  ;;  %v3755_v3 = vld [vmem:[#allocation7 + $0x668] sm:$0xff] }
0x20b3   :  { %3468 = vmatpush.msrb.mxu0 %v3436_v37  ;;  %3539 = vmatmul.f32.gmra.mxu2 %v3436_v37 }
0x20b4   :  { %3680 = vmatpush.msra.mxu1 %v3663_v27  ;;  %v3862_v27 = vld [vmem:[#allocation7 + $0x760] sm:$0xff] }
0x20b5   :  { %3469 = vmatpush.msrb.mxu0 %v3435_v28 }
0x20b6   :  { %4309 = vmatmul.msk.f32.vlgmr.msrb.gmra.mxu0 %vm133_vm2, %v4660_v10  ;;  %3681 = vmatpush.msra.mxu1 %v3662_v29  ;;  %v3815_v29 = vld [vmem:[#allocation7 + $0x6b8] sm:$0xff] }
0x20b7   :  { %3576 = vmatpush.msra.mxu0 %v3436_v37  ;;  %v3659_v37 = vld [vmem:[#allocation7 + $0x518] sm:$0xff] }
0x20b8   :  { %3682 = vmatpush.msra.mxu1 %v3661_v30  ;;  %v3753_v30 = vld [vmem:[#allocation7 + $0x658] sm:$0xff] }
0x20b9   :  { %3577 = vmatpush.msra.mxu0 %v3435_v28  ;;  %v3552_v28 = vld [vmem:[#allocation7 + $0x430] sm:$0xff] }
0x20ba   :  { %3683 = vmatpush.msra.mxu1 %v3660_v32  ;;  %v3860_v32 = vld [vmem:[#allocation7 + $0x750] sm:$0xff] }
0x20bb   :  { %3629 = vmatpush.msrb.mxu0 %v3628_v8  ;;  %3730 = vmatmul.f32.vlgmr.msrb.gmra.mxu2 %v5219_v36  ;;  %v3619_v36 = vld [vmem:[#allocation7 + $0x4b0] sm:$0xff] }
0x20bc   :  { %3684 = vmatpush.msra.mxu1 %v3659_v37  ;;  %v3548_v8 = vld [vmem:[#allocation7 + $0x410] sm:$0xff]  ;;  %v3813_v37 = vld [vmem:[#allocation7 + $0x6a8] sm:$0xff] }
0x20bd   :  { %3630 = vmatpush.msrb.mxu0 %v3627_v40  ;;  %v3658_v40 = vld [vmem:[#allocation7 + $0x510] sm:$0xff] }
0x20be   :  { %4310 = vmatmul.msk.f32.gmra.mxu0 %vm133_vm2, %v4672_v17  ;;  %3685 = vmatpush.msra.mxu1 %v3658_v40  ;;  %v3751_v40 = vld [vmem:[#allocation7 + $0x648] sm:$0xff] }
0x20bf   :  { %3631 = vmatpush.msrb.mxu0 %v3626_v41  ;;  %v3547_v41 = vld [vmem:[#allocation7 + $0x408] sm:$0xff] }
0x20c1   :  { %3632 = vmatpush.msrb.mxu0 %v3625_v46  ;;  %v3657_v46 = vld [vmem:[#allocation7 + $0x508] sm:$0xff] }
0x20c2   :  { %3686 = vmatpush.msra.mxu1 %v3657_v46  ;;  %v3858_v46 = vld [vmem:[#allocation7 + $0x740] sm:$0xff] }
0x20c3   :  { %3633 = vmatpush.msrb.mxu0 %v3624_v42  ;;  %3733 = vmatmul.f32.gmra.mxu2 %v5225_v9  ;;  %v3557_v9 = vld [vmem:[#allocation7 + $0x458] sm:$0xff]  ;;  %v3546_v42 = vld [vmem:[#allocation7 + $0x400] sm:$0xff] }
0x20c4   :  { %3589 = vmatpush.msrb.mxu3 %v3557_v9 }
0x20c5   :  { %3634 = vmatpush.msrb.mxu0 %v3623_v39  ;;  %v3656_v39 = vld [vmem:[#allocation7 + $0x500] sm:$0xff] }
0x20c6   :  { %4311 = vmatmul.msk.f32.vlgmr.msra.gmra.mxu0 %vm133_vm2, %v4662_v11  ;;  %3687 = vmatpush.msra.mxu1 %v3656_v39  ;;  %v3811_v39 = vld [vmem:[#allocation7 + $0x698] sm:$0xff] }
0x20c7   :  { %3635 = vmatpush.msrb.mxu0 %v3622_v48 }
0x20c9   :  { %3636 = vmatpush.msrb.mxu0 %v3621_v54 }
0x20cb   :  { %3637 = vmatpush.msrb.mxu0 %v3620_v35 }
0x20cd   :  { %3638 = vmatpush.msrb.mxu0 %v3619_v36 }
0x20ce   :  { %4312 = vmatmul.msk.f32.gmra.mxu0 %vm133_vm2, %v4674_v18 }
0x20cf   :  { %3639 = vmatpush.msrb.mxu0 %v3618_v61 }
0x20d1   :  { %3640 = vmatpush.msrb.mxu0 %v3617_v62 }
0x20d3   :  { %3641 = vmatpush.msrb.mxu0 %v3616_v59 }
0x20d5   :  { %3642 = vmatpush.msrb.mxu0 %v3615_v44 }
0x20d7   :  { %3643 = vmatpush.msrb.mxu0 %v3614_v34 }
0x20d9   :  { %3644 = vmatpush.msrb.mxu0 %v3613_v6 }
0x20da   :  { %3645 = vmatmul.f32.vlgmr.msrb.gmra.mxu0 %v5222_v1  ;;  %v3556_v1 = vld [vmem:[#allocation7 + $0x450] sm:$0xff] }
0x20db   :  { %3590 = vmatpush.msrb.mxu3 %v3556_v1  ;;  %v3757_v1 = vld [vmem:[#allocation7 + $0x678] sm:$0xff] }
0x20dc   :  { %3781 = vmatpush.msra.mxu0 %v3757_v1  ;;  %v3991_v1 = vld [vmem:[#allocation7 + $0x840] sm:$0xff] }
0x20dd   :  { %3591 = vmatpush.msrb.mxu3 %v3555_v24  ;;  %v3756_v24 = vld [vmem:[#allocation7 + $0x670] sm:$0xff] }
0x20de   :  { %3782 = vmatpush.msra.mxu0 %v3756_v24  ;;  %v3989_v24 = vld [vmem:[#allocation7 + $0x830] sm:$0xff] }
0x20df   :  { %3592 = vmatpush.msrb.mxu3 %v3554_v26  ;;  %v3863_v26 = vld [vmem:[#allocation7 + $0x768] sm:$0xff] }
0x20e0   :  { %3891 = vmatpush.msra.mxu2 %v3863_v26  ;;  %3783 = vmatpush.msra.mxu0 %v3755_v3  ;;  %v3987_v26 = vld [vmem:[#allocation7 + $0x820] sm:$0xff]  ;;  %v3986_v3 = vld [vmem:[#allocation7 + $0x818] sm:$0xff] }
0x20e2   :  { %3648 = vmatmul.f32.gmra.mxu0 %v5228_v63  ;;  %v3553_v63 = vld [vmem:[#allocation7 + $0x438] sm:$0xff]  ;;  %3892 = vmatpush.msra.mxu2 %v3862_v27  ;;  %v3984_v27 = vld [vmem:[#allocation7 + $0x808] sm:$0xff] }
0x20e3   :  { %3593 = vmatpush.msrb.mxu3 %v3553_v63  ;;  %v3816_v63 = vld [vmem:[#allocation7 + $0x6c0] sm:$0xff] }
0x20e5   :  { %3594 = vmatpush.msrb.mxu3 %v3552_v28  ;;  %v3754_v28 = vld [vmem:[#allocation7 + $0x660] sm:$0xff] }
0x20e6   :  { %3784 = vmatpush.msra.mxu0 %v3754_v28  ;;  %v3983_v28 = vld [vmem:[#allocation7 + $0x800] sm:$0xff] }
0x20e7   :  { %3595 = vmatpush.msrb.mxu3 %v3551_v4  ;;  %v3861_v4 = vld [vmem:[#allocation7 + $0x758] sm:$0xff] }
0x20e8   :  { %3893 = vmatpush.msra.mxu2 %v3861_v4  ;;  %3785 = vmatpush.msra.mxu0 %v3753_v30 }
0x20e9   :  { %3596 = vmatpush.msrb.mxu3 %v3550_v31  ;;  %v3814_v31 = vld [vmem:[#allocation7 + $0x6b0] sm:$0xff] }
0x20ea   :  { %3894 = vmatpush.msra.mxu2 %v3860_v32 }
0x20eb   :  { %3597 = vmatpush.msrb.mxu3 %v3549_v33  ;;  %v3752_v33 = vld [vmem:[#allocation7 + $0x650] sm:$0xff] }
0x20ec   :  { %3786 = vmatpush.msra.mxu0 %v3752_v33 }
0x20ed   :  { %3598 = vmatpush.msrb.mxu3 %v3548_v8  ;;  %v3859_v8 = vld [vmem:[#allocation7 + $0x748] sm:$0xff] }
0x20ee   :  { %3895 = vmatpush.msra.mxu2 %v3859_v8  ;;  %3787 = vmatpush.msra.mxu0 %v3751_v40 }
0x20ef   :  { %3599 = vmatpush.msrb.mxu3 %v3547_v41  ;;  %v3812_v41 = vld [vmem:[#allocation7 + $0x6a0] sm:$0xff] }
0x20f0   :  { %3896 = vmatpush.msra.mxu2 %v3858_v46 }
0x20f1   :  { %3600 = vmatpush.msrb.mxu3 %v3546_v42  ;;  %v3750_v42 = vld [vmem:[#allocation7 + $0x640] sm:$0xff] }
0x20f2   :  { %3788 = vmatpush.msra.mxu0 %v3750_v42 }
0x212e   :  { %v3537_v54 = vpop.f32.mrf.mxu2 }
0x2133   :  { %v3471_v43 = vpop.f32.mrf.mxu0 }
0x2134   :  { %3493 = vmatmul.f32.vlgmr.msrb.gmra.mxu1 %v3471_v43  ;;  %v3857_v43 = vld [vmem:[#allocation7 + $0x738] sm:$0xff] }
0x2135   :  { %3897 = vmatpush.msra.mxu2 %v3857_v43 }
0x2136   :  { %v5246_v57 = vpop.f32.mrf.mxu2 }
0x213b   :  { %v3474_v47 = vpop.f32.mrf.mxu0 }
0x213c   :  { %3496 = vmatmul.f32.gmra.mxu1 %v3474_v47  ;;  %v3749_v47 = vld [vmem:[#allocation7 + $0x638] sm:$0xff] }
0x213d   :  { %3789 = vmatpush.msra.mxu0 %v3749_v47 }
0x213e   :  { %v3731_v36 = vpop.f32.mrf.mxu2 }
0x2143   :  { %v3579_v48 = vpop.f32.mrf.mxu0 }
0x2144   :  { %3601 = vmatmul.f32.vlgmr.msrb.gmra.mxu3 %v3579_v48  ;;  %3688 = vmatmul.f32.vlgmr.msra.gmra.mxu1 %v5201_v0  ;;  %v3810_v48 = vld [vmem:[#allocation7 + $0x690] sm:$0xff] }
0x2146   :  { %v3734_v52 = vpop.f32.mrf.mxu2 }
0x214b   :  { %v3582_v51 = vpop.f32.mrf.mxu0 }
0x214c   :  { %3604 = vmatmul.f32.gmra.mxu3 %v3582_v51  ;;  %3691 = vmatmul.f32.gmra.mxu1 %v5204_v23  ;;  %v3856_v51 = vld [vmem:[#allocation7 + $0x730] sm:$0xff] }
0x214d   :  { %3898 = vmatpush.msra.mxu2 %v3856_v51 }
0x2157   :  { %v3646_v45 = vpop.f32.mrf.mxu0 }
0x2158   :  { %v3653_v9 = vadd.f32 %v3652_v60, %v3646_v45  ;;  %v3855_v45 = vld [vmem:[#allocation7 + $0x728] sm:$0xff] }
0x2159   :  { %3899 = vmatpush.msra.mxu2 %v3855_v45 }
0x215f   :  { %v3649_v14 = vpop.f32.mrf.mxu0 }
0x2160   :  { %v3654_v59 = vadd.f32 %v3652_v60, %v3649_v14  ;;  %v3854_v60 = vld [vmem:[#allocation7 + $0x720] sm:$0xff]  ;;  %v3853_v14 = vld [vmem:[#allocation7 + $0x718] sm:$0xff] }
0x2161   :  { %3900 = vmatpush.msra.mxu2 %v3854_v60  ;;  %v3928_v60 = vld [vmem:[#allocation7 + $0x7d8] sm:$0xff] }
0x2163   :  { %3901 = vmatpush.msra.mxu2 %v3853_v14  ;;  %v4036_v14 = vld [vmem:[#allocation7 + $0x8d8] sm:$0xff] }
0x21b1   :  { %v3494_v55 = vpop.f32.mrf.mxu1 }
0x21b2   :  { %v3501_v61 = vadd.f32 %v3500_v49, %v3494_v55  ;;  %v3809_v55 = vld [vmem:[#allocation7 + $0x688] sm:$0xff] }
0x21b4   :  { %v3543_v62 = vadd.f32 %v3537_v54, %v3501_v61  ;;  %v3748_v54 = vld [vmem:[#allocation7 + $0x630] sm:$0xff]  ;;  %v3746_v61 = vld [vmem:[#allocation7 + $0x620] sm:$0xff] }
0x21b5   :  { %3790 = vmatpush.msra.mxu0 %v3748_v54  ;;  %v3932_v54 = vld [vmem:[#allocation7 + $0x7f8] sm:$0xff] }
0x21b9   :  { %v5248_v35 = vpop.f32.mrf.mxu1 }
0x21ba   :  { %v3502_v33 = vadd.f32 %v3500_v49, %v5248_v35 }
0x21c1   :  { %v3689_v15 = vpop.f32.mrf.mxu1 }
0x21c2   :  { %v3695_v50 = vadd.f32 %v3689_v15, %v3653_v9  ;;  %v3808_v15 = vld [vmem:[#allocation7 + $0x680] sm:$0xff]  ;;  %v3745_v9 = vld [vmem:[#allocation7 + $0x618] sm:$0xff] }
0x21c4   :  { %v3737_v6 = vadd.f32 %v3731_v36, %v3695_v50  ;;  %v3747_v36 = vld [vmem:[#allocation7 + $0x628] sm:$0xff] }
0x21c5   :  { %3791 = vmatpush.msra.mxu0 %v3747_v36  ;;  %v3743_v50 = vld [vmem:[#allocation7 + $0x608] sm:$0xff]  ;;  %v4039_v36 = vld [vmem:[#allocation7 + $0x8f0] sm:$0xff] }
0x21c6   :  { %v5260_v16 = vmax.f32 %v3737_v6, 0.0 }
0x21c7   :  { %v3602_v38 = vpop.f32.mrf.mxu3  ;;  %3792 = vmatpush.msra.mxu0 %v3746_v61  ;;  %v3927_v61 = vld [vmem:[#allocation7 + $0x7d0] sm:$0xff] }
0x21c8   :  { %v5256_v44 = vadd.f32 %v3602_v38, %v3543_v62  ;;  %v3852_v62 = vld [vmem:[#allocation7 + $0x710] sm:$0xff] }
0x21c9   :  { %v3692_v58 = vpop.f32.mrf.mxu1  ;;  %v3744_v38 = vld [vmem:[#allocation7 + $0x610] sm:$0xff]  ;;  %3793 = vmatpush.msra.mxu0 %v3745_v9  ;;  %3902 = vmatpush.msra.mxu2 %v3852_v62  ;;  %v3926_v9 = vld [vmem:[#allocation7 + $0x7c8] sm:$0xff]  ;;  %v3925_v62 = vld [vmem:[#allocation7 + $0x7c0] sm:$0xff] }
0x21ca   :  { %v3696_v34 = vadd.f32 %v3692_v58, %v3654_v59  ;;  %v3851_v59 = vld [vmem:[#allocation7 + $0x708] sm:$0xff]  ;;  %v3850_v58 = vld [vmem:[#allocation7 + $0x700] sm:$0xff]  ;;  %v3610_v8 = vadd.f32 %v5256_v44, %v5201_v0  ;;  %v4040_v44 = vld [vmem:[#allocation7 + $0x8f8] sm:$0xff] }
0x21cb   :  { %3794 = vmatpush.msra.mxu0 %v3744_v38  ;;  %3903 = vmatpush.msra.mxu2 %v3851_v59  ;;  %v3930_v0 = vld [vmem:[#allocation7 + $0x7e8] sm:$0xff]  ;;  %v3924_v38 = vld [vmem:[#allocation7 + $0x7b8] sm:$0xff] }
0x21cc   :  { %v3738_v12 = vadd.f32 %v3734_v52, %v3696_v34  ;;  %v3742_v34 = vld [vmem:[#allocation7 + $0x600] sm:$0xff]  ;;  %v3922_v59 = vld [vmem:[#allocation7 + $0x7a8] sm:$0xff] }
0x21cd   :  { %3795 = vmatpush.msra.mxu0 %v3743_v50  ;;  %3904 = vmatpush.msra.mxu2 %v3850_v58  ;;  %v3921_v50 = vld [vmem:[#allocation7 + $0x7a0] sm:$0xff]  ;;  %v3920_v58 = vld [vmem:[#allocation7 + $0x798] sm:$0xff] }
0x21ce   :  { %v5258_v13 = vmax.f32 %v3738_v12, 0.0 }
0x21cf   :  { %3796 = vmatpush.msra.mxu0 %v3742_v34  ;;  %v3605_v52 = vpop.f32.mrf.mxu3  ;;  %4064 = vmatpush.msrb.mxu2 %v4040_v44  ;;  %v3919_v34 = vld [vmem:[#allocation7 + $0x790] sm:$0xff] }
0x21d0   :  { %3772 = vmatpush.msra.mxu3 %v5258_v13  ;;  %3880 = vmatpush.msrb.mxu1 %v5258_v13 }
0x21d1   :  { %3956 = vmatpush.msrb.mxu0 %v3932_v54  ;;  %4065 = vmatpush.msrb.mxu2 %v4039_v36 }
0x21d2   :  { %3773 = vmatpush.msra.mxu3 %v5260_v16  ;;  %3881 = vmatpush.msrb.mxu1 %v5260_v16 }
0x21d3   :  { %4313 = vmatmul.msk.f32.vlgmr.msra.gmra.mxu3 %vm133_vm2, %v4660_v10  ;;  %4315 = vmatmul.msk.f32.vlgmr.msrb.gmra.mxu1 %vm133_vm2, %v4662_v11 }
0x21d4   :  { %3824 = vmatpush.msrb.mxu3 %v3823_v19 }
0x21d6   :  { %3825 = vmatpush.msrb.mxu3 %v3822_v20  ;;  %v3998_v20 = vld [vmem:[#allocation7 + $0x878] sm:$0xff] }
0x21d8   :  { %3826 = vmatpush.msrb.mxu3 %v3821_v21  ;;  %v3997_v21 = vld [vmem:[#allocation7 + $0x870] sm:$0xff] }
0x21da   :  { %3827 = vmatpush.msrb.mxu3 %v3820_v22  ;;  %v3996_v22 = vld [vmem:[#allocation7 + $0x868] sm:$0xff] }
0x21db   :  { %4314 = vmatmul.msk.f32.gmra.mxu3 %vm133_vm2, %v4672_v17  ;;  %4316 = vmatmul.msk.f32.gmra.mxu1 %vm133_vm2, %v4674_v18 }
0x21dc   :  { %3828 = vmatpush.msrb.mxu3 %v3819_v56  ;;  %v3995_v56 = vld [vmem:[#allocation7 + $0x860] sm:$0xff] }
0x21de   :  { %3829 = vmatpush.msrb.mxu3 %v3818_v2  ;;  %v3993_v2 = vld [vmem:[#allocation7 + $0x850] sm:$0xff] }
0x21e0   :  { %3830 = vmatpush.msrb.mxu3 %v3817_v25  ;;  %v3988_v25 = vld [vmem:[#allocation7 + $0x828] sm:$0xff] }
0x21e2   :  { %3831 = vmatpush.msrb.mxu3 %v3816_v63  ;;  %v3985_v63 = vld [vmem:[#allocation7 + $0x810] sm:$0xff] }
0x21e4   :  { %3832 = vmatpush.msrb.mxu3 %v3815_v29  ;;  %v3804_v29 = vperm.slane %v5250_v7, 2 }
0x21e6   :  { %3833 = vmatpush.msrb.mxu3 %v3814_v31 }
0x21e8   :  { %3834 = vmatpush.msrb.mxu3 %v3813_v37 }
0x21ea   :  { %3835 = vmatpush.msrb.mxu3 %v3812_v41  ;;  %v3544_v41 = vadd.f32 %v5246_v57, %v3502_v33  ;;  %v3929_v57 = vld [vmem:[#allocation7 + $0x7e0] sm:$0xff] }
0x21ec   :  { %3836 = vmatpush.msrb.mxu3 %v3811_v39  ;;  %v3609_v39 = vadd.f32 %v3605_v52, %v3544_v41  ;;  %v4035_v52 = vld [vmem:[#allocation7 + $0x8d0] sm:$0xff] }
0x21ee   :  { %3837 = vmatpush.msrb.mxu3 %v3810_v48  ;;  %v3611_v45 = vadd.f32 %v3609_v39, %v5204_v23  ;;  %v4037_v23 = vld [vmem:[#allocation7 + $0x8e0] sm:$0xff] }
0x21f0   :  { %3838 = vmatpush.msrb.mxu3 %v3809_v55  ;;  %v3931_v55 = vld [vmem:[#allocation7 + $0x7f0] sm:$0xff] }
0x21f1   :  { %3957 = vmatpush.msrb.mxu0 %v3931_v55 }
0x21f2   :  { %3839 = vmatpush.msrb.mxu3 %v3808_v15  ;;  %v4038_v15 = vld [vmem:[#allocation7 + $0x8e8] sm:$0xff] }
0x21f3   :  { %3840 = vmatmul.f32.vlgmr.msrb.gmra.mxu3 %v5260_v16  ;;  %3958 = vmatpush.msrb.mxu0 %v3930_v0 }
0x21f4   :  { %3999 = vmatpush.msra.mxu3 %v3998_v20  ;;  %4066 = vmatpush.msrb.mxu2 %v4038_v15  ;;  %v4030_v20 = vld [vmem:[#allocation7 + $0x8a8] sm:$0xff] }
0x21f5   :  { %3959 = vmatpush.msrb.mxu0 %v3929_v57 }
0x21f6   :  { %4000 = vmatpush.msra.mxu3 %v3997_v21  ;;  %4067 = vmatpush.msrb.mxu2 %v4037_v23  ;;  %v4029_v21 = vld [vmem:[#allocation7 + $0x8a0] sm:$0xff] }
0x21f7   :  { %3960 = vmatpush.msrb.mxu0 %v3928_v60 }
0x21f8   :  { %4001 = vmatpush.msra.mxu3 %v3996_v22  ;;  %4068 = vmatpush.msrb.mxu2 %v4036_v14  ;;  %v4027_v22 = vld [vmem:[#allocation7 + $0x890] sm:$0xff] }
0x21f9   :  { %3961 = vmatpush.msrb.mxu0 %v3927_v61 }
0x21fa   :  { %4002 = vmatpush.msra.mxu3 %v3995_v56  ;;  %4069 = vmatpush.msrb.mxu2 %v4035_v52  ;;  %v4026_v56 = vld [vmem:[#allocation7 + $0x888] sm:$0xff] }
0x21fb   :  { %3843 = vmatmul.f32.gmra.mxu3 %v5258_v13  ;;  %v3994_v13 = vld [vmem:[#allocation7 + $0x858] sm:$0xff]  ;;  %3962 = vmatpush.msrb.mxu0 %v3926_v9 }
0x21fc   :  { %4003 = vmatpush.msra.mxu3 %v3994_v13  ;;  %v4025_v13 = vld [vmem:[#allocation7 + $0x880] sm:$0xff] }
0x21fd   :  { %3963 = vmatpush.msrb.mxu0 %v3925_v62 }
0x21fe   :  { %4004 = vmatpush.msra.mxu3 %v3993_v2 }
0x21ff   :  { %3964 = vmatpush.msrb.mxu0 %v3924_v38 }
0x2200   :  { %4005 = vmatpush.msra.mxu3 %v3992_v5 }
0x2202   :  { %4006 = vmatpush.msra.mxu3 %v3991_v1 }
0x2204   :  { %4007 = vmatpush.msra.mxu3 %v3990_v53 }
0x2206   :  { %4008 = vmatpush.msra.mxu3 %v3989_v24 }
0x2208   :  { %4009 = vmatpush.msra.mxu3 %v3988_v25  ;;  %v3979_v25 = vperm.slane %v5250_v7, 3 }
0x220a   :  { %4010 = vmatpush.msra.mxu3 %v3987_v26 }
0x220c   :  { %4011 = vmatpush.msra.mxu3 %v3986_v3 }
0x220e   :  { %4012 = vmatpush.msra.mxu3 %v3985_v63 }
0x2210   :  { %4013 = vmatpush.msra.mxu3 %v3984_v27 }
0x2212   :  { %4014 = vmatpush.msra.mxu3 %v3983_v28 }
0x2250   :  { %v3883_v6 = vpop.f32.mrf.mxu1 }
0x2251   :  { %3905 = vmatmul.f32.vlgmr.msra.gmra.mxu2 %v3883_v6  ;;  %v3918_v6 = vld [vmem:[#allocation7 + $0x788] sm:$0xff] }
0x2256   :  { %v3775_v12 = vpop.f32.mrf.mxu3 }
0x2257   :  { %3797 = vmatmul.f32.vlgmr.msra.gmra.mxu0 %v3775_v12  ;;  %v3917_v12 = vld [vmem:[#allocation7 + $0x780] sm:$0xff] }
0x2258   :  { %v3886_v16 = vpop.f32.mrf.mxu1 }
0x2259   :  { %3908 = vmatmul.f32.gmra.mxu2 %v3886_v16  ;;  %v4033_v16 = vld [vmem:[#allocation7 + $0x8c0] sm:$0xff] }
0x225e   :  { %v3778_v19 = vpop.f32.mrf.mxu3 }
0x225f   :  { %3800 = vmatmul.f32.gmra.mxu0 %v3778_v19  ;;  %v4032_v19 = vld [vmem:[#allocation7 + $0x8b8] sm:$0xff] }
0x2276   :  { %v3841_v4 = vpop.f32.mrf.mxu3 }
0x227e   :  { %v3844_v47 = vpop.f32.mrf.mxu3 }
0x22d4   :  { %v3798_v30 = vpop.f32.mrf.mxu0  ;;  %v3906_v31 = vpop.f32.mrf.mxu2 }
0x22d5   :  { %v3805_v32 = vadd.f32 %v3804_v29, %v3798_v30 }
0x22d7   :  { %v3847_v37 = vadd.f32 %v3841_v4, %v3805_v32 }
0x22d9   :  { %v3912_v40 = vadd.f32 %v3906_v31, %v3847_v37 }
0x22db   :  { %v3914_v46 = vadd.f32 %v3912_v40, %v3610_v8 }
0x22dc   :  { %v3801_v42 = vpop.f32.mrf.mxu0  ;;  %v3909_v48 = vpop.f32.mrf.mxu2 }
0x22dd   :  { %v3806_v43 = vadd.f32 %v3804_v29, %v3801_v42  ;;  %4015 = vmatmul.f32.vlgmr.msra.gmra.mxu3 %v3914_v46 }
0x22df   :  { %v3848_v51 = vadd.f32 %v3844_v47, %v3806_v43 }
0x22e1   :  { %v3913_v35 = vadd.f32 %v3909_v48, %v3848_v51 }
0x22e3   :  { %v3915_v49 = vadd.f32 %v3913_v35, %v3611_v45 }
0x22e5   :  { %3947 = vmatpush.msra.mxu1 %v3915_v49  ;;  %4018 = vmatmul.f32.gmra.mxu3 %v3915_v49 }
0x22e7   :  { %3948 = vmatpush.msra.mxu1 %v3914_v46 }
0x22e8   :  { %4317 = vmatmul.msk.f32.vlgmr.msra.gmra.mxu1 %vm133_vm2, %v4660_v10  ;;  %v3923_v10 = vld [vmem:[#allocation7 + $0x7b0] sm:$0xff] }
0x22e9   :  { %4055 = vmatpush.msrb.mxu1 %v3915_v49  ;;  %3965 = vmatpush.msrb.mxu0 %v3923_v10 }
0x22eb   :  { %4056 = vmatpush.msrb.mxu1 %v3914_v46  ;;  %3966 = vmatpush.msrb.mxu0 %v3922_v59 }
0x22ed   :  { %3967 = vmatpush.msrb.mxu0 %v3921_v50 }
0x22ef   :  { %3968 = vmatpush.msrb.mxu0 %v3920_v58 }
0x22f0   :  { %4318 = vmatmul.msk.f32.gmra.mxu1 %vm133_vm2, %v4672_v17  ;;  %v4034_v17 = vld [vmem:[#allocation7 + $0x8c8] sm:$0xff] }
0x22f1   :  { %3969 = vmatpush.msrb.mxu0 %v3919_v34  ;;  %4070 = vmatpush.msrb.mxu2 %v4034_v17 }
0x22f3   :  { %3970 = vmatpush.msrb.mxu0 %v3918_v6  ;;  %4071 = vmatpush.msrb.mxu2 %v4033_v16 }
0x22f5   :  { %3971 = vmatpush.msrb.mxu0 %v3917_v12  ;;  %4072 = vmatpush.msrb.mxu2 %v4032_v19 }
0x22f8   :  { %4319 = vmatmul.msk.f32.vlgmr.msrb.gmra.mxu1 %vm133_vm2, %v4662_v11  ;;  %v4031_v11 = vld [vmem:[#allocation7 + $0x8b0] sm:$0xff] }
0x22f9   :  { %4073 = vmatpush.msrb.mxu2 %v4031_v11 }
0x22fb   :  { %4074 = vmatpush.msrb.mxu2 %v4030_v20 }
0x22fd   :  { %4075 = vmatpush.msrb.mxu2 %v4029_v21 }
0x2300   :  { %4320 = vmatmul.msk.f32.gmra.mxu1 %vm133_vm2, %v4674_v18  ;;  %v4028_v18 = vld [vmem:[#allocation7 + $0x898] sm:$0xff] }
0x2301   :  { %4076 = vmatpush.msrb.mxu2 %v4028_v18 }
0x2303   :  { %4077 = vmatpush.msrb.mxu2 %v4027_v22 }
0x2305   :  { %4078 = vmatpush.msrb.mxu2 %v4026_v56 }
0x2307   :  { %4079 = vmatpush.msrb.mxu2 %v4025_v13 }
0x2360   :  { %v4016_v3 = vpop.f32.mrf.mxu3 }
0x2365   :  { %v3950_v2 = vpop.f32.mrf.mxu1 }
0x2366   :  { %3972 = vmatmul.f32.vlgmr.msrb.gmra.mxu0 %v3950_v2 }
0x2368   :  { %v4019_v30 = vpop.f32.mrf.mxu3 }
0x236d   :  { %v3953_v5 = vpop.f32.mrf.mxu1 }
0x236e   :  { %3975 = vmatmul.f32.gmra.mxu0 %v3953_v5 }
0x2375   :  { %v4058_v1 = vpop.f32.mrf.mxu1 }
0x2376   :  { %4080 = vmatmul.f32.vlgmr.msrb.gmra.mxu2 %v4058_v1 }
0x237d   :  { %v4061_v53 = vpop.f32.mrf.mxu1 }
0x237e   :  { %4083 = vmatmul.f32.gmra.mxu2 %v4061_v53 }
0x23e3   :  { %v3973_v24 = vpop.f32.mrf.mxu0 }
0x23e4   :  { %v3980_v26 = vadd.f32 %v3979_v25, %v3973_v24 }
0x23e6   :  { %v4022_v63 = vadd.f32 %v4016_v3, %v3980_v26 }
0x23eb   :  { %v3976_v27 = vpop.f32.mrf.mxu0 }
0x23ec   :  { %v3981_v4 = vadd.f32 %v3979_v25, %v3976_v27 }
0x23ee   :  { %v4023_v31 = vadd.f32 %v4019_v30, %v3981_v4 }
0x23f9   :  { %v4081_v28 = vpop.f32.mrf.mxu2 }
0x23fa   :  { %v4087_v29 = vadd.f32 %v4081_v28, %v4022_v63 }
0x23fc   :  { %4089 = vst [vmem:[#allocation11] sm:$0xff] %v4087_v29 }
0x2401   :  { %v4084_v32 = vpop.f32.mrf.mxu2 }
0x2402   :  { %v4088_v33 = vadd.f32 %v4084_v32, %v4023_v31 }
0x2404   :  { %4090 = vst [vmem:[#allocation11 + $0x8] sm:$0xff] %v4088_v33 }
0x2405   :  { %4103 = dma.vmem_to_hbm [thread:$0]  %s4096_s9, 256, %s4098_s3, [#allocation4], %s4574_s29, %s4574_s29, %s4575_s30  }
0x2406   :  { %4571 = dma.done.wait [#allocation4], 256  }
0x2407   :  { %4572 = vsyncadd [#allocation4], 4294967040 }
0x2408   :  { %4108 = vsyncpa [#allocation3], 1 }
0x2409   :  { %4109 = vsyncpa [#allocation6], 1 }
0x240a   :  { %4110 = vsyncpa [#allocation9], 1 }
0x240b   :  { %4111 = vsyncpa [#allocation4], 1 }

</bundles_post_ra>
